<compile_context>
chip_gen: v7x
topology: tpu7x:2x2x1
jax: 0.10.0
libtpu: 0.0.40
codegen_flags: <defaults>
</compile_context>

<pallas_src>
import jax
import jax.numpy as jnp
from jax.experimental import pallas as pl
from jax.experimental.pallas import tpu as pltpu

EPS = 1e-5

_VMEM = pl.BlockSpec(memory_space=pltpu.MemorySpace.VMEM)


# --------------------------------------------------------------------------
# In-kernel helpers
# --------------------------------------------------------------------------
def _bn_relu_rows(y, g_row, b_row):
    """Training-mode BatchNorm over rows (axis 0) + ReLU.

    y: (M, C) f32;  g_row/b_row: (1, C) f32.  Centered two-pass statistics
    (biased variance), matching PyTorch BatchNorm2d in training mode.
    """
    m = jnp.mean(y, axis=0, keepdims=True)
    yc = y - m
    v = jnp.mean(yc * yc, axis=0, keepdims=True)          # biased batch variance
    scale = jax.lax.rsqrt(v + EPS) * g_row                 # rsqrt -> EUP
    shift = b_row - m * scale
    return jnp.maximum(y * scale + shift, 0.0)             # single fused VPU pass


def _residual_block_body(x2d, hp_ref, N, H, W,
                         g1, b1, w1r, c1b, g2, b2, w2, c2b):
    """y = Conv1x1(ReLU(BN2(Conv3x3(ReLU(BN1(x)))))) + x.

    x2d: (M, D) f32 with M = N*H*W, channels lane-dense.
    hp_ref: (N, H+2, Wp, D) bf16 padded scratch, border already zeroed.
    w1r: (3, 3*D, D) bf16 (dx-major, K grouped dy-major); w2: (D, D) bf16.
    """
    M, D = x2d.shape

    # BN1 + ReLU, then stage into the zero-bordered padded scratch (bf16).
    h = _bn_relu_rows(x2d, g1, b1)
    hp_ref[:, 1:H + 1, 1:W + 1, :] = h.reshape(N, H, W, D).astype(hp_ref.dtype)

    # 3x3 conv, stride 1, pad 1: 3 matmuls with K = 3*D (dy rows im2col'ed
    # into the contraction axis), bf16 operands, f32 accumulation.
    acc = jnp.zeros((M, D), jnp.float32)
    for dx in range(3):
        patch = jnp.concatenate(
            [hp_ref[:, dy:dy + H, dx:dx + W, :].reshape(M, D) for dy in range(3)],
            axis=1)                                        # (M, 3*D) bf16
        acc = acc + jnp.dot(patch, w1r[dx], preferred_element_type=jnp.float32)
    y = acc + c1b

    # BN2 + ReLU, 1x1 conv, residual add (residual path stays f32).
    h2 = _bn_relu_rows(y, g2, b2)
    y2 = jnp.dot(h2.astype(w2.dtype), w2, preferred_element_type=jnp.float32) + c2b
    return x2d + y2


# --------------------------------------------------------------------------
# Fused encoder kernel
# --------------------------------------------------------------------------
def encoder_kernel(cols1_ref, w1k_ref, cb1_ref, g1_ref, b1_ref,
                   w2r_ref, cb2_ref,
                   r1g1_ref, r1b1_ref, r1w1_ref, r1c1b_ref,
                   r1g2_ref, r1b2_ref, r1w2_ref, r1c2b_ref,
                   r2g1_ref, r2b1_ref, r2w1_ref, r2c1b_ref,
                   r2g2_ref, r2b2_ref, r2w2_ref, r2c2b_ref,
                   out_ref, s2d_ref, hp_ref):
    N, H2, W2, D = out_ref.shape
    M2 = N * H2 * W2

    # ---- Conv1 (k4 s2 p1): one K=48 im2col matmul over ALL output pixels,
    # rows are phase-major (py, px, n, i, j).  BN stats over all rows ==
    # global (N, H1, W1) stats.  Then BN + ReLU.
    y1 = jnp.dot(cols1_ref[...], w1k_ref[...],
                 preferred_element_type=jnp.float32) + cb1_ref[...]
    h1 = _bn_relu_rows(y1, g1_ref[...], b1_ref[...])       # (4*M2, D) f32

    # ---- Scatter conv1 output directly into space-to-depth layout so that
    # conv2 (k4 s2 p1) becomes a 2x2 VALID conv with K = 4*D.
    #   s2d[n, by, bx, (sy*2+sx)*D + c] = pad(h1)[n, 2*by+sy, 2*bx+sx, c]
    # Phase (py, px) of h1 (output pixel (2i+py, 2j+px)) lands in channel
    # block (1-py, 1-px) with a +1 spatial offset when p? == 1.
    s2d_ref[...] = jnp.zeros_like(s2d_ref)                  # padding border = 0
    for p in range(4):
        py, px = p // 2, p % 2
        blk = (1 - py) * 2 + (1 - px)
        blk_h = h1[p * M2:(p + 1) * M2, :].reshape(N, H2, W2, D)
        ys = slice(0, H2) if py == 0 else slice(1, H2 + 1)
        xs = slice(0, W2) if px == 0 else slice(1, W2 + 1)
        s2d_ref[:, ys, xs, blk * D:(blk + 1) * D] = blk_h.astype(s2d_ref.dtype)

    # ---- Conv2 (k4 s2 p1) as 2x2 VALID conv: 4 matmuls with K = 4*D.
    w2r = w2r_ref[...]                                      # (2, 2, 4*D, D) bf16
    acc = jnp.zeros((M2, D), jnp.float32)
    for qy in range(2):
        for qx in range(2):
            patch = s2d_ref[:, qy:qy + H2, qx:qx + W2, :].reshape(M2, 4 * D)
            acc = acc + jnp.dot(patch, w2r[qy, qx],
                                preferred_element_type=jnp.float32)
    x2d = acc + cb2_ref[...]                                # (M2, D) f32

    # ---- Zero ONLY the 1-pixel border of the shared 3x3 padded scratch,
    # once; both residual blocks fully overwrite the interior.
    Wp = hp_ref.shape[2]
    zrow = jnp.zeros((N, 1, Wp, D), hp_ref.dtype)
    hp_ref[:, 0:1, :, :] = zrow
    hp_ref[:, H2 + 1:H2 + 2, :, :] = zrow
    zcol = jnp.zeros((N, H2 + 2, 1, D), hp_ref.dtype)
    hp_ref[:, :, 0:1, :] = zcol
    hp_ref[:, :, W2 + 1:W2 + 2, :] = zcol

    # ---- Residual blocks 1 and 2.
    x2d = _residual_block_body(
        x2d, hp_ref, N, H2, W2,
        r1g1_ref[...], r1b1_ref[...], r1w1_ref[...], r1c1b_ref[...],
        r1g2_ref[...], r1b2_ref[...], r1w2_ref[...], r1c2b_ref[...])
    x2d = _residual_block_body(
        x2d, hp_ref, N, H2, W2,
        r2g1_ref[...], r2b1_ref[...], r2w1_ref[...], r2c1b_ref[...],
        r2g2_ref[...], r2b2_ref[...], r2w2_ref[...], r2c2b_ref[...])

    out_ref[...] = x2d.reshape(N, H2, W2, D)                # lane-dense store


# --------------------------------------------------------------------------
# Wrapper-side layout plumbing (one-time weight prep + per-call im2col)
# --------------------------------------------------------------------------
def _row(p):
    return p.reshape(1, -1).astype(jnp.float32)


def _regroup_conv4_weights(w):
    """(4,4,Cin,D) HWIO -> (2,2,4*Cin,D) matching the in-kernel s2d layout."""
    _, _, Cin, D = w.shape
    w = w.reshape(2, 2, 2, 2, Cin, D)                 # (qy, sy, qx, sx, ci, co)
    w = jnp.transpose(w, (0, 2, 1, 3, 4, 5))          # (qy, qx, sy, sx, ci, co)
    return w.reshape(2, 2, 4 * Cin, D)


def prepare_params(params):
    """Hoisted, one-time: weight regrouping, bf16 casts, (1, D) bias rows."""
    D = params["w1"].shape[-1]

    def rb(p):
        C = p["w2"].shape[0]
        return dict(
            g1=_row(p["g1"]), b1=_row(p["b1"]),
            w1=jnp.transpose(p["w1"], (1, 0, 2, 3))       # (dx, dy, ci, co)
                 .reshape(3, 3 * C, C).astype(jnp.bfloat16),
            c1b=_row(p["c1b"]),
            g2=_row(p["g2"]), b2=_row(p["b2"]),
            w2=p["w2"].astype(jnp.bfloat16),
            c2b=_row(p["c2b"]))

    return dict(
        w1=params["w1"].reshape(-1, D).astype(jnp.bfloat16),   # (16*Cin, D), K=(ky,kx,ci)
        cb1=_row(params["cb1"]), g1=_row(params["g1"]), b1=_row(params["b1"]),
        w2=_regroup_conv4_weights(params["w2"]).astype(jnp.bfloat16),
        cb2=_row(params["cb2"]),
        rb1=rb(params["rb1"]), rb2=rb(params["rb2"]))


def _conv1_im2col_phase_major(x):
    """Im2col for Conv2d(k4, s2, p1) on NHWC x, rows ordered phase-major.

    Returns (4 * N * (H//4) * (W//4), 16*Cin).  Row order (py, px, n, i, j)
    where the conv1 output pixel is (2*i + py, 2*j + px); K order (ky, kx, c)
    matching w1.reshape(16*Cin, D).
    """
    N, H, W, Cin = x.shape
    Ho, Wo = H // 2, W // 2
    xp = jnp.pad(x, ((0, 0), (1, 1), (1, 1), (0, 0)))
    taps = []
    for ky in range(4):
        for kx in range(4):
            taps.append(xp[:, ky:ky + 2 * (Ho - 1) + 1:2,
                           kx:kx + 2 * (Wo - 1) + 1:2, :])
    patches = jnp.stack(taps, axis=3).reshape(N, Ho, Wo, 16 * Cin)
    patches = patches.reshape(N, Ho // 2, 2, Wo // 2, 2, 16 * Cin)
    patches = jnp.transpose(patches, (2, 4, 0, 1, 3, 5))   # (py, px, n, i, j, K)
    return patches.reshape(4 * N * (Ho // 2) * (Wo // 2), 16 * Cin)


def encoder_forward(x_nchw, prep):
    """Encoder forward (training-mode BatchNorm) on NCHW input, single kernel."""
    x = jnp.transpose(x_nchw, (0, 2, 3, 1)).astype(jnp.float32)   # NHWC once
    N, H, W, _ = x.shape
    D = prep["cb1"].shape[-1]
    H2, W2 = H // 4, W // 4
    Wp = max(8, -(-(W2 + 2) // 8) * 8)                      # sublane-aligned W axis

    cols1 = _conv1_im2col_phase_major(x).astype(jnp.bfloat16)

    rb1, rb2 = prep["rb1"], prep["rb2"]
    args = (cols1, prep["w1"], prep["cb1"], prep["g1"], prep["b1"],
            prep["w2"], prep["cb2"],
            rb1["g1"], rb1["b1"], rb1["w1"], rb1["c1b"],
            rb1["g2"], rb1["b2"], rb1["w2"], rb1["c2b"],
            rb2["g1"], rb2["b1"], rb2["w1"], rb2["c1b"],
            rb2["g2"], rb2["b2"], rb2["w2"], rb2["c2b"])

    out_nhwc = pl.pallas_call(
        encoder_kernel,
        out_shape=jax.ShapeDtypeStruct((N, H2, W2, D), jnp.float32),
        in_specs=[_VMEM] * len(args),
        out_specs=_VMEM,
        scratch_shapes=[
            pltpu.VMEM((N, H2 + 1, W2 + 1, 4 * D), jnp.bfloat16),  # s2d for conv2
            pltpu.VMEM((N, H2 + 2, Wp, D), jnp.bfloat16),          # padded 3x3 scratch
        ],
    )(*args)
    return jnp.transpose(out_nhwc, (0, 3, 1, 2))            # NCHW once


# --------------------------------------------------------------------------
# Pure-JAX reference (mirrors the PyTorch module in training mode, f32)
# --------------------------------------------------------------------------
def reference_encoder(x, params):
    HIGH = jax.lax.Precision.HIGHEST
    dn = ("NCHW", "OIHW", "NCHW")

    def bn_relu(t, g, b):
        m = t.mean(axis=(0, 2, 3), keepdims=True)
        v = ((t - m) ** 2).mean(axis=(0, 2, 3), keepdims=True)
        t = (t - m) / jnp.sqrt(v + EPS) * g.reshape(1, -1, 1, 1) + b.reshape(1, -1, 1, 1)
        return jax.nn.relu(t)

    def conv(t, w_hwio, b, stride, pad):
        w_oihw = jnp.transpose(w_hwio, (3, 2, 0, 1))
        out = jax.lax.conv_general_dilated(
            t, w_oihw, (stride, stride), [(pad, pad), (pad, pad)],
            dimension_numbers=dn, precision=HIGH)
        return out + b.reshape(1, -1, 1, 1)

    h = conv(x, params["w1"], params["cb1"], 2, 1)
    h = bn_relu(h, params["g1"], params["b1"])
    h = conv(h, params["w2"], params["cb2"], 2, 1)
    for key in ("rb1", "rb2"):
        p = params[key]
        r = bn_relu(h, p["g1"], p["b1"])
        r = conv(r, p["w1"], p["c1b"], 1, 1)
        r = bn_relu(r, p["g2"], p["b2"])
        r = conv(r, p["w2"][None, None, :, :], p["c2b"], 1, 0)   # 1x1 conv
        h = h + r
    return h


# --------------------------------------------------------------------------
if __name__ == "__main__":
    key = jax.random.PRNGKey(0)
    N, Cin, H, W = 2, 3, 16, 16
    D = 128          # channel width; 128 keeps channels lane-dense on TPU

    ks = iter(jax.random.split(key, 32))

    def nrm(shape, scale):
        return jax.random.normal(next(ks), shape, jnp.float32) * scale

    def rb_params(C):
        return {
            "g1": 1.0 + 0.2 * nrm((C,), 1.0), "b1": nrm((C,), 0.1),
            "w1": nrm((3, 3, C, C), 1.0 / (3.0 * C ** 0.5)), "c1b": nrm((C,), 0.1),
            "g2": 1.0 + 0.2 * nrm((C,), 1.0), "b2": nrm((C,), 0.1),
            "w2": nrm((C, C), 1.0 / C ** 0.5), "c2b": nrm((C,), 0.1),
        }

    params = {
        # weights stored HWIO: (kh, kw, Cin, Cout)
        "w1": nrm((4, 4, Cin, D), 1.0 / (4.0 * Cin ** 0.5)),
        "cb1": nrm((D,), 0.1),
        "g1": 1.0 + 0.2 * nrm((D,), 1.0), "b1": nrm((D,), 0.1),
        "w2": nrm((4, 4, D, D), 1.0 / (4.0 * D ** 0.5)),
        "cb2": nrm((D,), 0.1),
        "rb1": rb_params(D),
        "rb2": rb_params(D),
    }

    x = jax.random.normal(next(ks), (N, Cin, H, W), jnp.float32)

    prep = prepare_params(params)                     # hoisted one-time prep
    fwd = jax.jit(encoder_forward)

    out = jax.block_until_ready(fwd(x, prep))
    ref = jax.block_until_ready(reference_encoder(x, params))

    assert out.shape == (N, D, H // 4, W // 4), out.shape
    err = float(jnp.max(jnp.abs(out - ref)))
    # bf16 MXU operands (per perf review) => wider tolerance than the pure-f32
    # version; f32 accumulation keeps the error well inside this envelope.
    assert jnp.allclose(out, ref, atol=5e-2, rtol=5e-2), f"max abs err {err}"
    print("KERNEL_OK")
</pallas_src>

<mosaic_0001>
module attributes {stable_mosaic.version = 11 : i64} {
  func.func @encoder_kernel(%arg0: memref<128x48xbf16, #tpu.memory_space<vmem>>, %arg1: memref<48x128xbf16, #tpu.memory_space<vmem>>, %arg2: memref<1x128xf32, #tpu.memory_space<vmem>>, %arg3: memref<1x128xf32, #tpu.memory_space<vmem>>, %arg4: memref<1x128xf32, #tpu.memory_space<vmem>>, %arg5: memref<2x2x512x128xbf16, #tpu.memory_space<vmem>>, %arg6: memref<1x128xf32, #tpu.memory_space<vmem>>, %arg7: memref<1x128xf32, #tpu.memory_space<vmem>>, %arg8: memref<1x128xf32, #tpu.memory_space<vmem>>, %arg9: memref<3x384x128xbf16, #tpu.memory_space<vmem>>, %arg10: memref<1x128xf32, #tpu.memory_space<vmem>>, %arg11: memref<1x128xf32, #tpu.memory_space<vmem>>, %arg12: memref<1x128xf32, #tpu.memory_space<vmem>>, %arg13: memref<128x128xbf16, #tpu.memory_space<vmem>>, %arg14: memref<1x128xf32, #tpu.memory_space<vmem>>, %arg15: memref<1x128xf32, #tpu.memory_space<vmem>>, %arg16: memref<1x128xf32, #tpu.memory_space<vmem>>, %arg17: memref<3x384x128xbf16, #tpu.memory_space<vmem>>, %arg18: memref<1x128xf32, #tpu.memory_space<vmem>>, %arg19: memref<1x128xf32, #tpu.memory_space<vmem>>, %arg20: memref<1x128xf32, #tpu.memory_space<vmem>>, %arg21: memref<128x128xbf16, #tpu.memory_space<vmem>>, %arg22: memref<1x128xf32, #tpu.memory_space<vmem>>, %arg23: memref<2x4x4x128xf32, #tpu.memory_space<vmem>>, %arg24: memref<2x5x5x512xbf16, #tpu.memory_space<vmem>>, %arg25: memref<2x6x8x128xbf16, #tpu.memory_space<vmem>>) attributes {dimension_semantics = [], scalar_prefetch = 0 : i64, scratch_operands = 2 : i64, tpu.core_type = #tpu.core_type<tc>} {
    %c0 = arith.constant 0 : index
    %c0_0 = arith.constant 0 : index
    %0 = vector.load %arg0[%c0, %c0_0] : memref<128x48xbf16, #tpu.memory_space<vmem>>, vector<128x48xbf16>
    %c0_1 = arith.constant 0 : index
    %c0_2 = arith.constant 0 : index
    %1 = vector.load %arg1[%c0_1, %c0_2] : memref<48x128xbf16, #tpu.memory_space<vmem>>, vector<48x128xbf16>
    %cst = arith.constant dense<0.000000e+00> : vector<128x128xf32>
    %2 = tpu.matmul %0, %1, %cst {dimension_numbers = #tpu.dot_dimension_numbers<[1], [0], [0], [1], [0, 0, 1, 1], [], []>} : vector<128x48xbf16>, vector<48x128xbf16>, vector<128x128xf32> -> vector<128x128xf32>
    %c0_3 = arith.constant 0 : index
    %c0_4 = arith.constant 0 : index
    %3 = vector.load %arg2[%c0_3, %c0_4] : memref<1x128xf32, #tpu.memory_space<vmem>>, vector<1x128xf32>
    %4 = vector.broadcast %3 : vector<1x128xf32> to vector<128x128xf32>
    %5 = arith.addf %2, %4 : vector<128x128xf32>
    %c0_5 = arith.constant 0 : index
    %c0_6 = arith.constant 0 : index
    %6 = vector.load %arg3[%c0_5, %c0_6] : memref<1x128xf32, #tpu.memory_space<vmem>>, vector<1x128xf32>
    %c0_7 = arith.constant 0 : index
    %c0_8 = arith.constant 0 : index
    %7 = vector.load %arg4[%c0_7, %c0_8] : memref<1x128xf32, #tpu.memory_space<vmem>>, vector<1x128xf32>
    %cst_9 = arith.constant dense<0.000000e+00> : vector<128xf32>
    %8 = vector.multi_reduction <add>, %5, %cst_9 [0] : vector<128x128xf32> to vector<128xf32>
    %9 = vector.shape_cast %8 : vector<128xf32> to vector<1x128xf32>
    %cst_10 = arith.constant 1.280000e+02 : f32
    %10 = vector.broadcast %cst_10 : f32 to vector<1x128xf32>
    %11 = arith.divf %9, %10 : vector<1x128xf32>
    %12 = vector.broadcast %11 : vector<1x128xf32> to vector<128x128xf32>
    %13 = arith.subf %5, %12 : vector<128x128xf32>
    %14 = arith.mulf %13, %13 : vector<128x128xf32>
    %cst_11 = arith.constant dense<0.000000e+00> : vector<128xf32>
    %15 = vector.multi_reduction <add>, %14, %cst_11 [0] : vector<128x128xf32> to vector<128xf32>
    %16 = vector.shape_cast %15 : vector<128xf32> to vector<1x128xf32>
    %cst_12 = arith.constant 1.280000e+02 : f32
    %17 = vector.broadcast %cst_12 : f32 to vector<1x128xf32>
    %18 = arith.divf %16, %17 : vector<1x128xf32>
    %cst_13 = arith.constant 9.99999974E-6 : f32
    %19 = vector.broadcast %cst_13 : f32 to vector<1x128xf32>
    %20 = arith.addf %18, %19 : vector<1x128xf32>
    %21 = math.rsqrt %20 : vector<1x128xf32>
    %22 = arith.mulf %21, %6 : vector<1x128xf32>
    %23 = arith.mulf %11, %22 : vector<1x128xf32>
    %24 = arith.subf %7, %23 : vector<1x128xf32>
    %25 = vector.broadcast %22 : vector<1x128xf32> to vector<128x128xf32>
    %26 = arith.mulf %5, %25 : vector<128x128xf32>
    %27 = vector.broadcast %24 : vector<1x128xf32> to vector<128x128xf32>
    %28 = arith.addf %26, %27 : vector<128x128xf32>
    %cst_14 = arith.constant 0.000000e+00 : f32
    %29 = vector.broadcast %cst_14 : f32 to vector<128x128xf32>
    %30 = arith.maximumf %28, %29 : vector<128x128xf32>
    %cst_15 = arith.constant 0.000000e+00 : bf16
    %31 = vector.broadcast %cst_15 : bf16 to vector<2x5x5x512xbf16>
    %c0_16 = arith.constant 0 : index
    %c0_17 = arith.constant 0 : index
    %c0_18 = arith.constant 0 : index
    %c0_19 = arith.constant 0 : index
    %32 = vector.load %arg24[%c0_16, %c0_17, %c0_18, %c0_19] : memref<2x5x5x512xbf16, #tpu.memory_space<vmem>>, vector<2x5x5x512xbf16>
    tpu.vector_store %arg24[%c0_16, %c0_17, %c0_18, %c0_19], %31 {strides = array<i32>} : memref<2x5x5x512xbf16, #tpu.memory_space<vmem>>, vector<2x5x5x512xbf16>,
    %33 = vector.extract_strided_slice %30 {offsets = [0, 0], sizes = [32, 128], strides = [1, 1]} : vector<128x128xf32> to vector<32x128xf32>
    %34 = vector.shape_cast %33 : vector<32x128xf32> to vector<2x4x4x128xf32>
    %35 = arith.truncf %34 : vector<2x4x4x128xf32> to vector<2x4x4x128xbf16>
    %c0_20 = arith.constant 0 : index
    %c0_21 = arith.constant 0 : index
    %c0_22 = arith.constant 0 : index
    %c384 = arith.constant 384 : index
    %36 = vector.load %arg24[%c0_20, %c0_21, %c0_22, %c384] : memref<2x5x5x512xbf16, #tpu.memory_space<vmem>>, vector<2x4x4x128xbf16>
    tpu.vector_store %arg24[%c0_20, %c0_21, %c0_22, %c384], %35 {strides = array<i32>} : memref<2x5x5x512xbf16, #tpu.memory_space<vmem>>, vector<2x4x4x128xbf16>,
    %37 = vector.extract_strided_slice %30 {offsets = [32, 0], sizes = [32, 128], strides = [1, 1]} : vector<128x128xf32> to vector<32x128xf32>
    %38 = vector.shape_cast %37 : vector<32x128xf32> to vector<2x4x4x128xf32>
    %39 = arith.truncf %38 : vector<2x4x4x128xf32> to vector<2x4x4x128xbf16>
    %c0_23 = arith.constant 0 : index
    %c0_24 = arith.constant 0 : index
    %c1 = arith.constant 1 : index
    %c256 = arith.constant 256 : index
    %40 = vector.load %arg24[%c0_23, %c0_24, %c1, %c256] : memref<2x5x5x512xbf16, #tpu.memory_space<vmem>>, vector<2x4x4x128xbf16>
    tpu.vector_store %arg24[%c0_23, %c0_24, %c1, %c256], %39 {strides = array<i32>} : memref<2x5x5x512xbf16, #tpu.memory_space<vmem>>, vector<2x4x4x128xbf16>,
    %41 = vector.extract_strided_slice %30 {offsets = [64, 0], sizes = [32, 128], strides = [1, 1]} : vector<128x128xf32> to vector<32x128xf32>
    %42 = vector.shape_cast %41 : vector<32x128xf32> to vector<2x4x4x128xf32>
    %43 = arith.truncf %42 : vector<2x4x4x128xf32> to vector<2x4x4x128xbf16>
    %c0_25 = arith.constant 0 : index
    %c1_26 = arith.constant 1 : index
    %c0_27 = arith.constant 0 : index
    %c128 = arith.constant 128 : index
    %44 = vector.load %arg24[%c0_25, %c1_26, %c0_27, %c128] : memref<2x5x5x512xbf16, #tpu.memory_space<vmem>>, vector<2x4x4x128xbf16>
    tpu.vector_store %arg24[%c0_25, %c1_26, %c0_27, %c128], %43 {strides = array<i32>} : memref<2x5x5x512xbf16, #tpu.memory_space<vmem>>, vector<2x4x4x128xbf16>,
    %45 = vector.extract_strided_slice %30 {offsets = [96, 0], sizes = [32, 128], strides = [1, 1]} : vector<128x128xf32> to vector<32x128xf32>
    %46 = vector.shape_cast %45 : vector<32x128xf32> to vector<2x4x4x128xf32>
    %47 = arith.truncf %46 : vector<2x4x4x128xf32> to vector<2x4x4x128xbf16>
    %c0_28 = arith.constant 0 : index
    %c1_29 = arith.constant 1 : index
    %c1_30 = arith.constant 1 : index
    %c0_31 = arith.constant 0 : index
    %48 = vector.load %arg24[%c0_28, %c1_29, %c1_30, %c0_31] : memref<2x5x5x512xbf16, #tpu.memory_space<vmem>>, vector<2x4x4x128xbf16>
    tpu.vector_store %arg24[%c0_28, %c1_29, %c1_30, %c0_31], %47 {strides = array<i32>} : memref<2x5x5x512xbf16, #tpu.memory_space<vmem>>, vector<2x4x4x128xbf16>,
    %c0_32 = arith.constant 0 : index
    %c0_33 = arith.constant 0 : index
    %c0_34 = arith.constant 0 : index
    %c0_35 = arith.constant 0 : index
    %49 = vector.load %arg5[%c0_32, %c0_33, %c0_34, %c0_35] : memref<2x2x512x128xbf16, #tpu.memory_space<vmem>>, vector<2x2x512x128xbf16>
    %cst_36 = arith.constant 0.000000e+00 : f32
    %50 = vector.broadcast %cst_36 : f32 to vector<32x128xf32>
    %c0_37 = arith.constant 0 : index
    %c0_38 = arith.constant 0 : index
    %c0_39 = arith.constant 0 : index
    %c0_40 = arith.constant 0 : index
    %51 = vector.load %arg24[%c0_37, %c0_38, %c0_39, %c0_40] : memref<2x5x5x512xbf16, #tpu.memory_space<vmem>>, vector<2x4x4x512xbf16>
    %52 = vector.shape_cast %51 : vector<2x4x4x512xbf16> to vector<32x512xbf16>
    %53 = vector.extract_strided_slice %49 {offsets = [0, 0, 0, 0], sizes = [1, 1, 512, 128], strides = [1, 1, 1, 1]} : vector<2x2x512x128xbf16> to vector<1x1x512x128xbf16>
    %54 = vector.shape_cast %53 : vector<1x1x512x128xbf16> to vector<512x128xbf16>
    %cst_41 = arith.constant dense<0.000000e+00> : vector<32x128xf32>
    %55 = tpu.matmul %52, %54, %cst_41 {dimension_numbers = #tpu.dot_dimension_numbers<[1], [0], [0], [1], [0, 0, 1, 1], [], []>} : vector<32x512xbf16>, vector<512x128xbf16>, vector<32x128xf32> -> vector<32x128xf32>
    %56 = arith.addf %50, %55 : vector<32x128xf32>
    %c0_42 = arith.constant 0 : index
    %c0_43 = arith.constant 0 : index
    %c1_44 = arith.constant 1 : index
    %c0_45 = arith.constant 0 : index
    %57 = vector.load %arg24[%c0_42, %c0_43, %c1_44, %c0_45] : memref<2x5x5x512xbf16, #tpu.memory_space<vmem>>, vector<2x4x4x512xbf16>
    %58 = vector.shape_cast %57 : vector<2x4x4x512xbf16> to vector<32x512xbf16>
    %59 = vector.extract_strided_slice %49 {offsets = [0, 1, 0, 0], sizes = [1, 1, 512, 128], strides = [1, 1, 1, 1]} : vector<2x2x512x128xbf16> to vector<1x1x512x128xbf16>
    %60 = vector.shape_cast %59 : vector<1x1x512x128xbf16> to vector<512x128xbf16>
    %cst_46 = arith.constant dense<0.000000e+00> : vector<32x128xf32>
    %61 = tpu.matmul %58, %60, %cst_46 {dimension_numbers = #tpu.dot_dimension_numbers<[1], [0], [0], [1], [0, 0, 1, 1], [], []>} : vector<32x512xbf16>, vector<512x128xbf16>, vector<32x128xf32> -> vector<32x128xf32>
    %62 = arith.addf %56, %61 : vector<32x128xf32>
    %c0_47 = arith.constant 0 : index
    %c1_48 = arith.constant 1 : index
    %c0_49 = arith.constant 0 : index
    %c0_50 = arith.constant 0 : index
    %63 = vector.load %arg24[%c0_47, %c1_48, %c0_49, %c0_50] : memref<2x5x5x512xbf16, #tpu.memory_space<vmem>>, vector<2x4x4x512xbf16>
    %64 = vector.shape_cast %63 : vector<2x4x4x512xbf16> to vector<32x512xbf16>
    %65 = vector.extract_strided_slice %49 {offsets = [1, 0, 0, 0], sizes = [1, 1, 512, 128], strides = [1, 1, 1, 1]} : vector<2x2x512x128xbf16> to vector<1x1x512x128xbf16>
    %66 = vector.shape_cast %65 : vector<1x1x512x128xbf16> to vector<512x128xbf16>
    %cst_51 = arith.constant dense<0.000000e+00> : vector<32x128xf32>
    %67 = tpu.matmul %64, %66, %cst_51 {dimension_numbers = #tpu.dot_dimension_numbers<[1], [0], [0], [1], [0, 0, 1, 1], [], []>} : vector<32x512xbf16>, vector<512x128xbf16>, vector<32x128xf32> -> vector<32x128xf32>
    %68 = arith.addf %62, %67 : vector<32x128xf32>
    %c0_52 = arith.constant 0 : index
    %c1_53 = arith.constant 1 : index
    %c1_54 = arith.constant 1 : index
    %c0_55 = arith.constant 0 : index
    %69 = vector.load %arg24[%c0_52, %c1_53, %c1_54, %c0_55] : memref<2x5x5x512xbf16, #tpu.memory_space<vmem>>, vector<2x4x4x512xbf16>
    %70 = vector.shape_cast %69 : vector<2x4x4x512xbf16> to vector<32x512xbf16>
    %71 = vector.extract_strided_slice %49 {offsets = [1, 1, 0, 0], sizes = [1, 1, 512, 128], strides = [1, 1, 1, 1]} : vector<2x2x512x128xbf16> to vector<1x1x512x128xbf16>
    %72 = vector.shape_cast %71 : vector<1x1x512x128xbf16> to vector<512x128xbf16>
    %cst_56 = arith.constant dense<0.000000e+00> : vector<32x128xf32>
    %73 = tpu.matmul %70, %72, %cst_56 {dimension_numbers = #tpu.dot_dimension_numbers<[1], [0], [0], [1], [0, 0, 1, 1], [], []>} : vector<32x512xbf16>, vector<512x128xbf16>, vector<32x128xf32> -> vector<32x128xf32>
    %74 = arith.addf %68, %73 : vector<32x128xf32>
    %c0_57 = arith.constant 0 : index
    %c0_58 = arith.constant 0 : index
    %75 = vector.load %arg6[%c0_57, %c0_58] : memref<1x128xf32, #tpu.memory_space<vmem>>, vector<1x128xf32>
    %76 = vector.broadcast %75 : vector<1x128xf32> to vector<32x128xf32>
    %77 = arith.addf %74, %76 : vector<32x128xf32>
    %cst_59 = arith.constant 0.000000e+00 : bf16
    %78 = vector.broadcast %cst_59 : bf16 to vector<2x1x8x128xbf16>
    %c0_60 = arith.constant 0 : index
    %c0_61 = arith.constant 0 : index
    %c0_62 = arith.constant 0 : index
    %c0_63 = arith.constant 0 : index
    %79 = vector.load %arg25[%c0_60, %c0_61, %c0_62, %c0_63] : memref<2x6x8x128xbf16, #tpu.memory_space<vmem>>, vector<2x1x8x128xbf16>
    tpu.vector_store %arg25[%c0_60, %c0_61, %c0_62, %c0_63], %78 {strides = array<i32>} : memref<2x6x8x128xbf16, #tpu.memory_space<vmem>>, vector<2x1x8x128xbf16>,
    %c0_64 = arith.constant 0 : index
    %c5 = arith.constant 5 : index
    %c0_65 = arith.constant 0 : index
    %c0_66 = arith.constant 0 : index
    %80 = vector.load %arg25[%c0_64, %c5, %c0_65, %c0_66] : memref<2x6x8x128xbf16, #tpu.memory_space<vmem>>, vector<2x1x8x128xbf16>
    tpu.vector_store %arg25[%c0_64, %c5, %c0_65, %c0_66], %78 {strides = array<i32>} : memref<2x6x8x128xbf16, #tpu.memory_space<vmem>>, vector<2x1x8x128xbf16>,
    %cst_67 = arith.constant 0.000000e+00 : bf16
    %81 = vector.broadcast %cst_67 : bf16 to vector<2x6x1x128xbf16>
    %c0_68 = arith.constant 0 : index
    %c0_69 = arith.constant 0 : index
    %c0_70 = arith.constant 0 : index
    %c0_71 = arith.constant 0 : index
    %82 = vector.load %arg25[%c0_68, %c0_69, %c0_70, %c0_71] : memref<2x6x8x128xbf16, #tpu.memory_space<vmem>>, vector<2x6x1x128xbf16>
    tpu.vector_store %arg25[%c0_68, %c0_69, %c0_70, %c0_71], %81 {strides = array<i32>} : memref<2x6x8x128xbf16, #tpu.memory_space<vmem>>, vector<2x6x1x128xbf16>,
    %c0_72 = arith.constant 0 : index
    %c0_73 = arith.constant 0 : index
    %c5_74 = arith.constant 5 : index
    %c0_75 = arith.constant 0 : index
    %83 = vector.load %arg25[%c0_72, %c0_73, %c5_74, %c0_75] : memref<2x6x8x128xbf16, #tpu.memory_space<vmem>>, vector<2x6x1x128xbf16>
    tpu.vector_store %arg25[%c0_72, %c0_73, %c5_74, %c0_75], %81 {strides = array<i32>} : memref<2x6x8x128xbf16, #tpu.memory_space<vmem>>, vector<2x6x1x128xbf16>,
    %c0_76 = arith.constant 0 : index
    %c0_77 = arith.constant 0 : index
    %84 = vector.load %arg7[%c0_76, %c0_77] : memref<1x128xf32, #tpu.memory_space<vmem>>, vector<1x128xf32>
    %c0_78 = arith.constant 0 : index
    %c0_79 = arith.constant 0 : index
    %85 = vector.load %arg8[%c0_78, %c0_79] : memref<1x128xf32, #tpu.memory_space<vmem>>, vector<1x128xf32>
    %c0_80 = arith.constant 0 : index
    %c0_81 = arith.constant 0 : index
    %c0_82 = arith.constant 0 : index
    %86 = vector.load %arg9[%c0_80, %c0_81, %c0_82] : memref<3x384x128xbf16, #tpu.memory_space<vmem>>, vector<3x384x128xbf16>
    %c0_83 = arith.constant 0 : index
    %c0_84 = arith.constant 0 : index
    %87 = vector.load %arg10[%c0_83, %c0_84] : memref<1x128xf32, #tpu.memory_space<vmem>>, vector<1x128xf32>
    %c0_85 = arith.constant 0 : index
    %c0_86 = arith.constant 0 : index
    %88 = vector.load %arg11[%c0_85, %c0_86] : memref<1x128xf32, #tpu.memory_space<vmem>>, vector<1x128xf32>
    %c0_87 = arith.constant 0 : index
    %c0_88 = arith.constant 0 : index
    %89 = vector.load %arg12[%c0_87, %c0_88] : memref<1x128xf32, #tpu.memory_space<vmem>>, vector<1x128xf32>
    %c0_89 = arith.constant 0 : index
    %c0_90 = arith.constant 0 : index
    %90 = vector.load %arg13[%c0_89, %c0_90] : memref<128x128xbf16, #tpu.memory_space<vmem>>, vector<128x128xbf16>
    %c0_91 = arith.constant 0 : index
    %c0_92 = arith.constant 0 : index
    %91 = vector.load %arg14[%c0_91, %c0_92] : memref<1x128xf32, #tpu.memory_space<vmem>>, vector<1x128xf32>
    %cst_93 = arith.constant dense<0.000000e+00> : vector<128xf32>
    %92 = vector.multi_reduction <add>, %77, %cst_93 [0] : vector<32x128xf32> to vector<128xf32>
    %93 = vector.shape_cast %92 : vector<128xf32> to vector<1x128xf32>
    %cst_94 = arith.constant 3.200000e+01 : f32
    %94 = vector.broadcast %cst_94 : f32 to vector<1x128xf32>
    %95 = arith.divf %93, %94 : vector<1x128xf32>
    %96 = vector.broadcast %95 : vector<1x128xf32> to vector<32x128xf32>
    %97 = arith.subf %77, %96 : vector<32x128xf32>
    %98 = arith.mulf %97, %97 : vector<32x128xf32>
    %cst_95 = arith.constant dense<0.000000e+00> : vector<128xf32>
    %99 = vector.multi_reduction <add>, %98, %cst_95 [0] : vector<32x128xf32> to vector<128xf32>
    %100 = vector.shape_cast %99 : vector<128xf32> to vector<1x128xf32>
    %cst_96 = arith.constant 3.200000e+01 : f32
    %101 = vector.broadcast %cst_96 : f32 to vector<1x128xf32>
    %102 = arith.divf %100, %101 : vector<1x128xf32>
    %cst_97 = arith.constant 9.99999974E-6 : f32
    %103 = vector.broadcast %cst_97 : f32 to vector<1x128xf32>
    %104 = arith.addf %102, %103 : vector<1x128xf32>
    %105 = math.rsqrt %104 : vector<1x128xf32>
    %106 = arith.mulf %105, %84 : vector<1x128xf32>
    %107 = arith.mulf %95, %106 : vector<1x128xf32>
    %108 = arith.subf %85, %107 : vector<1x128xf32>
    %109 = vector.broadcast %106 : vector<1x128xf32> to vector<32x128xf32>
    %110 = arith.mulf %77, %109 : vector<32x128xf32>
    %111 = vector.broadcast %108 : vector<1x128xf32> to vector<32x128xf32>
    %112 = arith.addf %110, %111 : vector<32x128xf32>
    %cst_98 = arith.constant 0.000000e+00 : f32
    %113 = vector.broadcast %cst_98 : f32 to vector<32x128xf32>
    %114 = arith.maximumf %112, %113 : vector<32x128xf32>
    %115 = vector.shape_cast %114 : vector<32x128xf32> to vector<2x4x4x128xf32>
    %116 = arith.truncf %115 : vector<2x4x4x128xf32> to vector<2x4x4x128xbf16>
    %c0_99 = arith.constant 0 : index
    %c1_100 = arith.constant 1 : index
    %c1_101 = arith.constant 1 : index
    %c0_102 = arith.constant 0 : index
    %117 = vector.load %arg25[%c0_99, %c1_100, %c1_101, %c0_102] : memref<2x6x8x128xbf16, #tpu.memory_space<vmem>>, vector<2x4x4x128xbf16>
    tpu.vector_store %arg25[%c0_99, %c1_100, %c1_101, %c0_102], %116 {strides = array<i32>} : memref<2x6x8x128xbf16, #tpu.memory_space<vmem>>, vector<2x4x4x128xbf16>,
    %cst_103 = arith.constant 0.000000e+00 : f32
    %118 = vector.broadcast %cst_103 : f32 to vector<32x128xf32>
    %c0_104 = arith.constant 0 : index
    %c0_105 = arith.constant 0 : index
    %c0_106 = arith.constant 0 : index
    %c0_107 = arith.constant 0 : index
    %119 = vector.load %arg25[%c0_104, %c0_105, %c0_106, %c0_107] : memref<2x6x8x128xbf16, #tpu.memory_space<vmem>>, vector<2x4x4x128xbf16>
    %120 = vector.shape_cast %119 : vector<2x4x4x128xbf16> to vector<32x128xbf16>
    %c0_108 = arith.constant 0 : index
    %c1_109 = arith.constant 1 : index
    %c0_110 = arith.constant 0 : index
    %c0_111 = arith.constant 0 : index
    %121 = vector.load %arg25[%c0_108, %c1_109, %c0_110, %c0_111] : memref<2x6x8x128xbf16, #tpu.memory_space<vmem>>, vector<2x4x4x128xbf16>
    %122 = vector.shape_cast %121 : vector<2x4x4x128xbf16> to vector<32x128xbf16>
    %c0_112 = arith.constant 0 : index
    %c2 = arith.constant 2 : index
    %c0_113 = arith.constant 0 : index
    %c0_114 = arith.constant 0 : index
    %123 = vector.load %arg25[%c0_112, %c2, %c0_113, %c0_114] : memref<2x6x8x128xbf16, #tpu.memory_space<vmem>>, vector<2x4x4x128xbf16>
    %124 = vector.shape_cast %123 : vector<2x4x4x128xbf16> to vector<32x128xbf16>
    %125 = tpu.concatenate %120, %122, %124 in 1 : vector<32x128xbf16>, vector<32x128xbf16>, vector<32x128xbf16> -> vector<32x384xbf16>
    %126 = vector.extract_strided_slice %86 {offsets = [0, 0, 0], sizes = [1, 384, 128], strides = [1, 1, 1]} : vector<3x384x128xbf16> to vector<1x384x128xbf16>
    %127 = vector.shape_cast %126 : vector<1x384x128xbf16> to vector<384x128xbf16>
    %cst_115 = arith.constant dense<0.000000e+00> : vector<32x128xf32>
    %128 = tpu.matmul %125, %127, %cst_115 {dimension_numbers = #tpu.dot_dimension_numbers<[1], [0], [0], [1], [0, 0, 1, 1], [], []>} : vector<32x384xbf16>, vector<384x128xbf16>, vector<32x128xf32> -> vector<32x128xf32>
    %129 = arith.addf %118, %128 : vector<32x128xf32>
    %c0_116 = arith.constant 0 : index
    %c0_117 = arith.constant 0 : index
    %c1_118 = arith.constant 1 : index
    %c0_119 = arith.constant 0 : index
    %130 = vector.load %arg25[%c0_116, %c0_117, %c1_118, %c0_119] : memref<2x6x8x128xbf16, #tpu.memory_space<vmem>>, vector<2x4x4x128xbf16>
    %131 = vector.shape_cast %130 : vector<2x4x4x128xbf16> to vector<32x128xbf16>
    %c0_120 = arith.constant 0 : index
    %c1_121 = arith.constant 1 : index
    %c1_122 = arith.constant 1 : index
    %c0_123 = arith.constant 0 : index
    %132 = vector.load %arg25[%c0_120, %c1_121, %c1_122, %c0_123] : memref<2x6x8x128xbf16, #tpu.memory_space<vmem>>, vector<2x4x4x128xbf16>
    %133 = vector.shape_cast %132 : vector<2x4x4x128xbf16> to vector<32x128xbf16>
    %c0_124 = arith.constant 0 : index
    %c2_125 = arith.constant 2 : index
    %c1_126 = arith.constant 1 : index
    %c0_127 = arith.constant 0 : index
    %134 = vector.load %arg25[%c0_124, %c2_125, %c1_126, %c0_127] : memref<2x6x8x128xbf16, #tpu.memory_space<vmem>>, vector<2x4x4x128xbf16>
    %135 = vector.shape_cast %134 : vector<2x4x4x128xbf16> to vector<32x128xbf16>
    %136 = tpu.concatenate %131, %133, %135 in 1 : vector<32x128xbf16>, vector<32x128xbf16>, vector<32x128xbf16> -> vector<32x384xbf16>
    %137 = vector.extract_strided_slice %86 {offsets = [1, 0, 0], sizes = [1, 384, 128], strides = [1, 1, 1]} : vector<3x384x128xbf16> to vector<1x384x128xbf16>
    %138 = vector.shape_cast %137 : vector<1x384x128xbf16> to vector<384x128xbf16>
    %cst_128 = arith.constant dense<0.000000e+00> : vector<32x128xf32>
    %139 = tpu.matmul %136, %138, %cst_128 {dimension_numbers = #tpu.dot_dimension_numbers<[1], [0], [0], [1], [0, 0, 1, 1], [], []>} : vector<32x384xbf16>, vector<384x128xbf16>, vector<32x128xf32> -> vector<32x128xf32>
    %140 = arith.addf %129, %139 : vector<32x128xf32>
    %c0_129 = arith.constant 0 : index
    %c0_130 = arith.constant 0 : index
    %c2_131 = arith.constant 2 : index
    %c0_132 = arith.constant 0 : index
    %141 = vector.load %arg25[%c0_129, %c0_130, %c2_131, %c0_132] : memref<2x6x8x128xbf16, #tpu.memory_space<vmem>>, vector<2x4x4x128xbf16>
    %142 = vector.shape_cast %141 : vector<2x4x4x128xbf16> to vector<32x128xbf16>
    %c0_133 = arith.constant 0 : index
    %c1_134 = arith.constant 1 : index
    %c2_135 = arith.constant 2 : index
    %c0_136 = arith.constant 0 : index
    %143 = vector.load %arg25[%c0_133, %c1_134, %c2_135, %c0_136] : memref<2x6x8x128xbf16, #tpu.memory_space<vmem>>, vector<2x4x4x128xbf16>
    %144 = vector.shape_cast %143 : vector<2x4x4x128xbf16> to vector<32x128xbf16>
    %c0_137 = arith.constant 0 : index
    %c2_138 = arith.constant 2 : index
    %c2_139 = arith.constant 2 : index
    %c0_140 = arith.constant 0 : index
    %145 = vector.load %arg25[%c0_137, %c2_138, %c2_139, %c0_140] : memref<2x6x8x128xbf16, #tpu.memory_space<vmem>>, vector<2x4x4x128xbf16>
    %146 = vector.shape_cast %145 : vector<2x4x4x128xbf16> to vector<32x128xbf16>
    %147 = tpu.concatenate %142, %144, %146 in 1 : vector<32x128xbf16>, vector<32x128xbf16>, vector<32x128xbf16> -> vector<32x384xbf16>
    %148 = vector.extract_strided_slice %86 {offsets = [2, 0, 0], sizes = [1, 384, 128], strides = [1, 1, 1]} : vector<3x384x128xbf16> to vector<1x384x128xbf16>
    %149 = vector.shape_cast %148 : vector<1x384x128xbf16> to vector<384x128xbf16>
    %cst_141 = arith.constant dense<0.000000e+00> : vector<32x128xf32>
    %150 = tpu.matmul %147, %149, %cst_141 {dimension_numbers = #tpu.dot_dimension_numbers<[1], [0], [0], [1], [0, 0, 1, 1], [], []>} : vector<32x384xbf16>, vector<384x128xbf16>, vector<32x128xf32> -> vector<32x128xf32>
    %151 = arith.addf %140, %150 : vector<32x128xf32>
    %152 = vector.broadcast %87 : vector<1x128xf32> to vector<32x128xf32>
    %153 = arith.addf %151, %152 : vector<32x128xf32>
    %cst_142 = arith.constant dense<0.000000e+00> : vector<128xf32>
    %154 = vector.multi_reduction <add>, %153, %cst_142 [0] : vector<32x128xf32> to vector<128xf32>
    %155 = vector.shape_cast %154 : vector<128xf32> to vector<1x128xf32>
    %cst_143 = arith.constant 3.200000e+01 : f32
    %156 = vector.broadcast %cst_143 : f32 to vector<1x128xf32>
    %157 = arith.divf %155, %156 : vector<1x128xf32>
    %158 = vector.broadcast %157 : vector<1x128xf32> to vector<32x128xf32>
    %159 = arith.subf %153, %158 : vector<32x128xf32>
    %160 = arith.mulf %159, %159 : vector<32x128xf32>
    %cst_144 = arith.constant dense<0.000000e+00> : vector<128xf32>
    %161 = vector.multi_reduction <add>, %160, %cst_144 [0] : vector<32x128xf32> to vector<128xf32>
    %162 = vector.shape_cast %161 : vector<128xf32> to vector<1x128xf32>
    %cst_145 = arith.constant 3.200000e+01 : f32
    %163 = vector.broadcast %cst_145 : f32 to vector<1x128xf32>
    %164 = arith.divf %162, %163 : vector<1x128xf32>
    %cst_146 = arith.constant 9.99999974E-6 : f32
    %165 = vector.broadcast %cst_146 : f32 to vector<1x128xf32>
    %166 = arith.addf %164, %165 : vector<1x128xf32>
    %167 = math.rsqrt %166 : vector<1x128xf32>
    %168 = arith.mulf %167, %88 : vector<1x128xf32>
    %169 = arith.mulf %157, %168 : vector<1x128xf32>
    %170 = arith.subf %89, %169 : vector<1x128xf32>
    %171 = vector.broadcast %168 : vector<1x128xf32> to vector<32x128xf32>
    %172 = arith.mulf %153, %171 : vector<32x128xf32>
    %173 = vector.broadcast %170 : vector<1x128xf32> to vector<32x128xf32>
    %174 = arith.addf %172, %173 : vector<32x128xf32>
    %cst_147 = arith.constant 0.000000e+00 : f32
    %175 = vector.broadcast %cst_147 : f32 to vector<32x128xf32>
    %176 = arith.maximumf %174, %175 : vector<32x128xf32>
    %177 = arith.truncf %176 : vector<32x128xf32> to vector<32x128xbf16>
    %cst_148 = arith.constant dense<0.000000e+00> : vector<32x128xf32>
    %178 = tpu.matmul %177, %90, %cst_148 {dimension_numbers = #tpu.dot_dimension_numbers<[1], [0], [0], [1], [0, 0, 1, 1], [], []>} : vector<32x128xbf16>, vector<128x128xbf16>, vector<32x128xf32> -> vector<32x128xf32>
    %179 = vector.broadcast %91 : vector<1x128xf32> to vector<32x128xf32>
    %180 = arith.addf %178, %179 : vector<32x128xf32>
    %181 = arith.addf %77, %180 : vector<32x128xf32>
    %c0_149 = arith.constant 0 : index
    %c0_150 = arith.constant 0 : index
    %182 = vector.load %arg15[%c0_149, %c0_150] : memref<1x128xf32, #tpu.memory_space<vmem>>, vector<1x128xf32>
    %c0_151 = arith.constant 0 : index
    %c0_152 = arith.constant 0 : index
    %183 = vector.load %arg16[%c0_151, %c0_152] : memref<1x128xf32, #tpu.memory_space<vmem>>, vector<1x128xf32>
    %c0_153 = arith.constant 0 : index
    %c0_154 = arith.constant 0 : index
    %c0_155 = arith.constant 0 : index
    %184 = vector.load %arg17[%c0_153, %c0_154, %c0_155] : memref<3x384x128xbf16, #tpu.memory_space<vmem>>, vector<3x384x128xbf16>
    %c0_156 = arith.constant 0 : index
    %c0_157 = arith.constant 0 : index
    %185 = vector.load %arg18[%c0_156, %c0_157] : memref<1x128xf32, #tpu.memory_space<vmem>>, vector<1x128xf32>
    %c0_158 = arith.constant 0 : index
    %c0_159 = arith.constant 0 : index
    %186 = vector.load %arg19[%c0_158, %c0_159] : memref<1x128xf32, #tpu.memory_space<vmem>>, vector<1x128xf32>
    %c0_160 = arith.constant 0 : index
    %c0_161 = arith.constant 0 : index
    %187 = vector.load %arg20[%c0_160, %c0_161] : memref<1x128xf32, #tpu.memory_space<vmem>>, vector<1x128xf32>
    %c0_162 = arith.constant 0 : index
    %c0_163 = arith.constant 0 : index
    %188 = vector.load %arg21[%c0_162, %c0_163] : memref<128x128xbf16, #tpu.memory_space<vmem>>, vector<128x128xbf16>
    %c0_164 = arith.constant 0 : index
    %c0_165 = arith.constant 0 : index
    %189 = vector.load %arg22[%c0_164, %c0_165] : memref<1x128xf32, #tpu.memory_space<vmem>>, vector<1x128xf32>
    %cst_166 = arith.constant dense<0.000000e+00> : vector<128xf32>
    %190 = vector.multi_reduction <add>, %181, %cst_166 [0] : vector<32x128xf32> to vector<128xf32>
    %191 = vector.shape_cast %190 : vector<128xf32> to vector<1x128xf32>
    %cst_167 = arith.constant 3.200000e+01 : f32
    %192 = vector.broadcast %cst_167 : f32 to vector<1x128xf32>
    %193 = arith.divf %191, %192 : vector<1x128xf32>
    %194 = vector.broadcast %193 : vector<1x128xf32> to vector<32x128xf32>
    %195 = arith.subf %181, %194 : vector<32x128xf32>
    %196 = arith.mulf %195, %195 : vector<32x128xf32>
    %cst_168 = arith.constant dense<0.000000e+00> : vector<128xf32>
    %197 = vector.multi_reduction <add>, %196, %cst_168 [0] : vector<32x128xf32> to vector<128xf32>
    %198 = vector.shape_cast %197 : vector<128xf32> to vector<1x128xf32>
    %cst_169 = arith.constant 3.200000e+01 : f32
    %199 = vector.broadcast %cst_169 : f32 to vector<1x128xf32>
    %200 = arith.divf %198, %199 : vector<1x128xf32>
    %cst_170 = arith.constant 9.99999974E-6 : f32
    %201 = vector.broadcast %cst_170 : f32 to vector<1x128xf32>
    %202 = arith.addf %200, %201 : vector<1x128xf32>
    %203 = math.rsqrt %202 : vector<1x128xf32>
    %204 = arith.mulf %203, %182 : vector<1x128xf32>
    %205 = arith.mulf %193, %204 : vector<1x128xf32>
    %206 = arith.subf %183, %205 : vector<1x128xf32>
    %207 = vector.broadcast %204 : vector<1x128xf32> to vector<32x128xf32>
    %208 = arith.mulf %181, %207 : vector<32x128xf32>
    %209 = vector.broadcast %206 : vector<1x128xf32> to vector<32x128xf32>
    %210 = arith.addf %208, %209 : vector<32x128xf32>
    %cst_171 = arith.constant 0.000000e+00 : f32
    %211 = vector.broadcast %cst_171 : f32 to vector<32x128xf32>
    %212 = arith.maximumf %210, %211 : vector<32x128xf32>
    %213 = vector.shape_cast %212 : vector<32x128xf32> to vector<2x4x4x128xf32>
    %214 = arith.truncf %213 : vector<2x4x4x128xf32> to vector<2x4x4x128xbf16>
    %c0_172 = arith.constant 0 : index
    %c1_173 = arith.constant 1 : index
    %c1_174 = arith.constant 1 : index
    %c0_175 = arith.constant 0 : index
    %215 = vector.load %arg25[%c0_172, %c1_173, %c1_174, %c0_175] : memref<2x6x8x128xbf16, #tpu.memory_space<vmem>>, vector<2x4x4x128xbf16>
    tpu.vector_store %arg25[%c0_172, %c1_173, %c1_174, %c0_175], %214 {strides = array<i32>} : memref<2x6x8x128xbf16, #tpu.memory_space<vmem>>, vector<2x4x4x128xbf16>,
    %cst_176 = arith.constant 0.000000e+00 : f32
    %216 = vector.broadcast %cst_176 : f32 to vector<32x128xf32>
    %c0_177 = arith.constant 0 : index
    %c0_178 = arith.constant 0 : index
    %c0_179 = arith.constant 0 : index
    %c0_180 = arith.constant 0 : index
    %217 = vector.load %arg25[%c0_177, %c0_178, %c0_179, %c0_180] : memref<2x6x8x128xbf16, #tpu.memory_space<vmem>>, vector<2x4x4x128xbf16>
    %218 = vector.shape_cast %217 : vector<2x4x4x128xbf16> to vector<32x128xbf16>
    %c0_181 = arith.constant 0 : index
    %c1_182 = arith.constant 1 : index
    %c0_183 = arith.constant 0 : index
    %c0_184 = arith.constant 0 : index
    %219 = vector.load %arg25[%c0_181, %c1_182, %c0_183, %c0_184] : memref<2x6x8x128xbf16, #tpu.memory_space<vmem>>, vector<2x4x4x128xbf16>
    %220 = vector.shape_cast %219 : vector<2x4x4x128xbf16> to vector<32x128xbf16>
    %c0_185 = arith.constant 0 : index
    %c2_186 = arith.constant 2 : index
    %c0_187 = arith.constant 0 : index
    %c0_188 = arith.constant 0 : index
    %221 = vector.load %arg25[%c0_185, %c2_186, %c0_187, %c0_188] : memref<2x6x8x128xbf16, #tpu.memory_space<vmem>>, vector<2x4x4x128xbf16>
    %222 = vector.shape_cast %221 : vector<2x4x4x128xbf16> to vector<32x128xbf16>
    %223 = tpu.concatenate %218, %220, %222 in 1 : vector<32x128xbf16>, vector<32x128xbf16>, vector<32x128xbf16> -> vector<32x384xbf16>
    %224 = vector.extract_strided_slice %184 {offsets = [0, 0, 0], sizes = [1, 384, 128], strides = [1, 1, 1]} : vector<3x384x128xbf16> to vector<1x384x128xbf16>
    %225 = vector.shape_cast %224 : vector<1x384x128xbf16> to vector<384x128xbf16>
    %cst_189 = arith.constant dense<0.000000e+00> : vector<32x128xf32>
    %226 = tpu.matmul %223, %225, %cst_189 {dimension_numbers = #tpu.dot_dimension_numbers<[1], [0], [0], [1], [0, 0, 1, 1], [], []>} : vector<32x384xbf16>, vector<384x128xbf16>, vector<32x128xf32> -> vector<32x128xf32>
    %227 = arith.addf %216, %226 : vector<32x128xf32>
    %c0_190 = arith.constant 0 : index
    %c0_191 = arith.constant 0 : index
    %c1_192 = arith.constant 1 : index
    %c0_193 = arith.constant 0 : index
    %228 = vector.load %arg25[%c0_190, %c0_191, %c1_192, %c0_193] : memref<2x6x8x128xbf16, #tpu.memory_space<vmem>>, vector<2x4x4x128xbf16>
    %229 = vector.shape_cast %228 : vector<2x4x4x128xbf16> to vector<32x128xbf16>
    %c0_194 = arith.constant 0 : index
    %c1_195 = arith.constant 1 : index
    %c1_196 = arith.constant 1 : index
    %c0_197 = arith.constant 0 : index
    %230 = vector.load %arg25[%c0_194, %c1_195, %c1_196, %c0_197] : memref<2x6x8x128xbf16, #tpu.memory_space<vmem>>, vector<2x4x4x128xbf16>
    %231 = vector.shape_cast %230 : vector<2x4x4x128xbf16> to vector<32x128xbf16>
    %c0_198 = arith.constant 0 : index
    %c2_199 = arith.constant 2 : index
    %c1_200 = arith.constant 1 : index
    %c0_201 = arith.constant 0 : index
    %232 = vector.load %arg25[%c0_198, %c2_199, %c1_200, %c0_201] : memref<2x6x8x128xbf16, #tpu.memory_space<vmem>>, vector<2x4x4x128xbf16>
    %233 = vector.shape_cast %232 : vector<2x4x4x128xbf16> to vector<32x128xbf16>
    %234 = tpu.concatenate %229, %231, %233 in 1 : vector<32x128xbf16>, vector<32x128xbf16>, vector<32x128xbf16> -> vector<32x384xbf16>
    %235 = vector.extract_strided_slice %184 {offsets = [1, 0, 0], sizes = [1, 384, 128], strides = [1, 1, 1]} : vector<3x384x128xbf16> to vector<1x384x128xbf16>
    %236 = vector.shape_cast %235 : vector<1x384x128xbf16> to vector<384x128xbf16>
    %cst_202 = arith.constant dense<0.000000e+00> : vector<32x128xf32>
    %237 = tpu.matmul %234, %236, %cst_202 {dimension_numbers = #tpu.dot_dimension_numbers<[1], [0], [0], [1], [0, 0, 1, 1], [], []>} : vector<32x384xbf16>, vector<384x128xbf16>, vector<32x128xf32> -> vector<32x128xf32>
    %238 = arith.addf %227, %237 : vector<32x128xf32>
    %c0_203 = arith.constant 0 : index
    %c0_204 = arith.constant 0 : index
    %c2_205 = arith.constant 2 : index
    %c0_206 = arith.constant 0 : index
    %239 = vector.load %arg25[%c0_203, %c0_204, %c2_205, %c0_206] : memref<2x6x8x128xbf16, #tpu.memory_space<vmem>>, vector<2x4x4x128xbf16>
    %240 = vector.shape_cast %239 : vector<2x4x4x128xbf16> to vector<32x128xbf16>
    %c0_207 = arith.constant 0 : index
    %c1_208 = arith.constant 1 : index
    %c2_209 = arith.constant 2 : index
    %c0_210 = arith.constant 0 : index
    %241 = vector.load %arg25[%c0_207, %c1_208, %c2_209, %c0_210] : memref<2x6x8x128xbf16, #tpu.memory_space<vmem>>, vector<2x4x4x128xbf16>
    %242 = vector.shape_cast %241 : vector<2x4x4x128xbf16> to vector<32x128xbf16>
    %c0_211 = arith.constant 0 : index
    %c2_212 = arith.constant 2 : index
    %c2_213 = arith.constant 2 : index
    %c0_214 = arith.constant 0 : index
    %243 = vector.load %arg25[%c0_211, %c2_212, %c2_213, %c0_214] : memref<2x6x8x128xbf16, #tpu.memory_space<vmem>>, vector<2x4x4x128xbf16>
    %244 = vector.shape_cast %243 : vector<2x4x4x128xbf16> to vector<32x128xbf16>
    %245 = tpu.concatenate %240, %242, %244 in 1 : vector<32x128xbf16>, vector<32x128xbf16>, vector<32x128xbf16> -> vector<32x384xbf16>
    %246 = vector.extract_strided_slice %184 {offsets = [2, 0, 0], sizes = [1, 384, 128], strides = [1, 1, 1]} : vector<3x384x128xbf16> to vector<1x384x128xbf16>
    %247 = vector.shape_cast %246 : vector<1x384x128xbf16> to vector<384x128xbf16>
    %cst_215 = arith.constant dense<0.000000e+00> : vector<32x128xf32>
    %248 = tpu.matmul %245, %247, %cst_215 {dimension_numbers = #tpu.dot_dimension_numbers<[1], [0], [0], [1], [0, 0, 1, 1], [], []>} : vector<32x384xbf16>, vector<384x128xbf16>, vector<32x128xf32> -> vector<32x128xf32>
    %249 = arith.addf %238, %248 : vector<32x128xf32>
    %250 = vector.broadcast %185 : vector<1x128xf32> to vector<32x128xf32>
    %251 = arith.addf %249, %250 : vector<32x128xf32>
    %cst_216 = arith.constant dense<0.000000e+00> : vector<128xf32>
    %252 = vector.multi_reduction <add>, %251, %cst_216 [0] : vector<32x128xf32> to vector<128xf32>
    %253 = vector.shape_cast %252 : vector<128xf32> to vector<1x128xf32>
    %cst_217 = arith.constant 3.200000e+01 : f32
    %254 = vector.broadcast %cst_217 : f32 to vector<1x128xf32>
    %255 = arith.divf %253, %254 : vector<1x128xf32>
    %256 = vector.broadcast %255 : vector<1x128xf32> to vector<32x128xf32>
    %257 = arith.subf %251, %256 : vector<32x128xf32>
    %258 = arith.mulf %257, %257 : vector<32x128xf32>
    %cst_218 = arith.constant dense<0.000000e+00> : vector<128xf32>
    %259 = vector.multi_reduction <add>, %258, %cst_218 [0] : vector<32x128xf32> to vector<128xf32>
    %260 = vector.shape_cast %259 : vector<128xf32> to vector<1x128xf32>
    %cst_219 = arith.constant 3.200000e+01 : f32
    %261 = vector.broadcast %cst_219 : f32 to vector<1x128xf32>
    %262 = arith.divf %260, %261 : vector<1x128xf32>
    %cst_220 = arith.constant 9.99999974E-6 : f32
    %263 = vector.broadcast %cst_220 : f32 to vector<1x128xf32>
    %264 = arith.addf %262, %263 : vector<1x128xf32>
    %265 = math.rsqrt %264 : vector<1x128xf32>
    %266 = arith.mulf %265, %186 : vector<1x128xf32>
    %267 = arith.mulf %255, %266 : vector<1x128xf32>
    %268 = arith.subf %187, %267 : vector<1x128xf32>
    %269 = vector.broadcast %266 : vector<1x128xf32> to vector<32x128xf32>
    %270 = arith.mulf %251, %269 : vector<32x128xf32>
    %271 = vector.broadcast %268 : vector<1x128xf32> to vector<32x128xf32>
    %272 = arith.addf %270, %271 : vector<32x128xf32>
    %cst_221 = arith.constant 0.000000e+00 : f32
    %273 = vector.broadcast %cst_221 : f32 to vector<32x128xf32>
    %274 = arith.maximumf %272, %273 : vector<32x128xf32>
    %275 = arith.truncf %274 : vector<32x128xf32> to vector<32x128xbf16>
    %cst_222 = arith.constant dense<0.000000e+00> : vector<32x128xf32>
    %276 = tpu.matmul %275, %188, %cst_222 {dimension_numbers = #tpu.dot_dimension_numbers<[1], [0], [0], [1], [0, 0, 1, 1], [], []>} : vector<32x128xbf16>, vector<128x128xbf16>, vector<32x128xf32> -> vector<32x128xf32>
    %277 = vector.broadcast %189 : vector<1x128xf32> to vector<32x128xf32>
    %278 = arith.addf %276, %277 : vector<32x128xf32>
    %279 = arith.addf %181, %278 : vector<32x128xf32>
    %280 = vector.shape_cast %279 : vector<32x128xf32> to vector<2x4x4x128xf32>
    %c0_223 = arith.constant 0 : index
    %c0_224 = arith.constant 0 : index
    %c0_225 = arith.constant 0 : index
    %c0_226 = arith.constant 0 : index
    %281 = vector.load %arg23[%c0_223, %c0_224, %c0_225, %c0_226] : memref<2x4x4x128xf32, #tpu.memory_space<vmem>>, vector<2x4x4x128xf32>
    tpu.vector_store %arg23[%c0_223, %c0_224, %c0_225, %c0_226], %280 {strides = array<i32>} : memref<2x4x4x128xf32, #tpu.memory_space<vmem>>, vector<2x4x4x128xf32>,
    return
  }
}

</mosaic_0001>

<bundles_post_ra>
// kernel: encoder_forward.1
= control target key start
LH: loop header
LB: loop body
LE: loop exit
PB: predicated region body
PF: predicated region fallthrough
CT: control target
= control target key end

     0   :  { %s12433_s0 = inlined_call_operand.vmem [shape: bf16[128,48], index: 0, kind: input, shape index: {}]   ;;  %s12434_s1 = inlined_call_operand.vmem [shape: bf16[48,128], index: 1, kind: input, shape index: {}]   ;;  %s12435_s2 = inlined_call_operand.vmem [shape: f32[1,128], index: 2, kind: input, shape index: {}]   ;;  %s12436_s3 = inlined_call_operand.vmem [shape: f32[1,128], index: 3, kind: input, shape index: {}]   ;;  %s12437_s4 = inlined_call_operand.vmem [shape: f32[1,128], index: 4, kind: input, shape index: {}]   ;;  %s12438_s5 = inlined_call_operand.vmem [shape: bf16[2,2,512,128], index: 5, kind: input, shape index: {}]   ;;  %s12439_s6 = inlined_call_operand.vmem [shape: f32[1,128], index: 6, kind: input, shape index: {}]   ;;  %s12440_s7 = inlined_call_operand.vmem [shape: f32[1,128], index: 7, kind: input, shape index: {}]   ;;  %s12441_s8 = inlined_call_operand.vmem [shape: f32[1,128], index: 8, kind: input, shape index: {}]   ;;  %s12442_s9 = inlined_call_operand.vmem [shape: bf16[3,384,128], index: 9, kind: input, shape index: {}]   ;;  %s12443_s10 = inlined_call_operand.vmem [shape: f32[1,128], index: 10, kind: input, shape index: {}]   ;;  %s12444_s11 = inlined_call_operand.vmem [shape: f32[1,128], index: 11, kind: input, shape index: {}]   ;;  %s12445_s12 = inlined_call_operand.vmem [shape: f32[1,128], index: 12, kind: input, shape index: {}]   ;;  %s12446_s13 = inlined_call_operand.vmem [shape: bf16[128,128], index: 13, kind: input, shape index: {}]   ;;  %s12447_s14 = inlined_call_operand.vmem [shape: f32[1,128], index: 14, kind: input, shape index: {}]   ;;  %s12448_s15 = inlined_call_operand.vmem [shape: f32[1,128], index: 15, kind: input, shape index: {}]   ;;  %s12449_s16 = inlined_call_operand.vmem [shape: f32[1,128], index: 16, kind: input, shape index: {}]   ;;  %s12450_s17 = inlined_call_operand.vmem [shape: bf16[3,384,128], index: 17, kind: input, shape index: {}]   ;;  %s12451_s18 = inlined_call_operand.vmem [shape: f32[1,128], index: 18, kind: input, shape index: {}]   ;;  %s12452_s19 = inlined_call_operand.vmem [shape: f32[1,128], index: 19, kind: input, shape index: {}]   ;;  %s12453_s20 = inlined_call_operand.vmem [shape: f32[1,128], index: 20, kind: input, shape index: {}]   ;;  %s12454_s21 = inlined_call_operand.vmem [shape: bf16[128,128], index: 21, kind: input, shape index: {}]   ;;  %s12455_s22 = inlined_call_operand.vmem [shape: f32[1,128], index: 22, kind: input, shape index: {}]   ;;  %s12456_s23 = inlined_call_operand.hbm [shape: f32[2,4,4,128], index: 23, kind: output, shape index: {}]  }
   0x1   :  { %12460 = sst [smem:[#allocation7_spill]] %s12433_s0 }
   0x2   :  { %12461 = sst [smem:[#allocation8_spill]] %s12434_s1 }
   0x3   :  { %12462 = sst [smem:[#allocation9_spill]] %s12435_s2 }
   0x4   :  { %12463 = sst [smem:[#allocation10_spill]] %s12436_s3 }
   0x5   :  { %12464 = sst [smem:[#allocation11_spill]] %s12437_s4 }
   0x6   :  { %12465 = sst [smem:[#allocation12_spill]] %s12438_s5 }
   0x7   :  { %12466 = sst [smem:[#allocation13_spill]] %s12439_s6 }
   0x8   :  { %12467 = sst [smem:[#allocation14_spill]] %s12440_s7 }
   0x9   :  { %s12468_s24 = sld [smem:[#allocation8_spill]]  ;;  %vm163_vm0 = vcmask 392192   ;;  %s12469_s2 = sld [smem:[#allocation7_spill]] }
   0xf   :  { %v9947_v0 = vld [vmem:[%s12468_s24] sm:$0xff]   ;;  %v9948_v1 = vld [vmem:[%s12468_s24 + $0x8] sm:$0xff]   ;;  %v9949_v3 = vld [vmem:[%s12468_s24 + $0x10] sm:$0xff]  }
  0x10   :  { %9720 = vmatprep.subr.bf16.mxu0 %v9947_v0  ;;  %v9950_v2 = vld [vmem:[%s12469_s2] sm:$0xff]   ;;  %v9951_v4 = vld [vmem:[%s12469_s2 + $0x8] sm:$0xff]   ;;  %v9952_v5 = vld [vmem:[%s12469_s2 + $0x10] sm:$0xff]  }
  0x11   :  { %9721 = vmatpush3.bf16.msra.mxu0 %v9947_v0  ;;  %9726 = vmatprep.mubr.msk.bf16.mxu0 %vm163_vm0, %v9950_v2  ;;  %v9953_v6 = vld [vmem:[%s12469_s2 + $0x18] sm:$0xff]   ;;  %v9954_v7 = vld [vmem:[%s12469_s2 + $0x20] sm:$0xff]   ;;  %v9955_v8 = vld [vmem:[%s12469_s2 + $0x28] sm:$0xff]  }
  0x12   :  { %9722 = vmatprep.subr.bf16.mxu0 %v9948_v1  ;;  %v9956_v9 = vld [vmem:[%s12469_s2 + $0x30] sm:$0xff]   ;;  %v9957_v10 = vld [vmem:[%s12469_s2 + $0x38] sm:$0xff]  }
  0x15   :  { %9723 = vmatpush3.bf16.msra.mxu0 %v9948_v1 }
  0x16   :  { %9724 = vmatprep.subr.bf16.mxu0 %v9949_v3 }
  0x19   :  { %9725 = vmatpush3.bf16.msra.mxu0 %v9949_v3 }
  0x1c   :  { %9727 = vmatmul.mubr.msk.bf16.vlgmr.msra.gmra.mrb[0].mxu0 %vm163_vm0, %v9951_v4 }
  0x1d   :  { %9730 = vmatprep.mubr.msk.bf16.mxu0 %vm163_vm0, %v9952_v5 }
  0x24   :  { %9731 = vmatmul.mubr.msk.bf16.gmra.mrb[4].mxu0 %vm163_vm0, %v9953_v6 }
  0x25   :  { %9734 = vmatprep.mubr.msk.bf16.mxu0 %vm163_vm0, %v9954_v7 }
  0x2c   :  { %9735 = vmatmul.mubr.msk.bf16.gmra.mrb[8].mxu0 %vm163_vm0, %v9955_v8 }
  0x2d   :  { %9738 = vmatprep.mubr.msk.bf16.mxu0 %vm163_vm0, %v9956_v9 }
  0x34   :  { %9739 = vmatmul.mubr.msk.bf16.gmra.mrb[12].mxu0 %vm163_vm0, %v9957_v10 }
  0x35   :  { %28 = vsyncpa [#allocation5], 0  ;;  %vm427_vm1 = vcmask 1042432   ;;  %vm428_vm2 = vsmask.f32 2304  ;;  %vm430_vm3 = vcmask 1046532  }
  0x36   :  { %vm431_vm4 = vsmask.f32 6400  ;;  %vm429_vm5 = vmand %vm427_vm1, %vm428_vm2  ;;  %v452_v11 = vld [vmem:[#allocation2 + $0x30] sm:$0x77]  ;;  %v458_v12 = vld [vmem:[#allocation2 + $0x40] sm:$0x77] }
  0x37   :  { %vm432_vm6 = vmand %vm430_vm3, %vm431_vm4  ;;  %s12470_s29 = sld [smem:[#allocation9_spill]]  ;;  %v437_v15 = vld [vmem:[#allocation2 + $0x8] sm:$0x77]  ;;  %v440_v16 = vld [vmem:[#allocation2 + $0x10] sm:$0x77]  ;;  %s12473_s0 = sld [smem:[#allocation12_spill]] }
  0x38   :  { %vm10500_vm7 = vmor %vm432_vm6, %vm429_vm5  ;;  %v443_v23 = vld [vmem:[#allocation2 + $0x18] sm:$0x77]  ;;  %v446_v24 = vld [vmem:[#allocation2 + $0x20] sm:$0x77]  ;;  %s12474_s2 = sld [smem:[#allocation10_spill]]  ;;  %s12475_s30 = sld [smem:[#allocation11_spill]] }
  0x39   :  { %v453_v18 = vsel %vm10500_vm7, 0, %v452_v11  ;;  %v459_v19 = vsel %vm10500_vm7, 0, %v458_v12  ;;  %v438_v20 = vsel %vm10500_vm7, 0, %v437_v15  ;;  %v441_v21 = vsel %vm10500_vm7, 0, %v440_v16  ;;  %v449_v33 = vld [vmem:[#allocation2 + $0x28] sm:$0x77] }
  0x3a   :  { %454 = vst [vmem:[#allocation2 + $0x30] sm:$0x77] %v453_v18  ;;  %460 = vst [vmem:[#allocation2 + $0x40] sm:$0x77] %v459_v19  ;;  %v444_v28 = vsel %vm10500_vm7, 0, %v443_v23  ;;  %v447_v29 = vsel %vm10500_vm7, 0, %v446_v24 }
  0x3b   :  { %439 = vst [vmem:[#allocation2 + $0x8] sm:$0x77] %v438_v20  ;;  %442 = vst [vmem:[#allocation2 + $0x10] sm:$0x77] %v441_v21  ;;  %v450_v36 = vsel %vm10500_vm7, 0, %v449_v33  ;;  %vm3471_vm3 = vcmask 1042434  }
  0x3c   :  { %445 = vst [vmem:[#allocation2 + $0x18] sm:$0x77] %v444_v28  ;;  %448 = vst [vmem:[#allocation2 + $0x20] sm:$0x77] %v447_v29  ;;  %v455_v37 = vld [vmem:[#allocation2 + $0x38] sm:$0x77] }
  0x3d   :  { %v10498_v13 = vld [vmem:[%s12470_s29] ss:$0 sm:$0xff]  ;;  %451 = vst [vmem:[#allocation2 + $0x28] sm:$0x77] %v450_v36  ;;  %v456_v38 = vsel %vm10500_vm7, 0, %v455_v37  ;;  %v9962_v41 = vld [vmem:[%s12473_s0 + $0x148] sm:$0xff]  }
  0x3e   :  { %v9958_v26 = vld [vmem:[%s12473_s0 + $0x140] sm:$0xff]   ;;  %v9963_v42 = vld [vmem:[%s12473_s0 + $0x1c8] sm:$0xff]   ;;  %457 = vst [vmem:[#allocation2 + $0x38] sm:$0x77] %v456_v38  ;;  %v9966_v53 = vld [vmem:[%s12473_s0 + $0x150] sm:$0xff]   ;;  %s12488_s24 = sld [smem:[#allocation13_spill]] }
  0x3f   :  { %v9959_v27 = vld [vmem:[%s12473_s0 + $0x1c0] sm:$0xff]   ;;  %9248 = vmatprep.subr.bf16.mxu1 %v9958_v26  ;;  %v9964_v43 = vld [vmem:[%s12473_s0 + $0x108] sm:$0xff]   ;;  %v9967_v54 = vld [vmem:[%s12473_s0 + $0x1d0] sm:$0xff]   ;;  %vm630_vm8 = vsmask.f32 2306  ;;  %s12489_s1 = sld [smem:[#allocation14_spill]] }
  0x40   :  { %v9960_v31 = vld [vmem:[%s12473_s0 + $0x100] sm:$0xff]   ;;  %9276 = vmatprep.subr.bf16.mxu0 %v9959_v27  ;;  %v9965_v44 = vld [vmem:[%s12473_s0 + $0x188] sm:$0xff]   ;;  %v9968_v55 = vld [vmem:[%s12473_s0 + $0x110] sm:$0xff]   ;;  %vm1385_vm10 = vsmask.f32 1280  ;;  %s10330_s7 = smov [#allocation4]  }
  0x41   :  { %v9961_v32 = vld [vmem:[%s12473_s0 + $0x180] sm:$0xff]   ;;  %9249 = vmatpush3.bf16.msra.mxu1 %v9960_v31  ;;  %v9969_v57 = vld [vmem:[%s12473_s0 + $0x190] sm:$0xff]   ;;  %v9970_v58 = vld [vmem:[%s12473_s0 + $0x158] sm:$0xff]   ;;  %vm1386_vm11 = vsmask.f32 3336  ;;  %s8625_s28 = sshll.u32 %s10330_s7, 4  ;;  %s8626_s28 = int_to_ptr.vmem [resolvable:$true] %s8625_s28 }
  0x42   :  { %9277 = vmatpush3.bf16.msra.mxu0 %v9961_v32  ;;  %9250 = vmatprep.subr.bf16.mxu1 %v9962_v41  ;;  %v434_v49 = vld [vmem:[#allocation2] sm:$0x77]  ;;  %v9971_v59 = vld [vmem:[%s12473_s0 + $0x1d8] sm:$0xff]   ;;  %v9978_v16 = vld [vmem:[%s12473_s0 + $0x168] sm:$0xff]   ;;  %vm1388_vm12 = vsmask.f32 5392  ;;  %p10309_p1 = scmp.lt.s32.totalorder %s8626_s28, %s8626_s28 }
  0x43   :  { %9278 = vmatprep.subr.bf16.mxu0 %v9963_v42  ;;  %v435_v60 = vsel %vm10500_vm7, 0, %v434_v49  ;;  %v9972_v63 = vld [vmem:[%s12473_s0 + $0x118] sm:$0xff]   ;;  %v9974_v3 = vld [vmem:[%s12473_s0 + $0x160] sm:$0xff]   ;;  %v9980_v21 = vld [vmem:[%s12473_s0 + $0x128] sm:$0xff]   ;;  %vm1390_vm13 = vsmask.f32 7448 }
  0x44   :  { %436 = vst [vmem:[#allocation2] sm:$0x77] %v435_v60  ;;  %v9973_v0 = vld [vmem:[%s12473_s0 + $0x198] sm:$0xff]   ;;  %v9975_v4 = vld [vmem:[%s12473_s0 + $0x1e0] sm:$0xff]   ;;  %v9981_v23 = vld [vmem:[%s12473_s0 + $0x1a8] sm:$0xff]  }
  0x45   :  { %9251 = vmatpush3.bf16.msra.mxu1 %v9964_v43  ;;  %v9976_v9 = vld [vmem:[%s12473_s0 + $0x120] sm:$0xff]   ;;  %v9982_v24 = vld [vmem:[%s12473_s0 + $0x170] sm:$0xff]   ;;  %v479_v37 = vld [vmem:[#allocation2 + $0x78] sm:$0x77]  ;;  %vm3433_vm2 = vsmask.f32 256 }
  0x46   :  { %9279 = vmatpush3.bf16.msra.mxu0 %v9965_v44  ;;  %9252 = vmatprep.subr.bf16.mxu1 %v9966_v53  ;;  %v9977_v10 = vld [vmem:[%s12473_s0 + $0x1a0] sm:$0xff]   ;;  %v476_v31 = vld [vmem:[#allocation2 + $0x70] sm:$0x77]  ;;  %v480_v42 = vsel %vm10500_vm7, 0, %v479_v37  ;;  %v485_v44 = vld [vmem:[#allocation2 + $0x88] sm:$0x77] }
  0x47   :  { %9280 = vmatprep.subr.bf16.mxu0 %v9967_v54  ;;  %v470_v29 = vld [vmem:[#allocation2 + $0x60] sm:$0x77]  ;;  %v477_v36 = vsel %vm10500_vm7, 0, %v476_v31  ;;  %481 = vst [vmem:[#allocation2 + $0x78] sm:$0x77] %v480_v42  ;;  %vm10815_vm9 = vmand %vm427_vm1, %vm630_vm8  ;;  %vm3432_vm1 = vcmask 1040384  }
  0x48   :  { %v471_v32 = vsel %vm10500_vm7, 0, %v470_v29  ;;  %478 = vst [vmem:[#allocation2 + $0x70] sm:$0x77] %v477_v36  ;;  %v482_v43 = vld [vmem:[#allocation2 + $0x80] sm:$0x77]  ;;  %vm10871_vm14 = vmor %vm1385_vm10, %vm1386_vm11  ;;  %vm5271_vm8 = vcmask 1044484  }
  0x49   :  { %9253 = vmatpush3.bf16.msra.mxu1 %v9968_v55  ;;  %472 = vst [vmem:[#allocation2 + $0x60] sm:$0x77] %v471_v32  ;;  %v483_v49 = vsel %vm10500_vm7, 0, %v482_v43  ;;  %v9986_v55 = vld [vmem:[%s12473_s0 + $0x178] sm:$0xff]   ;;  %v464_v60 = vld [vmem:[#allocation2 + $0x50] sm:$0x77]  ;;  %vm10880_vm15 = vmor %vm10871_vm14, %vm1388_vm12 }
  0x4a   :  { %9281 = vmatpush3.bf16.msra.mxu0 %v9969_v57  ;;  %9254 = vmatprep.subr.bf16.mxu1 %v9970_v58  ;;  %484 = vst [vmem:[#allocation2 + $0x80] sm:$0x77] %v483_v49  ;;  %v461_v32 = vld [vmem:[#allocation2 + $0x48] sm:$0x77]  ;;  %vm10891_vm0 = vmor %vm10880_vm15, %vm1390_vm13  ;;  %vm3472_vm5 = vsmask.f32 7946 }
  0x4b   :  { %9282 = vmatprep.subr.bf16.mxu0 %v9971_v59  ;;  %vm11462_vm4 = vmand %vm3432_vm1, %vm3433_vm2  ;;  %vm5273_vm11 = vcmask 1046534  }
  0x4c   :  { %vm11475_vm6 = vmand %vm3471_vm3, %vm3472_vm5 }
  0x4d   :  { %9255 = vmatpush3.bf16.msra.mxu1 %v9972_v63  ;;  %v9989_v63 = vld [vmem:[%s12473_s0 + $0x1b8] sm:$0xff]  }
  0x4e   :  { %9283 = vmatpush3.bf16.msra.mxu0 %v9973_v0  ;;  %9256 = vmatprep.subr.bf16.mxu1 %v9974_v3  ;;  %v465_v3 = vsel %vm10500_vm7, 0, %v464_v60 }
  0x4f   :  { %9284 = vmatprep.subr.bf16.mxu0 %v9975_v4  ;;  %466 = vst [vmem:[#allocation2 + $0x50] sm:$0x77] %v465_v3 }
  0x51   :  { %9257 = vmatpush3.bf16.msra.mxu1 %v9976_v9 }
  0x52   :  { %9285 = vmatpush3.bf16.msra.mxu0 %v9977_v10  ;;  %9258 = vmatprep.subr.bf16.mxu1 %v9978_v16  ;;  %v9990_v16 = vld [vmem:[%s12473_s0 + $0x40] sm:$0xff]  }
  0x55   :  { %9259 = vmatpush3.bf16.msra.mxu1 %v9980_v21 }
  0x56   :  { %9260 = vmatprep.subr.bf16.mxu1 %v9982_v24 }
  0xef   :  { %v9728_v17 = vpop.f32.mrb[0].mxu0 }
  0xf0   :  { %v222_v22 = vpop.f32.mrb[1].mxu0  ;;  %v10539_v39 = vadd.f32 %v9728_v17, %v10498_v13  ;;  %v9979_v17 = vld [vmem:[%s12473_s0 + $0x1e8] sm:$0xff]  }
  0xf1   :  { %v9729_v25 = vpop.f32.mrb[2].mxu0  ;;  %v10529_v34 = vadd.f32 %v10498_v13, %v222_v22  ;;  %v467_v22 = vld [vmem:[#allocation2 + $0x58] sm:$0x77]  ;;  %9286 = vmatprep.subr.bf16.mxu0 %v9979_v17 }
  0xf2   :  { %v225_v30 = vpop.f32.mrb[3].mxu0  ;;  %v10556_v45 = vadd.f32 %v9729_v25, %v10498_v13  ;;  %v9983_v25 = vld [vmem:[%s12473_s0 + $0x1f0] sm:$0xff]   ;;  %v468_v26 = vsel %vm10500_vm7, 0, %v467_v22  ;;  %9287 = vmatpush3.bf16.msra.mxu0 %v9981_v23 }
  0xf3   :  { %v10532_v35 = vadd.f32 %v10498_v13, %v225_v30  ;;  %469 = vst [vmem:[#allocation2 + $0x58] sm:$0x77] %v468_v26  ;;  %v473_v30 = vld [vmem:[#allocation2 + $0x68] sm:$0x77]  ;;  %9288 = vmatprep.subr.bf16.mxu0 %v9983_v25  ;;  %v488_v25 = vld [vmem:[#allocation2 + $0x90] sm:$0x77] }
  0xf4   :  { %v474_v33 = vsel %vm10500_vm7, 0, %v473_v30  ;;  %v489_v31 = vsel %vm10500_vm7, 0, %v488_v25 }
  0xf5   :  { %v287_v40 = vadd.f32 %v10532_v35, %v10529_v34  ;;  %475 = vst [vmem:[#allocation2 + $0x68] sm:$0x77] %v474_v33  ;;  %490 = vst [vmem:[#allocation2 + $0x90] sm:$0x77] %v489_v31 }
  0xf7   :  { %v288_v46 = vadd.f32 %v287_v40, %v10539_v39  ;;  %v9732_v47 = vpop.f32.mrb[4].mxu0 }
  0xf8   :  { %v238_v48 = vpop.f32.mrb[5].mxu0  ;;  %v10594_v1 = vadd.f32 %v9732_v47, %v10498_v13  ;;  %v9984_v47 = vld [vmem:[%s12473_s0 + $0x130] sm:$0xff]  }
  0xf9   :  { %v10560_v50 = vadd.f32 %v10498_v13, %v238_v48  ;;  %v289_v51 = vadd.f32 %v288_v46, %v10556_v45  ;;  %v9733_v52 = vpop.f32.mrb[6].mxu0  ;;  %v9985_v48 = vld [vmem:[%s12473_s0 + $0x1b0] sm:$0xff]   ;;  %9261 = vmatpush3.bf16.msra.mxu1 %v9984_v47 }
  0xfa   :  { %v241_v56 = vpop.f32.mrb[7].mxu0  ;;  %v10604_v5 = vadd.f32 %v9733_v52, %v10498_v13  ;;  %9289 = vmatpush3.bf16.msra.mxu0 %v9985_v48  ;;  %9262 = vmatprep.subr.bf16.mxu1 %v9986_v55 }
  0xfb   :  { %v290_v61 = vadd.f32 %v289_v51, %v10560_v50  ;;  %v10585_v62 = vadd.f32 %v10498_v13, %v241_v56  ;;  %v486_v51 = vsel %vm10500_vm7, 0, %v485_v44  ;;  %v9987_v56 = vld [vmem:[%s12473_s0 + $0x1f8] sm:$0xff]  }
  0xfc   :  { %487 = vst [vmem:[#allocation2 + $0x88] sm:$0x77] %v486_v51  ;;  %9290 = vmatprep.subr.bf16.mxu0 %v9987_v56 }
  0xfd   :  { %v291_v2 = vadd.f32 %v290_v61, %v10585_v62  ;;  %v9988_v61 = vld [vmem:[%s12473_s0 + $0x138] sm:$0xff]  }
  0xfe   :  { %9263 = vmatpush3.bf16.msra.mxu1 %v9988_v61  ;;  %9291 = vmatpush3.bf16.msra.mxu0 %v9989_v63 }
  0xff   :  { %v292_v6 = vadd.f32 %v291_v2, %v10594_v1  ;;  %v9736_v7 = vpop.f32.mrb[8].mxu0  ;;  %9304 = vmatprep.subr.bf16.mxu1 %v9990_v16 }
 0x100   :  { %v254_v8 = vpop.f32.mrb[9].mxu0  ;;  %v10642_v27 = vadd.f32 %v9736_v7, %v10498_v13 }
 0x101   :  { %v10614_v11 = vadd.f32 %v10498_v13, %v254_v8  ;;  %v293_v12 = vadd.f32 %v292_v6, %v10604_v5  ;;  %v9737_v15 = vpop.f32.mrb[10].mxu0 }
 0x102   :  { %v257_v18 = vpop.f32.mrb[11].mxu0  ;;  %v10652_v38 = vadd.f32 %v9737_v15, %v10498_v13 }
 0x103   :  { %v294_v19 = vadd.f32 %v293_v12, %v10614_v11  ;;  %v10625_v20 = vadd.f32 %v10498_v13, %v257_v18 }
 0x105   :  { %v295_v28 = vadd.f32 %v294_v19, %v10625_v20 }
 0x107   :  { %v296_v40 = vadd.f32 %v295_v28, %v10642_v27  ;;  %v9740_v41 = vpop.f32.mrb[12].mxu0 }
 0x108   :  { %v270_v46 = vpop.f32.mrb[13].mxu0  ;;  %v10688_v0 = vadd.f32 %v9740_v41, %v10498_v13 }
 0x109   :  { %v10668_v52 = vadd.f32 %v10498_v13, %v270_v46  ;;  %v297_v53 = vadd.f32 %v296_v40, %v10652_v38  ;;  %v9741_v54 = vpop.f32.mrb[14].mxu0  ;;  %v462_v40 = vsel %vm10500_vm7, 0, %v461_v32 }
 0x10a   :  { %v273_v57 = vpop.f32.mrb[15].mxu0  ;;  %v10694_v4 = vadd.f32 %v9741_v54, %v10498_v13  ;;  %463 = vst [vmem:[#allocation2 + $0x48] sm:$0x77] %v462_v40 }
 0x10b   :  { %v298_v58 = vadd.f32 %v297_v53, %v10668_v52  ;;  %v10679_v59 = vadd.f32 %v10498_v13, %v273_v57  ;;  %v9991_v13 = vld [vmem:[%s12473_s0 + $0xc0] sm:$0xff]  }
 0x10c   :  { %9332 = vmatprep.subr.bf16.mxu0 %v9991_v13 }
 0x10d   :  { %v299_v2 = vadd.f32 %v298_v58, %v10679_v59 }
 0x10f   :  { %v300_v6 = vadd.f32 %v299_v2, %v10688_v0 }
 0x111   :  { %v301_v7 = vadd.f32 %v300_v6, %v10694_v4 }
 0x113   :  { %v302_v8 = vrot.slane %v301_v7, 4 }
 0x115   :  { %v303_v9 = vadd.f32 %v302_v8, %v301_v7  ;;  %v491_v7 = vld [vmem:[#allocation2 + $0x98] sm:$0x77] }
 0x117   :  { %v304_v10 = vrot.slane %v303_v9, 2 }
 0x119   :  { %v305_v12 = vadd.f32 %v304_v10, %v303_v9 }
 0x11b   :  { %v306_v15 = vrot.slane %v305_v12, 1 }
 0x11d   :  { %v307_v17 = vadd.f32 %v306_v15, %v305_v12  ;;  %v492_v12 = vsel %vm10500_vm7, 0, %v491_v7  ;;  %vm5270_vm7 = vmor %vm3432_vm1, %vm3471_vm3 }
 0x11e   :  { %493 = vst [vmem:[#allocation2 + $0x98] sm:$0x77] %v492_v12  ;;  %vm11811_vm10 = vmor %vm5270_vm7, %vm5271_vm8 }
 0x11f   :  { %v10704_v18 = vmul.f32 0.0078125, %v307_v17  ;;  %vm11827_vm12 = vmor %vm11811_vm10, %vm5273_vm11 }
 0x121   :  { %v310_v19 = vsub.f32 %v10529_v34, %v10704_v18  ;;  %v311_v21 = vsub.f32 %v10532_v35, %v10704_v18  ;;  %v312_v22 = vsub.f32 %v10539_v39, %v10704_v18  ;;  %v313_v26 = vsub.f32 %v10556_v45, %v10704_v18 }
 0x122   :  { %v314_v28 = vsub.f32 %v10560_v50, %v10704_v18  ;;  %v315_v33 = vsub.f32 %v10585_v62, %v10704_v18  ;;  %v316_v41 = vsub.f32 %v10594_v1, %v10704_v18  ;;  %v317_v44 = vsub.f32 %v10604_v5, %v10704_v18 }
 0x123   :  { %v326_v23 = vmul.f32 %v310_v19, %v310_v19  ;;  %v327_v24 = vmul.f32 %v311_v21, %v311_v21  ;;  %v328_v29 = vmul.f32 %v312_v22, %v312_v22  ;;  %v329_v36 = vmul.f32 %v313_v26, %v313_v26 }
 0x124   :  { %v330_v42 = vmul.f32 %v314_v28, %v314_v28  ;;  %v331_v46 = vmul.f32 %v315_v33, %v315_v33  ;;  %v318_v48 = vsub.f32 %v10614_v11, %v10704_v18  ;;  %v332_v49 = vmul.f32 %v316_v41, %v316_v41 }
 0x125   :  { %v342_v30 = vadd.f32 %v327_v24, %v326_v23  ;;  %v319_v53 = vsub.f32 %v10625_v20, %v10704_v18  ;;  %v333_v54 = vmul.f32 %v317_v44, %v317_v44  ;;  %v320_v56 = vsub.f32 %v10642_v27, %v10704_v18 }
 0x126   :  { %v334_v57 = vmul.f32 %v318_v48, %v318_v48  ;;  %v321_v60 = vsub.f32 %v10652_v38, %v10704_v18  ;;  %v322_v2 = vsub.f32 %v10668_v52, %v10704_v18  ;;  %v323_v8 = vsub.f32 %v10679_v59, %v10704_v18 }
 0x127   :  { %v343_v37 = vadd.f32 %v342_v30, %v328_v29  ;;  %v335_v61 = vmul.f32 %v319_v53, %v319_v53  ;;  %v336_v3 = vmul.f32 %v320_v56, %v320_v56  ;;  %v324_v15 = vsub.f32 %v10688_v0, %v10704_v18 }
 0x128   :  { %v337_v9 = vmul.f32 %v321_v60, %v321_v60  ;;  %v338_v16 = vmul.f32 %v322_v2, %v322_v2  ;;  %v325_v17 = vsub.f32 %v10694_v4, %v10704_v18  ;;  %v339_v19 = vmul.f32 %v323_v8, %v323_v8 }
 0x129   :  { %v344_v43 = vadd.f32 %v343_v37, %v329_v36  ;;  %v340_v22 = vmul.f32 %v324_v15, %v324_v15  ;;  %v369_v37 = vlaneseq  ;;  %v10328_v41 = vmov 1983009808  }
 0x12a   :  { %v341_v24 = vmul.f32 %v325_v17, %v325_v17 }
 0x12b   :  { %v345_v47 = vadd.f32 %v344_v43, %v330_v42  ;;  %v370_v40 = vshrl.u32 %v369_v37, 7  ;;  %v1509_v42 = vunpack.c.l.s4 %v10328_v41  ;;  %v285_v43 = vld [vmem:[%s12474_s2] sm:$0x1] }
 0x12d   :  { %v346_v51 = vadd.f32 %v345_v47, %v331_v46  ;;  %v10747_v44 = vsub.s32 0, %v370_v40  ;;  %v1510_v47 = vunpack.c.0.s8 %v1509_v42 }
 0x12f   :  { %v347_v55 = vadd.f32 %v346_v51, %v332_v49  ;;  %v286_v49 = vld [vmem:[%s12475_s30] sm:$0x1] }
 0x131   :  { %v348_v58 = vadd.f32 %v347_v55, %v333_v54  ;;  %v10756_v54 = vsub.s32 %v1510_v47, %v370_v40 }
 0x133   :  { %v349_v63 = vadd.f32 %v348_v58, %v334_v57 }
 0x135   :  { %v350_v6 = vadd.f32 %v349_v63, %v335_v61 }
 0x137   :  { %v351_v10 = vadd.f32 %v350_v6, %v336_v3 }
 0x139   :  { %v352_v13 = vadd.f32 %v351_v10, %v337_v9 }
 0x13b   :  { %v353_v21 = vadd.f32 %v352_v13, %v338_v16 }
 0x13d   :  { %v354_v23 = vadd.f32 %v353_v21, %v339_v19 }
 0x13f   :  { %v355_v25 = vadd.f32 %v354_v23, %v340_v22 }
 0x141   :  { %v356_v26 = vadd.f32 %v355_v25, %v341_v24 }
 0x143   :  { %v357_v28 = vrot.slane %v356_v26, 4 }
 0x145   :  { %v358_v29 = vadd.f32 %v357_v28, %v356_v26 }
 0x147   :  { %v359_v14 = vrot.slane %v358_v29, 2 }
 0x149   :  { %v360_v30 = vadd.f32 %v359_v14, %v358_v29 }
 0x14b   :  { %v361_v31 = vrot.slane %v360_v30, 1 }
 0x14d   :  { %v362_v32 = vadd.f32 %v361_v31, %v360_v30 }
 0x14f   :  { %v363_v33 = vmul.f32 0.0078125, %v362_v32 }
 0x151   :  { %v364_v36 = vadd.f32 1e-05, %v363_v33 }
 0x153   :  { %10270 = vrsqrt.f32 %v364_v36 }
 0x15d   :  { %v10271_v46 = vpop.eup %10270 }
 0x15e   :  { %v366_v48 = vmul.f32 %v10271_v46, %v285_v43  ;;  %v799_v43 = vld [vmem:[#allocation2 + $0x30] sm:$0x7] }
 0x160   :  { %v367_v51 = vmul.f32 %v366_v48, %v10704_v18  ;;  %v10754_v53 = vrot.slane %v366_v48, %v10747_v44 }
 0x162   :  { %v368_v55 = vsub.f32 %v286_v49, %v367_v51  ;;  %v382_v56 = vmul.f32 %v10754_v53, %v10625_v20  ;;  %v386_v57 = vmul.f32 %v10754_v53, %v10679_v59  ;;  %v373_v58 = vmul.f32 %v10754_v53, %v10529_v34 }
 0x163   :  { %v374_v60 = vmul.f32 %v10754_v53, %v10532_v35  ;;  %v377_v18 = vmul.f32 %v10754_v53, %v10560_v50  ;;  %v378_v61 = vmul.f32 %v10754_v53, %v10585_v62  ;;  %v381_v63 = vmul.f32 %v10754_v53, %v10614_v11 }
 0x164   :  { %v10773_v20 = vrot.slane %v368_v55, %v10747_v44  ;;  %v385_v59 = vmul.f32 %v10754_v53, %v10668_v52  ;;  %v10779_v34 = vmul.f32 %v10754_v53, %v10539_v39  ;;  %v10783_v35 = vmul.f32 %v10754_v53, %v10556_v45 }
 0x165   :  { %v10787_v50 = vmul.f32 %v10754_v53, %v10594_v1  ;;  %v10791_v62 = vmul.f32 %v10754_v53, %v10604_v5  ;;  %v10795_v11 = vmul.f32 %v10754_v53, %v10642_v27  ;;  %v10799_v39 = vmul.f32 %v10754_v53, %v10652_v38 }
 0x166   :  { %v404_v52 = vadd.f32 %v10773_v20, %v382_v56  ;;  %v408_v45 = vadd.f32 %v10773_v20, %v386_v57  ;;  %v395_v2 = vadd.f32 %v10773_v20, %v373_v58  ;;  %v396_v1 = vadd.f32 %v10773_v20, %v374_v60  ;;  %v802_v58 = vld [vmem:[#allocation2 + $0x40] sm:$0x7] }
 0x167   :  { %v399_v3 = vadd.f32 %v10773_v20, %v377_v18  ;;  %v400_v5 = vadd.f32 %v10773_v20, %v378_v61  ;;  %v403_v6 = vadd.f32 %v10773_v20, %v381_v63  ;;  %v407_v27 = vadd.f32 %v10773_v20, %v385_v59 }
 0x168   :  { %v420_v7 = vmax.f32 %v404_v52, 0.0  ;;  %v424_v8 = vmax.f32 %v408_v45, 0.0  ;;  %v411_v38 = vmax.f32 %v395_v2, 0.0  ;;  %v412_v9 = vmax.f32 %v396_v1, 0.0 }
 0x169   :  { %v415_v10 = vmax.f32 %v399_v3, 0.0  ;;  %v416_v12 = vmax.f32 %v400_v5, 0.0  ;;  %v10809_v15 = vmax.f32 %v403_v6, 0.0  ;;  %v10811_v16 = vmax.f32 %v407_v27, 0.0  ;;  %v632_v6 = vld [vmem:[#allocation2 + $0x8] sm:$0x7] }
 0x16a   :  { %v661_v13 = vcombine.high %v420_v7, %v420_v7  ;;  %v670_v17 = vpack.c.bf16 %v420_v7, %v420_v7  ;;  %v690_v19 = vcombine.high %v424_v8, %v424_v8  ;;  %v9215_v21 = vpack.c.bf16 %v424_v8, %v424_v8 }
 0x16b   :  { %v498_v22 = vcombine.high %v411_v38, %v411_v38  ;;  %v499_v23 = vcombine.high %v412_v9, %v412_v9  ;;  %v506_v24 = vpack.c.bf16 %v411_v38, %v411_v38  ;;  %v508_v25 = vpack.c.bf16 %v412_v9, %v412_v9  ;;  %v635_v9 = vld [vmem:[#allocation2 + $0x18] sm:$0x7] }
 0x16c   :  { %v671_v26 = vpack.c.bf16 %v661_v13, %v661_v13  ;;  %679 = vst [vmem:[#allocation2 + $0x34] sm:$0x3] %v670_v17  ;;  %v9216_v28 = vpack.c.bf16 %v690_v19, %v690_v19  ;;  %v744_v29 = vshrl.u32 %v9215_v21, 16  ;;  %v747_v14 = vshll.u32 %v9215_v21, 16  ;;  %v641_v19 = vld [vmem:[#allocation2 + $0x38] sm:$0x7] }
 0x16d   :  { %v507_v30 = vpack.c.bf16 %v498_v22, %v498_v22  ;;  %v509_v31 = vpack.c.bf16 %v499_v23, %v499_v23  ;;  %514 = vst [vmem:[#allocation2 + $0xc] sm:$0x3] %v506_v24  ;;  %516 = vst [vmem:[#allocation2 + $0x2c] sm:$0x3] %v508_v25  ;;  %v526_v32 = vcombine.high %v415_v10, %v415_v10 }
 0x16e   :  { %v527_v33 = vcombine.high %v416_v12, %v416_v12  ;;  %680 = vst [vmem:[#allocation2 + $0x44] sm:$0x3] %v671_v26  ;;  %v746_v36 = vrot.slane %v744_v29, 7  ;;  %v751_v37 = vshrl.u32 %v9216_v28, 16  ;;  %v754_v40 = vshll.u32 %v9216_v28, 16 }
 0x16f   :  { %v9205_v41 = vpack.c.bf16 %v415_v10, %v415_v10  ;;  %515 = vst [vmem:[#allocation2 + $0x1c] sm:$0x3] %v507_v30  ;;  %517 = vst [vmem:[#allocation2 + $0x3c] sm:$0x3] %v509_v31  ;;  %v9206_v46 = vpack.c.bf16 %v526_v32, %v526_v32  ;;  %v9207_v47 = vpack.c.bf16 %v416_v12, %v416_v12  ;;  %v638_v10 = vld [vmem:[#allocation2 + $0x28] sm:$0x7] }
 0x170   :  { %v9208_v48 = vpack.c.bf16 %v527_v33, %v527_v33  ;;  %v660_v49 = vcombine.high %v10809_v15, %v10809_v15  ;;  %v749_v51 = vor.u32 %v747_v14, %v746_v36  ;;  %v753_v55 = vrot.slane %v751_v37, 7  ;;  %v793_v36 = vld [vmem:[#allocation2 + $0x10] sm:$0x7] }
 0x171   :  { %v567_v56 = vshrl.u32 %v9205_v41, 16  ;;  %v570_v57 = vshll.u32 %v9205_v41, 16  ;;  %v574_v60 = vshrl.u32 %v9206_v46, 16  ;;  %v577_v18 = vshll.u32 %v9206_v46, 16 }
 0x172   :  { %v581_v61 = vshrl.u32 %v9207_v47, 16  ;;  %v584_v63 = vshll.u32 %v9207_v47, 16  ;;  %v756_v59 = vor.u32 %v754_v40, %v753_v55  ;;  %v800_v52 = vsel %vm10815_vm9, %v749_v51, %v799_v43  ;;  %v8688_v46 = vld.sshfl [vmem:[#allocation2] sm:$0x5f pattern:$0x76325410] }
 0x173   :  { %v569_v45 = vrot.slane %v567_v56, 7  ;;  %v588_v2 = vshrl.u32 %v9208_v48, 16  ;;  %801 = vst [vmem:[#allocation2 + $0x30] sm:$0x7] %v800_v52  ;;  %v576_v1 = vrot.slane %v574_v60, 7  ;;  %v591_v5 = vshll.u32 %v9208_v48, 16 }
 0x174   :  { %v583_v3 = vrot.slane %v581_v61, 7  ;;  %v668_v27 = vpack.c.bf16 %v10809_v15, %v10809_v15  ;;  %v803_v7 = vsel %vm10815_vm9, %v756_v59, %v802_v58  ;;  %v669_v12 = vpack.c.bf16 %v660_v49, %v660_v49 }
 0x175   :  { %v572_v8 = vor.u32 %v570_v57, %v569_v45  ;;  %v590_v38 = vrot.slane %v588_v2, 7  ;;  %804 = vst [vmem:[#allocation2 + $0x40] sm:$0x7] %v803_v7  ;;  %v579_v13 = vor.u32 %v577_v18, %v576_v1  ;;  %v689_v21 = vcombine.high %v10811_v16, %v10811_v16 }
 0x176   :  { %v586_v17 = vor.u32 %v584_v63, %v583_v3  ;;  %677 = vst [vmem:[#allocation2 + $0x14] sm:$0x3] %v668_v27  ;;  %v9213_v22 = vpack.c.bf16 %v10811_v16, %v10811_v16  ;;  %678 = vst [vmem:[#allocation2 + $0x24] sm:$0x3] %v669_v12  ;;  %v387_v24 = vmul.f32 %v10754_v53, %v10688_v0 }
 0x177   :  { %v593_v15 = vor.u32 %v591_v5, %v590_v38  ;;  %v633_v23 = vsel %vm10815_vm9, %v572_v8, %v632_v6  ;;  %v388_v25 = vmul.f32 %v10754_v53, %v10694_v4  ;;  %v636_v26 = vsel %vm10815_vm9, %v579_v13, %v635_v9 }
 0x178   :  { %634 = vst [vmem:[#allocation2 + $0x8] sm:$0x7] %v633_v23  ;;  %v639_v16 = vsel %vm10815_vm9, %v586_v17, %v638_v10  ;;  %v9214_v28 = vpack.c.bf16 %v689_v21, %v689_v21  ;;  %v730_v29 = vshrl.u32 %v9213_v22, 16  ;;  %637 = vst [vmem:[#allocation2 + $0x18] sm:$0x7] %v636_v26  ;;  %v733_v30 = vshll.u32 %v9213_v22, 16 }
 0x179   :  { %640 = vst [vmem:[#allocation2 + $0x28] sm:$0x7] %v639_v16  ;;  %v642_v14 = vsel %vm10815_vm9, %v593_v15, %v641_v19  ;;  %v397_v0 = vadd.f32 %v10773_v20, %v10779_v34  ;;  %v398_v4 = vadd.f32 %v10773_v20, %v10783_v35  ;;  %v401_v33 = vadd.f32 %v10773_v20, %v10787_v50  ;;  %v796_v50 = vld [vmem:[#allocation2 + $0x20] sm:$0x7] }
 0x17a   :  { %643 = vst [vmem:[#allocation2 + $0x38] sm:$0x7] %v642_v14  ;;  %v732_v53 = vrot.slane %v730_v29, 7  ;;  %v737_v31 = vshrl.u32 %v9214_v28, 16  ;;  %v740_v32 = vshll.u32 %v9214_v28, 16  ;;  %v402_v37 = vadd.f32 %v10773_v20, %v10791_v62 }
 0x17b   :  { %v405_v40 = vadd.f32 %v10773_v20, %v10795_v11  ;;  %v406_v34 = vadd.f32 %v10773_v20, %v10799_v39  ;;  %v409_v41 = vadd.f32 %v10773_v20, %v387_v24  ;;  %v410_v47 = vadd.f32 %v10773_v20, %v388_v25  ;;  %v8694_v2 = vld.sshfl [vmem:[#allocation2 + $0x30] sm:$0x5f pattern:$0x76325410] }
 0x17c   :  { %v735_v35 = vor.u32 %v733_v30, %v732_v53  ;;  %v739_v43 = vrot.slane %v737_v31, 7  ;;  %v413_v48 = vmax.f32 %v397_v0, 0.0  ;;  %v414_v49 = vmax.f32 %v398_v4, 0.0 }
 0x17d   :  { %v417_v51 = vmax.f32 %v401_v33, 0.0  ;;  %v418_v55 = vmax.f32 %v402_v37, 0.0  ;;  %v10857_v62 = vmax.f32 %v405_v40, 0.0  ;;  %v10861_v39 = vmax.f32 %v406_v34, 0.0 }
 0x17e   :  { %v742_v56 = vor.u32 %v740_v32, %v739_v43  ;;  %v794_v11 = vsel %vm10815_vm9, %v735_v35, %v793_v36  ;;  %v10863_v57 = vmax.f32 %v409_v41, 0.0  ;;  %v10865_v60 = vmax.f32 %v410_v47, 0.0  ;;  %v10217_v36 = vld [vmem:[%s12450_s17 + $0x18] sm:$0xff]  }
 0x17f   :  { %795 = vst [vmem:[#allocation2 + $0x10] sm:$0x7] %v794_v11  ;;  %v8689_v58 = vld.sshfl [vmem:[#allocation2 + $0x8] sm:$0x5f pattern:$0x76325410]  ;;  %v500_v20 = vcombine.high %v413_v48, %v413_v48  ;;  %v501_v18 = vcombine.high %v414_v49, %v414_v49  ;;  %v510_v61 = vpack.c.bf16 %v413_v48, %v413_v48  ;;  %v512_v45 = vpack.c.bf16 %v414_v49, %v414_v49 }
 0x180   :  { %v797_v63 = vsel %vm10815_vm9, %v742_v56, %v796_v50  ;;  %v1271_v59 = vcombine.low %v8688_v46, %v8689_v58  ;;  %v1272_v52 = vcombine.high %v8688_v46, %v8689_v58  ;;  %v528_v6 = vcombine.high %v417_v51, %v417_v51  ;;  %v8691_v12 = vld.sshfl [vmem:[#allocation2 + $0x18] sm:$0x5f pattern:$0x76325410] }
 0x181   :  { %798 = vst [vmem:[#allocation2 + $0x20] sm:$0x7] %v797_v63  ;;  %v511_v3 = vpack.c.bf16 %v500_v20, %v500_v20  ;;  %v513_v5 = vpack.c.bf16 %v501_v18, %v501_v18  ;;  %518 = vst [vmem:[#allocation2 + $0x5c] sm:$0x3] %v510_v61  ;;  %v529_v27 = vcombine.high %v418_v55, %v418_v55 }
 0x182   :  { %v8695_v7 = vld.sshfl [vmem:[#allocation2 + $0x38] sm:$0x5f pattern:$0x76325410]  ;;  %v1393_v8 = vshrl.u32 %v1271_v59, 16  ;;  %v1396_v38 = vshll.u32 %v1271_v59, 16  ;;  %v9209_v9 = vpack.c.bf16 %v417_v51, %v417_v51  ;;  %v10875_v10 = vpack.c.bf16 %v418_v55, %v418_v55 }
 0x183   :  { %520 = vst [vmem:[#allocation2 + $0x7c] sm:$0x3] %v512_v45  ;;  %v1319_v13 = vcombine.low %v8694_v2, %v8695_v7  ;;  %v1320_v17 = vcombine.high %v8694_v2, %v8695_v7  ;;  %v1402_v19 = vshll.u32 %v1272_v52, 16  ;;  %519 = vst [vmem:[#allocation2 + $0x6c] sm:$0x3] %v511_v3  ;;  %v9210_v21 = vpack.c.bf16 %v528_v6, %v528_v6 }
 0x184   :  { %521 = vst [vmem:[#allocation2 + $0x8c] sm:$0x3] %v513_v5  ;;  %v1395_v15 = vrot.slane %v1393_v8, 6  ;;  %v1398_v23 = vrot.slane %v1396_v38, 7  ;;  %v10884_v24 = vpack.c.bf16 %v529_v27, %v529_v27  ;;  %v595_v25 = vshrl.u32 %v9209_v9, 16 }
 0x185   :  { %v1404_v26 = vrot.slane %v1402_v19, 7  ;;  %v1435_v16 = vshrl.u32 %v1319_v13, 16  ;;  %v1438_v28 = vshll.u32 %v1319_v13, 16  ;;  %v1444_v29 = vshll.u32 %v1320_v17, 16  ;;  %v644_v5 = vld [vmem:[#allocation2 + $0x58] sm:$0x7] }
 0x186   :  { %v8690_v14 = vld.sshfl [vmem:[#allocation2 + $0x10] sm:$0x5f pattern:$0x76325410]  ;;  %v1399_v30 = vor.u32 %v1398_v23, %v1395_v15  ;;  %v597_v0 = vrot.slane %v595_v25, 7  ;;  %v598_v4 = vshll.u32 %v9209_v9, 16  ;;  %v662_v53 = vcombine.high %v10857_v62, %v10857_v62 }
 0x187   :  { %v8693_v31 = vld.sshfl [vmem:[#allocation2 + $0x28] sm:$0x5f pattern:$0x76325410]  ;;  %v1287_v32 = vcombine.low %v8690_v14, %v8691_v12  ;;  %v1288_v33 = vcombine.high %v8690_v14, %v8691_v12  ;;  %v1437_v37 = vrot.slane %v1435_v16, 6  ;;  %v1440_v40 = vrot.slane %v1438_v28, 7 }
 0x188   :  { %v8692_v34 = vld.sshfl [vmem:[#allocation2 + $0x20] sm:$0x5f pattern:$0x76325410]  ;;  %v1400_v41 = vrot.slane %v1399_v30, 2  ;;  %v1446_v35 = vrot.slane %v1444_v29, 7  ;;  %v600_v43 = vor.u32 %v598_v4, %v597_v0  ;;  %v672_v46 = vpack.c.bf16 %v10857_v62, %v10857_v62 }
 0x189   :  { %v1303_v47 = vcombine.low %v8692_v34, %v8693_v31  ;;  %v1304_v48 = vcombine.high %v8692_v34, %v8693_v31  ;;  %v1407_v50 = vshrl.u32 %v1287_v32, 16  ;;  %v1410_v49 = vshll.u32 %v1287_v32, 16  ;;  %v647_v38 = vld [vmem:[#allocation2 + $0x68] sm:$0x7]  ;;  %v650_v14 = vld [vmem:[#allocation2 + $0x78] sm:$0x7] }
 0x18a   :  { %v1405_v51 = vsel %vm10891_vm0, %v1400_v41, %v1404_v26  ;;  %v1416_v55 = vshll.u32 %v1288_v33, 16  ;;  %v1441_v56 = vor.u32 %v1440_v40, %v1437_v37  ;;  %v602_v11 = vshrl.u32 %v9210_v21, 16  ;;  %681 = vst [vmem:[#allocation2 + $0x64] sm:$0x3] %v672_v46  ;;  %v653_v30 = vld [vmem:[#allocation2 + $0x88] sm:$0x7] }
 0x18b   :  { %v1409_v58 = vrot.slane %v1407_v50, 6  ;;  %v1412_v20 = vrot.slane %v1410_v49, 7  ;;  %v1421_v18 = vshrl.u32 %v1303_v47, 16  ;;  %v1424_v61 = vshll.u32 %v1303_v47, 16 }
 0x18c   :  { %v1418_v63 = vrot.slane %v1416_v55, 7  ;;  %v1430_v59 = vshll.u32 %v1304_v48, 16  ;;  %v1442_v52 = vrot.slane %v1441_v56, 2  ;;  %v604_v45 = vrot.slane %v602_v11, 7 }
 0x18d   :  { %v1413_v62 = vor.u32 %v1412_v20, %v1409_v58  ;;  %v1423_v2 = vrot.slane %v1421_v18, 6  ;;  %v1426_v1 = vrot.slane %v1424_v61, 7  ;;  %v605_v3 = vshll.u32 %v9210_v21, 16  ;;  %v9992_v61 = vld [vmem:[%s12473_s0] sm:$0xff]  }
 0x18e   :  { %v1432_v6 = vrot.slane %v1430_v59, 7  ;;  %v1447_v27 = vsel %vm10891_vm0, %v1442_v52, %v1446_v35  ;;  %v609_v7 = vshrl.u32 %v10875_v10, 16  ;;  %v612_v8 = vshll.u32 %v10875_v10, 16 }
 0x18f   :  { %v1414_v9 = vrot.slane %v1413_v62, 2  ;;  %v1427_v12 = vor.u32 %v1426_v1, %v1423_v2  ;;  %v607_v13 = vor.u32 %v605_v3, %v604_v45  ;;  %v616_v17 = vshrl.u32 %v10884_v24, 16  ;;  %v10929_v50 = vld.sshfl [vmem:[#allocation2 + $0x50] sm:$0x5f pattern:$0x76325410] }
 0x190   :  { %v611_v19 = vrot.slane %v609_v7, 7  ;;  %v619_v22 = vshll.u32 %v10884_v24, 16  ;;  %v645_v21 = vsel %vm10815_vm9, %v600_v43, %v644_v5  ;;  %v673_v15 = vpack.c.bf16 %v662_v53, %v662_v53  ;;  %v9994_v1 = vld [vmem:[%s12473_s0 + $0x48] sm:$0xff]   ;;  %v805_v5 = vld [vmem:[#allocation2 + $0x60] sm:$0x7] }
 0x191   :  { %v1419_v23 = vsel %vm10891_vm0, %v1414_v9, %v1418_v63  ;;  %v1428_v25 = vrot.slane %v1427_v12, 2  ;;  %v618_v26 = vrot.slane %v616_v17, 7  ;;  %646 = vst [vmem:[#allocation2 + $0x58] sm:$0x7] %v645_v21  ;;  %v648_v10 = vsel %vm10815_vm9, %v607_v13, %v647_v38  ;;  %v9993_v63 = vld [vmem:[%s12473_s0 + $0x80] sm:$0xff]   ;;  %v9995_v3 = vld [vmem:[%s12473_s0 + $0xc8] sm:$0xff]  }
 0x192   :  { %v1504_v16 = vcombine.low %v1405_v51, %v1419_v23  ;;  %v1505_v28 = vcombine.high %v1405_v51, %v1419_v23  ;;  %v614_v29 = vor.u32 %v612_v8, %v611_v19  ;;  %649 = vst [vmem:[#allocation2 + $0x68] sm:$0x7] %v648_v10  ;;  %v674_v24 = vpack.c.bf16 %v10861_v39, %v10861_v39  ;;  %v9996_v13 = vld [vmem:[%s12473_s0 + $0x8] sm:$0xff]   ;;  %v9999_v23 = vld [vmem:[%s12473_s0 + $0xd0] sm:$0xff]  }
 0x193   :  { %682 = vst [vmem:[#allocation2 + $0x74] sm:$0x3] %v673_v15  ;;  %v1433_v0 = vsel %vm10891_vm0, %v1428_v25, %v1432_v6  ;;  %v621_v4 = vor.u32 %v619_v22, %v618_v26  ;;  %v691_v53 = vcombine.high %v10863_v57, %v10863_v57  ;;  %v9217_v31 = vpack.c.bf16 %v10863_v57, %v10863_v57  ;;  %v808_v6 = vld [vmem:[#allocation2 + $0x70] sm:$0x7]  ;;  %v9997_v17 = vld [vmem:[%s12473_s0 + $0x88] sm:$0xff]  }
 0x194   :  { %v1506_v32 = vcombine.low %v1433_v0, %v1447_v27  ;;  %v1507_v33 = vcombine.high %v1433_v0, %v1447_v27  ;;  %v1514_v37 = vrot.slane %v1504_v16, %v10756_v54  ;;  %v1521_v40 = vrot.slane %v1505_v28, %v10756_v54  ;;  %683 = vst [vmem:[#allocation2 + $0x84] sm:$0x3] %v674_v24  ;;  %v811_v27 = vld [vmem:[#allocation2 + $0x80] sm:$0x7]  ;;  %v9998_v15 = vld [vmem:[%s12473_s0 + $0x50] sm:$0xff]  }
 0x195   :  { %v651_v34 = vsel %vm10815_vm9, %v614_v29, %v650_v14  ;;  %v654_v41 = vsel %vm10815_vm9, %v621_v4, %v653_v30  ;;  %v9218_v35 = vpack.c.bf16 %v691_v53, %v691_v53  ;;  %v9219_v43 = vpack.c.bf16 %v10865_v60, %v10865_v60  ;;  %v10000_v10 = vld [vmem:[%s12473_s0 + $0x10] sm:$0xff]   ;;  %v10971_v28 = vld.sshfl [vmem:[#allocation2] sm:$0xf pattern:$0x76325410]  ;;  %v10002_v29 = vld [vmem:[%s12473_s0 + $0x58] sm:$0xff]  }
 0x196   :  { %v1528_v46 = vrot.slane %v1506_v32, %v10756_v54  ;;  %v1535_v57 = vrot.slane %v1507_v33, %v10756_v54  ;;  %652 = vst [vmem:[#allocation2 + $0x78] sm:$0x7] %v651_v34  ;;  %655 = vst [vmem:[#allocation2 + $0x88] sm:$0x7] %v654_v41  ;;  %v758_v47 = vshrl.u32 %v9217_v31, 16  ;;  %v761_v48 = vshll.u32 %v9217_v31, 16 }
 0x197   :  { %v765_v49 = vshrl.u32 %v9218_v35, 16  ;;  %v768_v51 = vshll.u32 %v9218_v35, 16  ;;  %v772_v55 = vshrl.u32 %v9219_v43, 16  ;;  %v775_v56 = vshll.u32 %v9219_v43, 16  ;;  %v10001_v16 = vld [vmem:[%s12473_s0 + $0x90] sm:$0xff]   ;;  %v10003_v14 = vld [vmem:[%s12473_s0 + $0xd8] sm:$0xff]  }
 0x198   :  { %v1537_v11 = vcombine.high %v1514_v37, %v1528_v46  ;;  %v1538_v58 = vcombine.low %v1521_v40, %v1535_v57  ;;  %v1539_v20 = vcombine.high %v1521_v40, %v1535_v57  ;;  %v1536_v18 = vcombine.low %v1514_v37, %v1528_v46  ;;  %v10937_v59 = vld.sshfl [vmem:[#allocation2 + $0x58] sm:$0x5f pattern:$0x76325410]  ;;  %v10006_v40 = vld [vmem:[%s12473_s0 + $0x60] sm:$0xff]  }
 0x199   :  { %v760_v52 = vrot.slane %v758_v47, 7  ;;  %v767_v45 = vrot.slane %v765_v49, 7  ;;  %v774_v62 = vrot.slane %v772_v55, 7  ;;  %v1335_v2 = vcombine.low %v10929_v50, %v10937_v59  ;;  %v10004_v32 = vld [vmem:[%s12473_s0 + $0x18] sm:$0xff]   ;;  %v10007_v34 = vld [vmem:[%s12473_s0 + $0xe0] sm:$0xff]  }
 0x19a   :  { %1808 = vmatprep.mubr.bf16.mxu1 %v1537_v11  ;;  %1857 = vmatprep.mubr.bf16.mxu0 %v1539_v20  ;;  %v10979_v30 = vld.sshfl [vmem:[#allocation2 + $0x10] sm:$0xf pattern:$0x76325410]  ;;  %v1336_v0 = vcombine.high %v10929_v50, %v10937_v59  ;;  %v10005_v33 = vld [vmem:[%s12473_s0 + $0x98] sm:$0xff]   ;;  %v10008_v57 = vld [vmem:[%s12473_s0 + $0x20] sm:$0xff]  }
 0x19b   :  { %1809 = vmatmul.mubr.bf16.vlgmr.msra.gmra.mrb[0].mxu1 %v1536_v18  ;;  %1858 = vmatmul.mubr.bf16.vlgmr.msra.gmra.mrb[16].mxu0 %v1538_v58  ;;  %v763_v7 = vor.u32 %v761_v48, %v760_v52  ;;  %v770_v8 = vor.u32 %v768_v51, %v767_v45  ;;  %v777_v38 = vor.u32 %v775_v56, %v774_v62  ;;  %v1449_v9 = vshrl.u32 %v1335_v2, 16  ;;  %v8699_v24 = vld.sshfl [vmem:[#allocation2 + $0x68] sm:$0x5f pattern:$0x76325410]  ;;  %v10009_v47 = vld [vmem:[%s12473_s0 + $0xa0] sm:$0xff]  }
 0x19c   :  { %9305 = vmatpush3.bf16.msra.mxu1 %v9992_v61  ;;  %9333 = vmatpush3.bf16.msra.mxu0 %v9993_v63  ;;  %v1452_v12 = vshll.u32 %v1335_v2, 16  ;;  %v8736_v46 = vcombine.low %v10971_v28, %v10979_v30  ;;  %v1458_v55 = vshll.u32 %v1336_v0, 16  ;;  %v11003_v18 = vld.sshfl [vmem:[#allocation2 + $0x20] sm:$0xf pattern:$0x76325410] }
 0x19d   :  { %v806_v19 = vsel %vm10815_vm9, %v763_v7, %v805_v5  ;;  %v809_v22 = vsel %vm10815_vm9, %v770_v8, %v808_v6  ;;  %v812_v21 = vsel %vm10815_vm9, %v777_v38, %v811_v27  ;;  %9306 = vmatprep.subr.bf16.mxu1 %v9994_v1  ;;  %9334 = vmatprep.subr.bf16.mxu0 %v9995_v3  ;;  %v1451_v25 = vrot.slane %v1449_v9, 6  ;;  %v8701_v53 = vld.sshfl [vmem:[#allocation2 + $0x78] sm:$0x5f pattern:$0x76325410]  ;;  %v10010_v62 = vld [vmem:[%s12473_s0 + $0x68] sm:$0xff]  }
 0x19e   :  { %807 = vst [vmem:[#allocation2 + $0x60] sm:$0x7] %v806_v19  ;;  %810 = vst [vmem:[#allocation2 + $0x70] sm:$0x7] %v809_v22  ;;  %v1454_v26 = vrot.slane %v1452_v12, 7  ;;  %v10011_v2 = vld [vmem:[%s12473_s0 + $0xe8] sm:$0xff]   ;;  %v663_v1 = vcombine.high %v10861_v39, %v10861_v39 }
 0x19f   :  { %813 = vst [vmem:[#allocation2 + $0x80] sm:$0x7] %v812_v21  ;;  %v8703_v31 = vld.sshfl [vmem:[#allocation2 + $0x88] sm:$0x5f pattern:$0x76325410] }
 0x1a0   :  { %9307 = vmatpush3.bf16.msra.mxu1 %v9996_v13  ;;  %9335 = vmatpush3.bf16.msra.mxu0 %v9997_v17  ;;  %v1455_v4 = vor.u32 %v1454_v26, %v1451_v25  ;;  %v11005_v61 = vld.sshfl [vmem:[#allocation2 + $0x18] sm:$0xf pattern:$0x76325410]  ;;  %v692_v13 = vcombine.high %v10865_v60, %v10865_v60  ;;  %v10012_v39 = vld [vmem:[%s12473_s0 + $0x28] sm:$0xff]   ;;  %v1460_v25 = vrot.slane %v1458_v55, 7 }
 0x1a1   :  { %9308 = vmatprep.subr.bf16.mxu1 %v9998_v15  ;;  %9336 = vmatprep.subr.bf16.mxu0 %v9999_v23  ;;  %v11007_v45 = vld.sshfl [vmem:[#allocation2 + $0x38] sm:$0xf pattern:$0x76325410]  ;;  %v10013_v15 = vld [vmem:[%s12473_s0 + $0xa8] sm:$0xff]   ;;  %v10014_v23 = vld [vmem:[%s12473_s0 + $0x70] sm:$0xff]  }
 0x1a2   :  { %v1456_v51 = vrot.slane %v1455_v4, 2  ;;  %v11017_v7 = vld.sshfl [vmem:[#allocation2 + $0x30] sm:$0xf pattern:$0x76325410] }
 0x1a3   :  { %v8673_v8 = vld.sshfl [vmem:[#allocation2 + $0x8] sm:$0xf pattern:$0x76325410]  ;;  %v8738_v26 = vcombine.low %v11003_v18, %v11017_v7 }
 0x1a4   :  { %9309 = vmatpush3.bf16.msra.mxu1 %v10000_v10  ;;  %9337 = vmatpush3.bf16.msra.mxu0 %v10001_v16  ;;  %v11032_v10 = vld.sshfl [vmem:[#allocation2 + $0x28] sm:$0xf pattern:$0x76325410]  ;;  %v8737_v16 = vcombine.low %v8673_v8, %v11005_v61 }
 0x1a5   :  { %v8698_v37 = vld.sshfl [vmem:[#allocation2 + $0x60] sm:$0x5f pattern:$0x76325410]  ;;  %9310 = vmatprep.subr.bf16.mxu1 %v10002_v29  ;;  %9338 = vmatprep.subr.bf16.mxu0 %v10003_v14  ;;  %v10015_v29 = vld [vmem:[%s12473_s0 + $0xf0] sm:$0xff]   ;;  %v8739_v4 = vcombine.low %v11032_v10, %v11007_v45  ;;  %v11061_v55 = vrot.slane %v8738_v26, %v10756_v54 }
 0x1a6   :  { %v8700_v41 = vld.sshfl [vmem:[#allocation2 + $0x70] sm:$0x5f pattern:$0x76325410]  ;;  %v1351_v35 = vcombine.low %v8698_v37, %v8699_v24  ;;  %v1352_v43 = vcombine.high %v8698_v37, %v8699_v24  ;;  %v10023_v26 = vld [vmem:[%s12473_s0 + $0x2c0] sm:$0xff]  }
 0x1a7   :  { %v8702_v48 = vld.sshfl [vmem:[#allocation2 + $0x80] sm:$0x5f pattern:$0x76325410]  ;;  %v1367_v50 = vcombine.low %v8700_v41, %v8701_v53  ;;  %v1368_v49 = vcombine.high %v8700_v41, %v8701_v53  ;;  %v1461_v53 = vsel %vm10891_vm0, %v1456_v51, %v1460_v25  ;;  %v10016_v41 = vld [vmem:[%s12473_s0 + $0x30] sm:$0xff]  }
 0x1a8   :  { %v1383_v56 = vcombine.low %v8702_v48, %v8703_v31  ;;  %v1384_v11 = vcombine.high %v8702_v48, %v8703_v31  ;;  %v1463_v58 = vshrl.u32 %v1351_v35, 16  ;;  %v1466_v20 = vshll.u32 %v1351_v35, 16  ;;  %9311 = vmatpush3.bf16.msra.mxu1 %v10004_v32  ;;  %9339 = vmatpush3.bf16.msra.mxu0 %v10005_v33  ;;  %v10017_v35 = vld [vmem:[%s12473_s0 + $0xb0] sm:$0xff]  }
 0x1a9   :  { %v1472_v63 = vshll.u32 %v1352_v43, 16  ;;  %v1477_v59 = vshrl.u32 %v1367_v50, 16  ;;  %v1480_v52 = vshll.u32 %v1367_v50, 16  ;;  %9312 = vmatprep.subr.bf16.mxu1 %v10006_v40  ;;  %9340 = vmatprep.subr.bf16.mxu0 %v10007_v34  ;;  %v1486_v12 = vshll.u32 %v1368_v49, 16  ;;  %v10018_v50 = vld [vmem:[%s12473_s0 + $0x78] sm:$0xff]  }
 0x1aa   :  { %v1465_v3 = vrot.slane %v1463_v58, 6  ;;  %v1468_v5 = vrot.slane %v1466_v20, 7  ;;  %v1491_v6 = vshrl.u32 %v1383_v56, 16  ;;  %v1494_v27 = vshll.u32 %v1383_v56, 16  ;;  %v10019_v49 = vld [vmem:[%s12473_s0 + $0xf8] sm:$0xff]  }
 0x1ab   :  { %v1479_v38 = vrot.slane %v1477_v59, 6  ;;  %v1482_v9 = vrot.slane %v1480_v52, 7  ;;  %v1500_v21 = vshll.u32 %v1384_v11, 16  ;;  %v1474_v24 = vrot.slane %v1472_v63, 7  ;;  %v10020_v59 = vld [vmem:[%s12473_s0 + $0x38] sm:$0xff]  }
 0x1ac   :  { %v1469_v17 = vor.u32 %v1468_v5, %v1465_v3  ;;  %v1493_v19 = vrot.slane %v1491_v6, 6  ;;  %v1496_v22 = vrot.slane %v1494_v27, 7  ;;  %9313 = vmatpush3.bf16.msra.mxu1 %v10008_v57  ;;  %9341 = vmatpush3.bf16.msra.mxu0 %v10009_v47  ;;  %v1488_v32 = vrot.slane %v1486_v12, 7  ;;  %v10021_v52 = vld [vmem:[%s12473_s0 + $0xb8] sm:$0xff]  }
 0x1ad   :  { %v1483_v60 = vor.u32 %v1482_v9, %v1479_v38  ;;  %9314 = vmatprep.subr.bf16.mxu1 %v10010_v62  ;;  %9342 = vmatprep.subr.bf16.mxu0 %v10011_v2  ;;  %v675_v33 = vpack.c.bf16 %v663_v1, %v663_v1  ;;  %v1502_v34 = vrot.slane %v1500_v21, 7  ;;  %v9220_v43 = vpack.c.bf16 %v692_v13, %v692_v13  ;;  %v8681_v1 = vld.sshfl [vmem:[#allocation2 + $0x58] sm:$0xf pattern:$0x76325410] }
 0x1ae   :  { %v1470_v14 = vrot.slane %v1469_v17, 2  ;;  %v1497_v0 = vor.u32 %v1496_v22, %v1493_v19  ;;  %v11075_v62 = vrot.slane %v8736_v46, %v10756_v54  ;;  %v11078_v2 = vrot.slane %v8737_v16, %v10756_v54  ;;  %v11080_v3 = vld.sshfl [vmem:[#allocation2 + $0x68] sm:$0xf pattern:$0x76325410] }
 0x1af   :  { %v1484_v31 = vrot.slane %v1483_v60, 2  ;;  %684 = vst [vmem:[#allocation2 + $0x94] sm:$0x3] %v675_v33  ;;  %v779_v56 = vshrl.u32 %v9220_v43, 16  ;;  %v782_v6 = vshll.u32 %v9220_v43, 16  ;;  %v1905_v38 = vrot.slane %v8739_v4, %v10756_v54  ;;  %v10022_v60 = vld [vmem:[%s12473_s0 + $0x240] sm:$0xff]  }
 0x1b0   :  { %v1475_v37 = vsel %vm10891_vm0, %v1470_v14, %v1474_v24  ;;  %v1498_v40 = vrot.slane %v1497_v0, 2  ;;  %9315 = vmatpush3.bf16.msra.mxu1 %v10012_v39  ;;  %9343 = vmatpush3.bf16.msra.mxu0 %v10013_v15  ;;  %v11085_v28 = vld.sshfl [vmem:[#allocation2 + $0x88] sm:$0xf pattern:$0x76325410]  ;;  %v1907_v21 = vcombine.high %v11075_v62, %v11061_v55  ;;  %v8741_v15 = vcombine.low %v8681_v1, %v11080_v3  ;;  %v10025_v43 = vld [vmem:[%s12473_s0 + $0x280] sm:$0xff]  }
 0x1b1   :  { %v1489_v57 = vsel %vm10891_vm0, %v1484_v31, %v1488_v32  ;;  %v1540_v47 = vcombine.low %v1461_v53, %v1475_v37  ;;  %v1541_v48 = vcombine.high %v1461_v53, %v1475_v37  ;;  %9316 = vmatprep.subr.bf16.mxu1 %v10014_v23  ;;  %9344 = vmatprep.subr.bf16.mxu0 %v10015_v29  ;;  %v781_v5 = vrot.slane %v779_v56, 7  ;;  %v814_v46 = vld [vmem:[#allocation2 + $0x90] sm:$0x7] }
 0x1b2   :  { %v1503_v51 = vsel %vm10891_vm0, %v1498_v40, %v1502_v34  ;;  %v8680_v9 = vld.sshfl [vmem:[#allocation2 + $0x50] sm:$0xf pattern:$0x76325410]  ;;  %v1909_v14 = vcombine.high %v11078_v2, %v1905_v38  ;;  %v1927_v31 = vrot.slane %v8741_v15, %v10756_v54  ;;  %v1906_v34 = vcombine.low %v11075_v62, %v11061_v55 }
 0x1b3   :  { %v1542_v11 = vcombine.low %v1489_v57, %v1503_v51  ;;  %v1550_v58 = vrot.slane %v1540_v47, %v10756_v54  ;;  %v1543_v20 = vcombine.high %v1489_v57, %v1503_v51  ;;  %v1557_v63 = vrot.slane %v1541_v48, %v10756_v54  ;;  %v11087_v12 = vld.sshfl [vmem:[#allocation2 + $0x70] sm:$0xf pattern:$0x76325410]  ;;  %v10027_v51 = vld [vmem:[%s12473_s0 + $0x2c8] sm:$0xff]  }
 0x1b4   :  { %9317 = vmatpush3.bf16.msra.mxu1 %v10016_v41  ;;  %9345 = vmatpush3.bf16.msra.mxu0 %v10017_v35  ;;  %v11089_v13 = vld.sshfl [vmem:[#allocation2 + $0x78] sm:$0xf pattern:$0x76325410]  ;;  %v784_v17 = vor.u32 %v782_v6, %v781_v5  ;;  %v1908_v41 = vcombine.low %v11078_v2, %v1905_v38  ;;  %v10024_v35 = vld [vmem:[%s12473_s0 + $0x200] sm:$0xff]   ;;  %v8792_v57 = vcombine.low %v10979_v30, %v11003_v18  ;;  %v10028_v30 = vld [vmem:[%s12473_s0 + $0x208] sm:$0xff]  }
 0x1b5   :  { %v1564_v27 = vrot.slane %v1542_v11, %v10756_v54  ;;  %v1571_v8 = vrot.slane %v1543_v20, %v10756_v54  ;;  %9318 = vmatprep.subr.bf16.mxu1 %v10018_v50  ;;  %9346 = vmatprep.subr.bf16.mxu0 %v10019_v49  ;;  %v11093_v39 = vld.sshfl [vmem:[#allocation2 + $0x60] sm:$0xf pattern:$0x76325410]  ;;  %v8743_v0 = vcombine.low %v11089_v13, %v11085_v28  ;;  %v10026_v49 = vld [vmem:[%s12473_s0 + $0x248] sm:$0xff]   ;;  %v10032_v5 = vld [vmem:[%s12473_s0 + $0x210] sm:$0xff]  }
 0x1b6   :  { %v11102_v16 = vld.sshfl [vmem:[#allocation2 + $0x80] sm:$0xf pattern:$0x76325410]  ;;  %v815_v29 = vsel %vm10815_vm9, %v784_v17, %v814_v46  ;;  %v8740_v4 = vcombine.low %v8680_v9, %v11093_v39  ;;  %v8793_v55 = vcombine.low %v11005_v61, %v11032_v10  ;;  %v10029_v18 = vld [vmem:[%s12473_s0 + $0x288] sm:$0xff]   ;;  %v10030_v61 = vld [vmem:[%s12473_s0 + $0x250] sm:$0xff]  }
 0x1b7   :  { %v1573_v19 = vcombine.high %v1550_v58, %v1564_v27  ;;  %v1575_v22 = vcombine.high %v1557_v63, %v1571_v8  ;;  %v1572_v23 = vcombine.low %v1550_v58, %v1564_v27  ;;  %v1574_v25 = vcombine.low %v1557_v63, %v1571_v8  ;;  %816 = vst [vmem:[#allocation2 + $0x90] sm:$0x7] %v815_v29  ;;  %v8782_v33 = vld.sshfl [vmem:[#allocation2 + $0x40] sm:$0xf pattern:$0x76325410] }
 0x1b8   :  { %9319 = vmatpush3.bf16.msra.mxu1 %v10020_v59  ;;  %9347 = vmatpush3.bf16.msra.mxu0 %v10021_v52  ;;  %v8742_v24 = vcombine.low %v11087_v12, %v11102_v16  ;;  %v1941_v32 = vrot.slane %v8743_v0, %v10756_v54  ;;  %v8783_v37 = vld.sshfl [vmem:[#allocation2 + $0x48] sm:$0xf pattern:$0x76325410]  ;;  %v1920_v40 = vrot.slane %v8740_v4, %v10756_v54  ;;  %v10033_v6 = vld [vmem:[%s12473_s0 + $0x290] sm:$0xff]   ;;  %v10034_v46 = vld [vmem:[%s12473_s0 + $0x258] sm:$0xff]  }
 0x1b9   :  { %1816 = vmatprep.mubr.bf16.mxu1 %v1573_v19  ;;  %1865 = vmatprep.mubr.bf16.mxu0 %v1575_v22  ;;  %v8794_v47 = vcombine.low %v11017_v7, %v8782_v33  ;;  %v8795_v56 = vcombine.low %v11007_v45, %v8783_v37  ;;  %v11144_v7 = vrot.slane %v8792_v57, %v10756_v54  ;;  %v10031_v45 = vld [vmem:[%s12473_s0 + $0x2d0] sm:$0xff]   ;;  %v11161_v20 = vld.sshfl [vmem:[#allocation2 + $0x18] sm:$0x5f pattern:$0x76325410]  ;;  %v10039_v29 = vld [vmem:[%s12473_s0 + $0x2e0] sm:$0xff]  }
 0x1ba   :  { %1817 = vmatmul.mubr.bf16.gmra.mrb[4].mxu1 %v1572_v23  ;;  %1866 = vmatmul.mubr.bf16.gmra.mrb[20].mxu0 %v1574_v25  ;;  %v1934_v53 = vrot.slane %v8742_v24, %v10756_v54  ;;  %v1945_v50 = vcombine.high %v1927_v31, %v1941_v32  ;;  %v11156_v11 = vrot.slane %v8793_v55, %v10756_v54  ;;  %v11163_v63 = vld.sshfl [vmem:[#allocation2 + $0x20] sm:$0x5f pattern:$0x76325410]  ;;  %v10035_v9 = vld [vmem:[%s12473_s0 + $0x2d8] sm:$0xff]   ;;  %v10044_v55 = vld [vmem:[%s12473_s0 + $0x228] sm:$0xff]  }
 0x1bb   :  { %2178 = vmatprep.mubr.bf16.mxu1 %v1907_v21  ;;  %2227 = vmatprep.mubr.bf16.mxu0 %v1909_v14  ;;  %v11153_v10 = vrot.slane %v8794_v47, %v10756_v54  ;;  %v11159_v58 = vrot.slane %v8795_v56, %v10756_v54  ;;  %v11165_v59 = vld.sshfl [vmem:[#allocation2 + $0x48] sm:$0x5f pattern:$0x76325410]  ;;  %v1944_v1 = vcombine.low %v1927_v31, %v1941_v32  ;;  %v10036_v25 = vld [vmem:[%s12473_s0 + $0x218] sm:$0xff]   ;;  %v10040_v37 = vld [vmem:[%s12473_s0 + $0x220] sm:$0xff]  }
 0x1bc   :  { %9360 = vmatprep.subr.bf16.mxu1 %v10022_v60  ;;  %9388 = vmatprep.subr.bf16.mxu0 %v10023_v26  ;;  %v1943_v48 = vcombine.high %v1920_v40, %v1934_v53  ;;  %v11167_v52 = vld.sshfl [vmem:[#allocation2 + $0x10] sm:$0x5f pattern:$0x76325410]  ;;  %v1942_v2 = vcombine.low %v1920_v40, %v1934_v53  ;;  %v10037_v60 = vld [vmem:[%s12473_s0 + $0x298] sm:$0xff]   ;;  %v10038_v26 = vld [vmem:[%s12473_s0 + $0x260] sm:$0xff]  }
 0x1bd   :  { %v11169_v62 = vld.sshfl [vmem:[#allocation2 + $0x38] sm:$0x5f pattern:$0x76325410]  ;;  %v2429_v8 = vcombine.high %v11144_v7, %v11153_v10  ;;  %v2431_v38 = vcombine.high %v11156_v11, %v11159_v58  ;;  %v2816_v22 = vcombine.low %v11167_v52, %v11161_v20  ;;  %v10041_v40 = vld [vmem:[%s12473_s0 + $0x2a0] sm:$0xff]   ;;  %v10045_v56 = vld [vmem:[%s12473_s0 + $0x2a8] sm:$0xff]  }
 0x1be   :  { %v11177_v27 = vld.sshfl [vmem:[#allocation2 + $0x40] sm:$0x5f pattern:$0x76325410] }
 0x1bf   :  { %v11189_v17 = vld.sshfl [vmem:[#allocation2 + $0x28] sm:$0x5f pattern:$0x76325410]  ;;  %v2864_v23 = vcombine.low %v11177_v27, %v11165_v59  ;;  %v2931_v14 = vshrl.u32 %v2816_v22, 16  ;;  %v2934_v24 = vshll.u32 %v2816_v22, 16 }
 0x1c0   :  { %v11191_v19 = vld.sshfl [vmem:[#allocation2 + $0x30] sm:$0x5f pattern:$0x76325410]  ;;  %v2832_v21 = vcombine.low %v11163_v63, %v11189_v17 }
 0x1c1   :  { %v2848_v15 = vcombine.low %v11191_v19, %v11169_v62  ;;  %v2973_v32 = vshrl.u32 %v2864_v23, 16  ;;  %v2976_v33 = vshll.u32 %v2864_v23, 16 }
 0x1c2   :  { %2179 = vmatmul.mubr.bf16.vlgmr.msra.gmra.mrb[8].mxu1 %v1906_v34  ;;  %2228 = vmatmul.mubr.bf16.vlgmr.msra.gmra.mrb[24].mxu0 %v1908_v41  ;;  %v2945_v0 = vshrl.u32 %v2832_v21, 16  ;;  %v2948_v4 = vshll.u32 %v2832_v21, 16  ;;  %v10042_v34 = vld [vmem:[%s12473_s0 + $0x268] sm:$0xff]  }
 0x1c3   :  { %2186 = vmatprep.mubr.bf16.mxu1 %v1943_v48  ;;  %2235 = vmatprep.mubr.bf16.mxu0 %v1945_v50  ;;  %v2959_v53 = vshrl.u32 %v2848_v15, 16  ;;  %v2962_v31 = vshll.u32 %v2848_v15, 16  ;;  %v10043_v41 = vld [vmem:[%s12473_s0 + $0x2e8] sm:$0xff]   ;;  %v8796_v15 = vcombine.low %v11093_v39, %v11087_v12  ;;  %v10054_v12 = vld [vmem:[%s12473_s0 + $0x340] sm:$0xff]  }
 0x1c4   :  { %9361 = vmatpush3.bf16.msra.mxu1 %v10024_v35  ;;  %9389 = vmatpush3.bf16.msra.mxu0 %v10025_v43  ;;  %v2933_v35 = vrot.slane %v2931_v14, 6  ;;  %v2936_v43 = vrot.slane %v2934_v24, 7  ;;  %v2947_v57 = vrot.slane %v2945_v0, 6  ;;  %v2950_v47 = vrot.slane %v2948_v4, 7  ;;  %v10052_v14 = vld [vmem:[%s12473_s0 + $0x238] sm:$0xff]   ;;  %v10055_v39 = vld [vmem:[%s12473_s0 + $0x3c0] sm:$0xff]  }
 0x1c5   :  { %9362 = vmatprep.subr.bf16.mxu1 %v10026_v49  ;;  %9390 = vmatprep.subr.bf16.mxu0 %v10027_v51  ;;  %v2961_v48 = vrot.slane %v2959_v53, 6  ;;  %v2964_v50 = vrot.slane %v2962_v31, 7  ;;  %v2975_v49 = vrot.slane %v2973_v32, 6  ;;  %v2978_v51 = vrot.slane %v2976_v33, 7 }
 0x1c6   :  { %v11282_v53 = vrot.slane %v8796_v15, %v10756_v54 }
 0x1c8   :  { %9363 = vmatpush3.bf16.msra.mxu1 %v10028_v30  ;;  %9391 = vmatpush3.bf16.msra.mxu0 %v10029_v18  ;;  %v2817_v30 = vcombine.high %v11167_v52, %v11161_v20  ;;  %v2833_v18 = vcombine.high %v11163_v63, %v11189_v17  ;;  %v8791_v20 = vld.sshfl [vmem:[#allocation2 + $0x98] sm:$0xf pattern:$0x76325410]  ;;  %v2937_v52 = vor.u32 %v2936_v43, %v2933_v35 }
 0x1c9   :  { %9364 = vmatprep.subr.bf16.mxu1 %v10030_v61  ;;  %9392 = vmatprep.subr.bf16.mxu0 %v10031_v45  ;;  %v10046_v61 = vld [vmem:[%s12473_s0 + $0x270] sm:$0xff]   ;;  %v8797_v17 = vcombine.low %v11080_v3, %v11089_v13  ;;  %v10053_v3 = vld [vmem:[%s12473_s0 + $0x2b8] sm:$0xff]   ;;  %v2428_v43 = vcombine.low %v11144_v7, %v11153_v10  ;;  %v10057_v7 = vld [vmem:[%s12473_s0 + $0x380] sm:$0xff]  }
 0x1ca   :  { %2187 = vmatmul.mubr.bf16.gmra.mrb[12].mxu1 %v1942_v2  ;;  %2236 = vmatmul.mubr.bf16.gmra.mrb[28].mxu0 %v1944_v1  ;;  %v10047_v45 = vld [vmem:[%s12473_s0 + $0x2f0] sm:$0xff]   ;;  %v2849_v2 = vcombine.high %v11191_v19, %v11169_v62  ;;  %v2865_v1 = vcombine.high %v11177_v27, %v11165_v59  ;;  %v2940_v62 = vshll.u32 %v2817_v30, 16  ;;  %v10050_v59 = vld [vmem:[%s12473_s0 + $0x278] sm:$0xff]   ;;  %v8799_v19 = vcombine.low %v11085_v28, %v8791_v20 }
 0x1cb   :  { %2700 = vmatprep.mubr.bf16.mxu1 %v2429_v8  ;;  %2749 = vmatprep.mubr.bf16.mxu0 %v2431_v38  ;;  %v8790_v63 = vld.sshfl [vmem:[#allocation2 + $0x90] sm:$0xf pattern:$0x76325410]  ;;  %v2979_v8 = vor.u32 %v2978_v51, %v2975_v49  ;;  %v10051_v27 = vld [vmem:[%s12473_s0 + $0x2f8] sm:$0xff]   ;;  %v10056_v49 = vld [vmem:[%s12473_s0 + $0x300] sm:$0xff]  }
 0x1cc   :  { %9365 = vmatpush3.bf16.msra.mxu1 %v10032_v5  ;;  %9393 = vmatpush3.bf16.msra.mxu0 %v10033_v6  ;;  %v2951_v5 = vor.u32 %v2950_v47, %v2947_v57  ;;  %v2965_v6 = vor.u32 %v2964_v50, %v2961_v48  ;;  %v10048_v38 = vld [vmem:[%s12473_s0 + $0x230] sm:$0xff]   ;;  %v2968_v22 = vshll.u32 %v2849_v2, 16  ;;  %v2982_v21 = vshll.u32 %v2865_v1, 16 }
 0x1cd   :  { %9366 = vmatprep.subr.bf16.mxu1 %v10034_v46  ;;  %9394 = vmatprep.subr.bf16.mxu0 %v10035_v9  ;;  %v10049_v46 = vld [vmem:[%s12473_s0 + $0x2b0] sm:$0xff]   ;;  %v2954_v9 = vshll.u32 %v2833_v18, 16  ;;  %v8798_v23 = vcombine.low %v11102_v16, %v8790_v63  ;;  %v2942_v28 = vrot.slane %v2940_v62, 7  ;;  %v11276_v16 = vrot.slane %v8797_v17, %v10756_v54  ;;  %v10061_v63 = vld [vmem:[%s12473_s0 + $0x388] sm:$0xff]  }
 0x1ce   :  { %v11279_v24 = vrot.slane %v8799_v19, %v10756_v54  ;;  %v2970_v0 = vrot.slane %v2968_v22, 7  ;;  %v2984_v4 = vrot.slane %v2982_v21, 7  ;;  %v11299_v35 = vld.sshfl [vmem:[#allocation2 + $0x98] sm:$0x5f pattern:$0x76325410]  ;;  %v2430_v48 = vcombine.low %v11156_v11, %v11159_v58 }
 0x1cf   :  { %v2956_v13 = vrot.slane %v2954_v9, 7  ;;  %v11285_v31 = vrot.slane %v8798_v23, %v10756_v54  ;;  %v11303_v57 = vld.sshfl [vmem:[#allocation2 + $0x70] sm:$0x5f pattern:$0x76325410]  ;;  %v10058_v11 = vld [vmem:[%s12473_s0 + $0x348] sm:$0xff]  }
 0x1d0   :  { %9367 = vmatpush3.bf16.msra.mxu1 %v10036_v25  ;;  %9395 = vmatpush3.bf16.msra.mxu0 %v10037_v60  ;;  %v2938_v25 = vrot.slane %v2937_v52, 2  ;;  %v2952_v60 = vrot.slane %v2951_v5, 2  ;;  %v11305_v47 = vld.sshfl [vmem:[#allocation2 + $0x78] sm:$0x5f pattern:$0x76325410]  ;;  %v2467_v50 = vcombine.high %v11276_v16, %v11279_v24 }
 0x1d1   :  { %9368 = vmatprep.subr.bf16.mxu1 %v10038_v26  ;;  %9396 = vmatprep.subr.bf16.mxu0 %v10039_v29  ;;  %v2966_v26 = vrot.slane %v2965_v6, 2  ;;  %v2980_v29 = vrot.slane %v2979_v8, 2  ;;  %v11317_v51 = vld.sshfl [vmem:[#allocation2 + $0x90] sm:$0x5f pattern:$0x76325410]  ;;  %v2896_v1 = vcombine.low %v11303_v57, %v11305_v47 }
 0x1d2   :  { %v2943_v32 = vsel %vm10891_vm0, %v2938_v25, %v2942_v28  ;;  %v2957_v33 = vsel %vm10891_vm0, %v2952_v60, %v2956_v13  ;;  %v10059_v58 = vld [vmem:[%s12473_s0 + $0x3c8] sm:$0xff]   ;;  %v2928_v52 = vcombine.low %v11317_v51, %v11299_v35  ;;  %v10062_v8 = vld [vmem:[%s12473_s0 + $0x350] sm:$0xff]   ;;  %v2464_v25 = vcombine.low %v11282_v53, %v11285_v31  ;;  %v10066_v28 = vld [vmem:[%s12473_s0 + $0x358] sm:$0xff]  }
 0x1d3   :  { %v3042_v10 = vcombine.low %v2943_v32, %v2957_v33  ;;  %v3043_v30 = vcombine.high %v2943_v32, %v2957_v33  ;;  %v10060_v5 = vld [vmem:[%s12473_s0 + $0x308] sm:$0xff]   ;;  %v3001_v17 = vshrl.u32 %v2896_v1, 16  ;;  %v3004_v19 = vshll.u32 %v2896_v1, 16  ;;  %v10067_v13 = vld [vmem:[%s12473_s0 + $0x3d8] sm:$0xff]  }
 0x1d4   :  { %9369 = vmatpush3.bf16.msra.mxu1 %v10040_v37  ;;  %9397 = vmatpush3.bf16.msra.mxu0 %v10041_v40  ;;  %v11291_v37 = vld.sshfl [vmem:[#allocation2 + $0x68] sm:$0x5f pattern:$0x76325410]  ;;  %v2971_v40 = vsel %vm10891_vm0, %v2966_v26, %v2970_v0  ;;  %v3029_v15 = vshrl.u32 %v2928_v52, 16  ;;  %v3032_v23 = vshll.u32 %v2928_v52, 16  ;;  %v2466_v60 = vcombine.low %v11276_v16, %v11279_v24 }
 0x1d5   :  { %9370 = vmatprep.subr.bf16.mxu1 %v10042_v34  ;;  %9398 = vmatprep.subr.bf16.mxu0 %v10043_v41  ;;  %v2985_v34 = vsel %vm10891_vm0, %v2980_v29, %v2984_v4  ;;  %v11297_v41 = vld.sshfl [vmem:[#allocation2 + $0x88] sm:$0x5f pattern:$0x76325410]  ;;  %v11346_v6 = vrot.slane %v3042_v10, %v10756_v54  ;;  %v11358_v62 = vrot.slane %v3043_v30, %v10756_v54  ;;  %v10064_v26 = vld [vmem:[%s12473_s0 + $0x310] sm:$0xff]   ;;  %v3003_v16 = vrot.slane %v3001_v17, 6 }
 0x1d6   :  { %v3045_v18 = vcombine.high %v2971_v40, %v2985_v34  ;;  %v10065_v29 = vld [vmem:[%s12473_s0 + $0x390] sm:$0xff]   ;;  %v3006_v24 = vrot.slane %v3004_v19, 7  ;;  %v10068_v32 = vld [vmem:[%s12473_s0 + $0x318] sm:$0xff]   ;;  %v10077_v1 = vld [vmem:[%s12473_s0 + $0x3a8] sm:$0xff]  }
 0x1d7   :  { %v10069_v33 = vld [vmem:[%s12473_s0 + $0x398] sm:$0xff]   ;;  %v10079_v52 = vld [vmem:[%s12473_s0 + $0x3f0] sm:$0xff]  }
 0x1d8   :  { %9371 = vmatpush3.bf16.msra.mxu1 %v10044_v55  ;;  %9399 = vmatpush3.bf16.msra.mxu0 %v10045_v56  ;;  %v2465_v55 = vcombine.high %v11282_v53, %v11285_v31  ;;  %v3044_v56 = vcombine.low %v2971_v40, %v2985_v34  ;;  %v11361_v9 = vrot.slane %v3045_v18, %v10756_v54  ;;  %v3031_v53 = vrot.slane %v3029_v15, 6  ;;  %v10070_v34 = vld [vmem:[%s12473_s0 + $0x360] sm:$0xff]   ;;  %v10082_v15 = vld [vmem:[%s12473_s0 + $0x378] sm:$0xff]  }
 0x1d9   :  { %9372 = vmatprep.subr.bf16.mxu1 %v10046_v61  ;;  %9400 = vmatprep.subr.bf16.mxu0 %v10047_v45  ;;  %v11327_v61 = vld.sshfl [vmem:[#allocation2 + $0x60] sm:$0x5f pattern:$0x76325410]  ;;  %v3034_v31 = vrot.slane %v3032_v23, 7  ;;  %v10083_v23 = vld [vmem:[%s12473_s0 + $0x3f8] sm:$0xff]  }
 0x1da   :  { %v11329_v45 = vld.sshfl [vmem:[#allocation2 + $0x80] sm:$0x5f pattern:$0x76325410]  ;;  %v2880_v2 = vcombine.low %v11327_v61, %v11291_v37  ;;  %v2881_v40 = vcombine.high %v11327_v61, %v11291_v37 }
 0x1db   :  { %v2912_v20 = vcombine.low %v11329_v45, %v11297_v41 }
 0x1dc   :  { %9373 = vmatpush3.bf16.msra.mxu1 %v10048_v38  ;;  %9401 = vmatpush3.bf16.msra.mxu0 %v10049_v46  ;;  %v10063_v38 = vld [vmem:[%s12473_s0 + $0x3d0] sm:$0xff]   ;;  %v11355_v46 = vrot.slane %v3044_v56, %v10756_v54 }
 0x1dd   :  { %9374 = vmatprep.subr.bf16.mxu1 %v10050_v59  ;;  %9402 = vmatprep.subr.bf16.mxu0 %v10051_v27  ;;  %v2987_v59 = vshrl.u32 %v2880_v2, 16  ;;  %v2990_v27 = vshll.u32 %v2880_v2, 16  ;;  %v3015_v22 = vshrl.u32 %v2912_v20, 16  ;;  %v3018_v21 = vshll.u32 %v2912_v20, 16  ;;  %v10076_v2 = vld [vmem:[%s12473_s0 + $0x328] sm:$0xff]   ;;  %v10078_v20 = vld [vmem:[%s12473_s0 + $0x370] sm:$0xff]  }
 0x1df   :  { %v3017_v0 = vrot.slane %v3015_v22, 6  ;;  %v3020_v4 = vrot.slane %v3018_v21, 7  ;;  %v10080_v22 = vld [vmem:[%s12473_s0 + $0x330] sm:$0xff]  }
 0x1e0   :  { %9375 = vmatpush3.bf16.msra.mxu1 %v10052_v14  ;;  %9403 = vmatpush3.bf16.msra.mxu0 %v10053_v3  ;;  %v3075_v14 = vcombine.high %v11346_v6, %v11355_v46  ;;  %v3077_v3 = vcombine.high %v11358_v62, %v11361_v9  ;;  %v10081_v21 = vld [vmem:[%s12473_s0 + $0x3b0] sm:$0xff]  }
 0x1e1   :  { %9416 = vmatprep.subr.bf16.mxu1 %v10054_v12  ;;  %9444 = vmatprep.subr.bf16.mxu0 %v10055_v39  ;;  %v2989_v12 = vrot.slane %v2987_v59, 6  ;;  %v2992_v39 = vrot.slane %v2990_v27, 7  ;;  %v3021_v10 = vor.u32 %v3020_v4, %v3017_v0 }
 0x1e3   :  { %2701 = vmatmul.mubr.bf16.vlgmr.msra.gmra.mrb[16].mxu1 %v2428_v43  ;;  %2750 = vmatmul.mubr.bf16.vlgmr.msra.gmra.mrb[32].mxu0 %v2430_v48  ;;  %v10071_v43 = vld [vmem:[%s12473_s0 + $0x3e0] sm:$0xff]   ;;  %v2897_v48 = vcombine.high %v11303_v57, %v11305_v47  ;;  %v2993_v37 = vor.u32 %v2992_v39, %v2989_v12  ;;  %v2996_v47 = vshll.u32 %v2881_v40, 16  ;;  %v3022_v61 = vrot.slane %v3021_v10, 2 }
 0x1e4   :  { %2708 = vmatprep.mubr.bf16.mxu1 %v2465_v55  ;;  %2757 = vmatprep.mubr.bf16.mxu0 %v2467_v50  ;;  %v2913_v50 = vcombine.high %v11329_v45, %v11297_v41  ;;  %v3035_v55 = vor.u32 %v3034_v31, %v3031_v53  ;;  %v10073_v57 = vld [vmem:[%s12473_s0 + $0x3a0] sm:$0xff]   ;;  %v10074_v41 = vld [vmem:[%s12473_s0 + $0x368] sm:$0xff]  }
 0x1e5   :  { %9417 = vmatpush3.bf16.msra.mxu1 %v10056_v49  ;;  %9445 = vmatpush3.bf16.msra.mxu0 %v10057_v7  ;;  %v2929_v49 = vcombine.high %v11317_v51, %v11299_v35  ;;  %v3007_v7 = vor.u32 %v3006_v24, %v3003_v16  ;;  %v10075_v35 = vld [vmem:[%s12473_s0 + $0x3e8] sm:$0xff]   ;;  %v3010_v51 = vshll.u32 %v2897_v48, 16  ;;  %v2994_v30 = vrot.slane %v2993_v37, 2  ;;  %v3456_v48 = vld [vmem:[#allocation3 + $0x1c] sm:$0x1] }
 0x1e6   :  { %9418 = vmatprep.subr.bf16.mxu1 %v10058_v11  ;;  %9446 = vmatprep.subr.bf16.mxu0 %v10059_v58  ;;  %v10072_v11 = vld [vmem:[%s12473_s0 + $0x320] sm:$0xff]   ;;  %v3024_v58 = vshll.u32 %v2913_v50, 16  ;;  %v3036_v45 = vrot.slane %v3035_v55, 2  ;;  %v3074_v16 = vcombine.low %v11346_v6, %v11355_v46  ;;  %v3076_v24 = vcombine.low %v11358_v62, %v11361_v9  ;;  %v3441_v46 = vld [vmem:[#allocation3 + $0x8] sm:$0x1] }
 0x1e7   :  { %v3038_v56 = vshll.u32 %v2929_v49, 16  ;;  %v3008_v18 = vrot.slane %v3007_v7, 2  ;;  %v3444_v62 = vld [vmem:[#allocation3 + $0xc] sm:$0x1]  ;;  %v3459_v50 = vld [vmem:[#allocation3 + $0x20] sm:$0x1] }
 0x1e8   :  { %v3445_v40 = vsel %vm11462_vm4, 0, %v3444_v62  ;;  %v3457_v37 = vsel %vm11462_vm4, 0, %v3456_v48  ;;  %v3460_v7 = vsel %vm11462_vm4, 0, %v3459_v50  ;;  %v3462_v10 = vld [vmem:[#allocation3 + $0x24] sm:$0x1] }
 0x1e9   :  { %9419 = vmatpush3.bf16.msra.mxu1 %v10060_v5  ;;  %9447 = vmatpush3.bf16.msra.mxu0 %v10061_v63  ;;  %v2998_v5 = vrot.slane %v2996_v47, 7  ;;  %v3012_v63 = vrot.slane %v3010_v51, 7  ;;  %3446 = vst [vmem:[#allocation3 + $0xc] sm:$0x1] %v3445_v40  ;;  %v3465_v55 = vld [vmem:[#allocation3 + $0x28] sm:$0x1] }
 0x1ea   :  { %9420 = vmatprep.subr.bf16.mxu1 %v10062_v8  ;;  %9448 = vmatprep.subr.bf16.mxu0 %v10063_v38  ;;  %v3026_v8 = vrot.slane %v3024_v58, 7  ;;  %v3040_v38 = vrot.slane %v3038_v56, 7  ;;  %3458 = vst [vmem:[#allocation3 + $0x1c] sm:$0x1] %v3457_v37  ;;  %3461 = vst [vmem:[#allocation3 + $0x20] sm:$0x1] %v3460_v7 }
 0x1eb   :  { %2709 = vmatmul.mubr.bf16.gmra.mrb[20].mxu1 %v2464_v25  ;;  %2758 = vmatmul.mubr.bf16.gmra.mrb[36].mxu0 %v2466_v60  ;;  %v2999_v59 = vsel %vm10891_vm0, %v2994_v30, %v2998_v5  ;;  %v3013_v27 = vsel %vm10891_vm0, %v3008_v18, %v3012_v63  ;;  %v3477_v47 = vld [vmem:[#allocation3 + $0x4] sm:$0x4]  ;;  %v3480_v30 = vld [vmem:[#allocation3 + $0x8] sm:$0x4] }
 0x1ec   :  { %3346 = vmatprep.mubr.bf16.mxu1 %v3075_v14  ;;  %3395 = vmatprep.mubr.bf16.mxu0 %v3077_v3  ;;  %v3027_v17 = vsel %vm10891_vm0, %v3022_v61, %v3026_v8  ;;  %v3041_v19 = vsel %vm10891_vm0, %v3036_v45, %v3040_v38  ;;  %v3078_v25 = vcombine.low %v2999_v59, %v3013_v27  ;;  %v10084_v14 = vld [vmem:[%s12473_s0 + $0x338] sm:$0xff]   ;;  %v3478_v56 = vsel %vm11475_vm6, 0, %v3477_v47  ;;  %v3486_v8 = vld [vmem:[#allocation3 + $0x10] sm:$0x4] }
 0x1ed   :  { %9421 = vmatpush3.bf16.msra.mxu1 %v10064_v26  ;;  %9449 = vmatpush3.bf16.msra.mxu0 %v10065_v29  ;;  %v3080_v60 = vcombine.low %v3027_v17, %v3041_v19  ;;  %v3079_v26 = vcombine.high %v2999_v59, %v3013_v27  ;;  %v3081_v29 = vcombine.high %v3027_v17, %v3041_v19  ;;  %v10085_v3 = vld [vmem:[%s12473_s0 + $0x3b8] sm:$0xff]   ;;  %v3487_v17 = vsel %vm11475_vm6, 0, %v3486_v8 }
 0x1ee   :  { %9422 = vmatprep.subr.bf16.mxu1 %v10066_v28  ;;  %9450 = vmatprep.subr.bf16.mxu0 %v10067_v13  ;;  %v3088_v28 = vrot.slane %v3078_v25, %v10756_v54  ;;  %3479 = vst [vmem:[#allocation3 + $0x4] sm:$0x4] %v3478_v56  ;;  %v3495_v19 = vld [vmem:[#allocation3 + $0x1c] sm:$0x4]  ;;  %3488 = vst [vmem:[#allocation3 + $0x10] sm:$0x4] %v3487_v17 }
 0x1ef   :  { %v3102_v13 = vrot.slane %v3080_v60, %v10756_v54  ;;  %v3095_v12 = vrot.slane %v3079_v26, %v10756_v54  ;;  %v3109_v39 = vrot.slane %v3081_v29, %v10756_v54  ;;  %v3504_v25 = vld [vmem:[#allocation3 + $0x28] sm:$0x4] }
 0x1f0   :  { %v3505_v29 = vsel %vm11475_vm6, 0, %v3504_v25 }
 0x1f1   :  { %9423 = vmatpush3.bf16.msra.mxu1 %v10068_v32  ;;  %9451 = vmatpush3.bf16.msra.mxu0 %v10069_v33  ;;  %v3111_v0 = vcombine.high %v3088_v28, %v3102_v13  ;;  %v3113_v4 = vcombine.high %v3095_v12, %v3109_v39  ;;  %v3110_v53 = vcombine.low %v3088_v28, %v3102_v13  ;;  %v3438_v32 = vld [vmem:[#allocation3 + $0x4] sm:$0x1]  ;;  %v3442_v33 = vsel %vm11462_vm4, 0, %v3441_v46 }
 0x1f2   :  { %9424 = vmatprep.subr.bf16.mxu1 %v10070_v34  ;;  %9452 = vmatprep.subr.bf16.mxu0 %v10071_v43  ;;  %v3112_v31 = vcombine.low %v3095_v12, %v3109_v39  ;;  %v3439_v9 = vsel %vm11462_vm4, 0, %v3438_v32  ;;  %v3447_v34 = vld [vmem:[#allocation3 + $0x10] sm:$0x1]  ;;  %3443 = vst [vmem:[#allocation3 + $0x8] sm:$0x1] %v3442_v33 }
 0x1f3   :  { %3440 = vst [vmem:[#allocation3 + $0x4] sm:$0x1] %v3439_v9  ;;  %v3448_v43 = vsel %vm11462_vm4, 0, %v3447_v34  ;;  %3506 = vst [vmem:[#allocation3 + $0x28] sm:$0x4] %v3505_v29 }
 0x1f4   :  { %3449 = vst [vmem:[#allocation3 + $0x10] sm:$0x1] %v3448_v43 }
 0x1f5   :  { %9425 = vmatpush3.bf16.msra.mxu1 %v10072_v11  ;;  %9453 = vmatpush3.bf16.msra.mxu0 %v10073_v57 }
 0x1f6   :  { %9426 = vmatprep.subr.bf16.mxu1 %v10074_v41  ;;  %9454 = vmatprep.subr.bf16.mxu0 %v10075_v35  ;;  %v3463_v41 = vsel %vm11462_vm4, 0, %v3462_v10  ;;  %v3466_v35 = vsel %vm11462_vm4, 0, %v3465_v55 }
 0x1f7   :  { %3464 = vst [vmem:[#allocation3 + $0x24] sm:$0x1] %v3463_v41  ;;  %3467 = vst [vmem:[#allocation3 + $0x28] sm:$0x1] %v3466_v35 }
 0x1f9   :  { %9427 = vmatpush3.bf16.msra.mxu1 %v10076_v2  ;;  %9455 = vmatpush3.bf16.msra.mxu0 %v10077_v1  ;;  %v3481_v1 = vsel %vm11475_vm6, 0, %v3480_v30 }
 0x1fa   :  { %9428 = vmatprep.subr.bf16.mxu1 %v10078_v20  ;;  %9456 = vmatprep.subr.bf16.mxu0 %v10079_v52  ;;  %v3483_v20 = vld [vmem:[#allocation3 + $0xc] sm:$0x4]  ;;  %3482 = vst [vmem:[#allocation3 + $0x8] sm:$0x4] %v3481_v1 }
 0x1fb   :  { %v3484_v63 = vsel %vm11475_vm6, 0, %v3483_v20 }
 0x1fc   :  { %3485 = vst [vmem:[#allocation3 + $0xc] sm:$0x4] %v3484_v63 }
 0x1fd   :  { %9429 = vmatpush3.bf16.msra.mxu1 %v10080_v22  ;;  %9457 = vmatpush3.bf16.msra.mxu0 %v10081_v21  ;;  %v3498_v22 = vld [vmem:[#allocation3 + $0x20] sm:$0x4]  ;;  %v3496_v21 = vsel %vm11475_vm6, 0, %v3495_v19 }
 0x1fe   :  { %9430 = vmatprep.subr.bf16.mxu1 %v10082_v15  ;;  %9458 = vmatprep.subr.bf16.mxu0 %v10083_v23  ;;  %v3499_v15 = vsel %vm11475_vm6, 0, %v3498_v22  ;;  %v3501_v23 = vld [vmem:[#allocation3 + $0x24] sm:$0x4]  ;;  %3497 = vst [vmem:[#allocation3 + $0x1c] sm:$0x4] %v3496_v21 }
 0x1ff   :  { %3500 = vst [vmem:[#allocation3 + $0x20] sm:$0x4] %v3499_v15  ;;  %v3502_v26 = vsel %vm11475_vm6, 0, %v3501_v23 }
 0x200   :  { %3503 = vst [vmem:[#allocation3 + $0x24] sm:$0x4] %v3502_v26 }
 0x201   :  { %9431 = vmatpush3.bf16.msra.mxu1 %v10084_v14  ;;  %9459 = vmatpush3.bf16.msra.mxu0 %v10085_v3 }
 0x204   :  { %3347 = vmatmul.mubr.bf16.vlgmr.msra.gmra.mrb[24].mxu1 %v3074_v16  ;;  %3396 = vmatmul.mubr.bf16.vlgmr.msra.gmra.mrb[40].mxu0 %v3076_v24 }
 0x205   :  { %3354 = vmatprep.mubr.bf16.mxu1 %v3111_v0  ;;  %3403 = vmatprep.mubr.bf16.mxu0 %v3113_v4 }
 0x20c   :  { %3355 = vmatmul.mubr.bf16.gmra.mrb[28].mxu1 %v3110_v53  ;;  %3404 = vmatmul.mubr.bf16.gmra.mrb[44].mxu0 %v3112_v31 }
 0x26e   :  { %v9264_v11 = vpop.f32.mrb[0].mxu1  ;;  %v9292_v57 = vpop.f32.mrb[16].mxu0 }
 0x26f   :  { %v9265_v51 = vpop.f32.mrb[1].mxu1  ;;  %v9293_v58 = vpop.f32.mrb[17].mxu0 }
 0x270   :  { %v9266_v18 = vadd.f32 %v9265_v51, %v9264_v11  ;;  %v9294_v61 = vadd.f32 %v9293_v58, %v9292_v57  ;;  %v9267_v45 = vpop.f32.mrb[2].mxu1  ;;  %v9295_v2 = vpop.f32.mrb[18].mxu0 }
 0x271   :  { %v9268_v52 = vpop.f32.mrb[3].mxu1  ;;  %v9296_v5 = vpop.f32.mrb[19].mxu0 }
 0x272   :  { %v1860_v38 = vadd.f32 %v9294_v61, %v9266_v18  ;;  %v9269_v59 = vadd.f32 %v9268_v52, %v9267_v45  ;;  %v9297_v27 = vadd.f32 %v9296_v5, %v9295_v2 }
 0x274   :  { %v1863_v60 = vadd.f32 %v9297_v27, %v9269_v59 }
 0x28d   :  { %v9270_v14 = vpop.f32.mrb[4].mxu1  ;;  %v9298_v3 = vpop.f32.mrb[20].mxu0 }
 0x28e   :  { %v9271_v28 = vpop.f32.mrb[5].mxu1  ;;  %v9299_v13 = vpop.f32.mrb[21].mxu0 }
 0x28f   :  { %v9272_v12 = vadd.f32 %v9271_v28, %v9270_v14  ;;  %v9300_v39 = vadd.f32 %v9299_v13, %v9298_v3  ;;  %v9273_v16 = vpop.f32.mrb[6].mxu1  ;;  %v9301_v24 = vpop.f32.mrb[22].mxu0  ;;  %v10086_v13 = vld [vmem:[%s12442_s9 + $0x100] sm:$0xff]  }
 0x290   :  { %v9274_v0 = vpop.f32.mrb[7].mxu1  ;;  %v9302_v4 = vpop.f32.mrb[23].mxu0  ;;  %9472 = vmatprep.subr.bf16.mxu1 %v10086_v13 }
 0x291   :  { %v1868_v53 = vadd.f32 %v9300_v39, %v9272_v12  ;;  %v9275_v31 = vadd.f32 %v9274_v0, %v9273_v16  ;;  %v9303_v32 = vadd.f32 %v9302_v4, %v9301_v24  ;;  %v10087_v12 = vld [vmem:[%s12442_s9 + $0x140] sm:$0xff]   ;;  %v10089_v16 = vld [vmem:[%s12442_s9 + $0x108] sm:$0xff]  }
 0x292   :  { %v10088_v39 = vld [vmem:[%s12442_s9 + $0xc0] sm:$0xff]   ;;  %9742 = vmatprep.subr.bf16.mxu0 %v10087_v12 }
 0x293   :  { %v1871_v46 = vadd.f32 %v9303_v32, %v9275_v31  ;;  %9473 = vmatpush3.bf16.msra.mxu1 %v10088_v39  ;;  %9743 = vmatpush3.bf16.msra.mxu0 %v10087_v12 }
 0x294   :  { %9474 = vmatprep.subr.bf16.mxu1 %v10089_v16 }
 0x295   :  { %v9320_v62 = vpop.f32.mrb[8].mxu1  ;;  %v9348_v9 = vpop.f32.mrb[24].mxu0 }
 0x296   :  { %v9321_v33 = vpop.f32.mrb[9].mxu1  ;;  %v9349_v40 = vpop.f32.mrb[25].mxu0 }
 0x297   :  { %v9322_v34 = vadd.f32 %v9321_v33, %v9320_v62  ;;  %v9350_v43 = vadd.f32 %v9349_v40, %v9348_v9  ;;  %v9323_v48 = vpop.f32.mrb[10].mxu1  ;;  %v9351_v50 = vpop.f32.mrb[26].mxu0 }
 0x298   :  { %v9324_v37 = vpop.f32.mrb[11].mxu1  ;;  %v9352_v7 = vpop.f32.mrb[27].mxu0 }
 0x299   :  { %v2181_v10 = vadd.f32 %v9322_v34, %v1860_v38  ;;  %v9325_v55 = vadd.f32 %v9324_v37, %v9323_v48  ;;  %v9353_v11 = vadd.f32 %v9352_v7, %v9351_v50  ;;  %v10092_v34 = vld [vmem:[%s12442_s9 + $0x110] sm:$0xff]  }
 0x29b   :  { %v2230_v57 = vadd.f32 %v9350_v43, %v2181_v10  ;;  %v2184_v41 = vadd.f32 %v9325_v55, %v1863_v60  ;;  %v10093_v43 = vld [vmem:[%s12442_s9 + $0x150] sm:$0xff]  }
 0x29c   :  { %v10094_v55 = vld [vmem:[%s12442_s9 + $0xd0] sm:$0xff]  }
 0x29d   :  { %v2233_v35 = vadd.f32 %v9353_v11, %v2184_v41  ;;  %v9326_v47 = vpop.f32.mrb[12].mxu1  ;;  %v9354_v51 = vpop.f32.mrb[28].mxu0  ;;  %v10095_v41 = vld [vmem:[%s12442_s9 + $0x118] sm:$0xff]  }
 0x29e   :  { %v9327_v58 = vpop.f32.mrb[13].mxu1  ;;  %v9355_v56 = vpop.f32.mrb[29].mxu0 }
 0x29f   :  { %v9328_v30 = vadd.f32 %v9327_v58, %v9326_v47  ;;  %v9356_v18 = vadd.f32 %v9355_v56, %v9354_v51  ;;  %v9329_v61 = vpop.f32.mrb[14].mxu1  ;;  %v9357_v45 = vpop.f32.mrb[30].mxu0  ;;  %v10097_v51 = vld [vmem:[%s12442_s9 + $0xd8] sm:$0xff]   ;;  %v10098_v58 = vld [vmem:[%s12442_s9 + $0x120] sm:$0xff]  }
 0x2a0   :  { %v9330_v2 = vpop.f32.mrb[15].mxu1  ;;  %v9358_v1 = vpop.f32.mrb[31].mxu0  ;;  %v10099_v56 = vld [vmem:[%s12442_s9 + $0x160] sm:$0xff]  }
 0x2a1   :  { %v2189_v20 = vadd.f32 %v9328_v30, %v1868_v53  ;;  %v9331_v52 = vadd.f32 %v9330_v2, %v9329_v61  ;;  %v9359_v5 = vadd.f32 %v9358_v1, %v9357_v45  ;;  %v10090_v53 = vld [vmem:[%s12442_s9 + $0x148] sm:$0xff]   ;;  %v10100_v30 = vld [vmem:[%s12442_s9 + $0xe0] sm:$0xff]   ;;  %v10104_v2 = vld [vmem:[%s12442_s9 + $0x130] sm:$0xff]  }
 0x2a2   :  { %9744 = vmatprep.subr.bf16.mxu0 %v10090_v53  ;;  %v10102_v61 = vld [vmem:[%s12442_s9 + $0x168] sm:$0xff]   ;;  %v10105_v1 = vld [vmem:[%s12442_s9 + $0x170] sm:$0xff]  }
 0x2a3   :  { %v2238_v63 = vadd.f32 %v9356_v18, %v2189_v20  ;;  %v2192_v8 = vadd.f32 %v9331_v52, %v1871_v46  ;;  %v10091_v46 = vld [vmem:[%s12442_s9 + $0xc8] sm:$0xff]   ;;  %9745 = vmatpush3.bf16.msra.mxu0 %v10090_v53  ;;  %v10106_v20 = vld [vmem:[%s12442_s9 + $0xf0] sm:$0xff]   ;;  %v10107_v52 = vld [vmem:[%s12442_s9 + $0x138] sm:$0xff]  }
 0x2a4   :  { %9475 = vmatpush3.bf16.msra.mxu1 %v10091_v46  ;;  %9746 = vmatprep.subr.bf16.mxu0 %v10093_v43  ;;  %v10101_v18 = vld [vmem:[%s12442_s9 + $0x128] sm:$0xff]  }
 0x2a5   :  { %v2241_v38 = vadd.f32 %v9359_v5, %v2192_v8  ;;  %9476 = vmatprep.subr.bf16.mxu1 %v10092_v34  ;;  %v10103_v45 = vld [vmem:[%s12442_s9 + $0xe8] sm:$0xff]   ;;  %v10108_v5 = vld [vmem:[%s12442_s9 + $0x178] sm:$0xff]  }
 0x2a7   :  { %9747 = vmatpush3.bf16.msra.mxu0 %v10093_v43 }
 0x2a8   :  { %9477 = vmatpush3.bf16.msra.mxu1 %v10094_v55  ;;  %v8880_v55 = vld [vmem:[%s12488_s24] ss:$0 sm:$0xff] }
 0x2a9   :  { %9478 = vmatprep.subr.bf16.mxu1 %v10095_v41 }
 0x2ac   :  { %9479 = vmatpush3.bf16.msra.mxu1 %v10097_v51 }
 0x2ad   :  { %9480 = vmatprep.subr.bf16.mxu1 %v10098_v58 }
 0x2b0   :  { %9481 = vmatpush3.bf16.msra.mxu1 %v10100_v30 }
 0x2b1   :  { %9482 = vmatprep.subr.bf16.mxu1 %v10101_v18 }
 0x2b4   :  { %9483 = vmatpush3.bf16.msra.mxu1 %v10103_v45 }
 0x2b5   :  { %9484 = vmatprep.subr.bf16.mxu1 %v10104_v2 }
 0x2b6   :  { %v9376_v59 = vpop.f32.mrb[16].mxu1  ;;  %v9404_v27 = vpop.f32.mrb[32].mxu0 }
 0x2b7   :  { %v9377_v17 = vpop.f32.mrb[17].mxu1  ;;  %v9405_v19 = vpop.f32.mrb[33].mxu0 }
 0x2b8   :  { %v9378_v22 = vadd.f32 %v9377_v17, %v9376_v59  ;;  %v9406_v21 = vadd.f32 %v9405_v19, %v9404_v27  ;;  %v9379_v15 = vpop.f32.mrb[18].mxu1  ;;  %v9407_v23 = vpop.f32.mrb[34].mxu0  ;;  %9485 = vmatpush3.bf16.msra.mxu1 %v10106_v20  ;;  %v10109_v59 = vld [vmem:[%s12442_s9 + $0xf8] sm:$0xff]   ;;  %v10110_v19 = vld [vmem:[%s12442_s9 + $0x40] sm:$0xff]  }
 0x2b9   :  { %v9380_v25 = vpop.f32.mrb[19].mxu1  ;;  %v9408_v60 = vpop.f32.mrb[35].mxu0  ;;  %9486 = vmatprep.subr.bf16.mxu1 %v10107_v52 }
 0x2ba   :  { %v2752_v26 = vadd.f32 %v9406_v21, %v9378_v22  ;;  %v9381_v29 = vadd.f32 %v9380_v25, %v9379_v15  ;;  %v9409_v14 = vadd.f32 %v9408_v60, %v9407_v23  ;;  %v11589_v22 = vld [vmem:[%s12442_s9 + $0x80] sm:$0xff]  }
 0x2bc   :  { %v11503_v3 = vadd.f32 %v2752_v26, %v2230_v57  ;;  %v2755_v28 = vadd.f32 %v9409_v14, %v9381_v29  ;;  %9487 = vmatpush3.bf16.msra.mxu1 %v10109_v59 }
 0x2bd   :  { %9510 = vmatprep.subr.bf16.mxu1 %v10110_v19 }
 0x2be   :  { %v11517_v24 = vadd.f32 %v2755_v28, %v2233_v35  ;;  %v9382_v0 = vpop.f32.mrb[20].mxu1  ;;  %v9410_v4 = vpop.f32.mrb[36].mxu0  ;;  %v10096_v35 = vld [vmem:[%s12442_s9 + $0x158] sm:$0xff]  }
 0x2bf   :  { %v9383_v31 = vpop.f32.mrb[21].mxu1  ;;  %v9411_v32 = vpop.f32.mrb[37].mxu0  ;;  %9748 = vmatprep.subr.bf16.mxu0 %v10096_v35 }
 0x2c0   :  { %v9384_v62 = vadd.f32 %v9383_v31, %v9382_v0  ;;  %v9412_v9 = vadd.f32 %v9411_v32, %v9410_v4  ;;  %v9385_v33 = vpop.f32.mrb[22].mxu1  ;;  %v9413_v40 = vpop.f32.mrb[38].mxu0  ;;  %9749 = vmatpush3.bf16.msra.mxu0 %v10096_v35 }
 0x2c1   :  { %v9386_v48 = vpop.f32.mrb[23].mxu1  ;;  %v9414_v50 = vpop.f32.mrb[39].mxu0  ;;  %9750 = vmatprep.subr.bf16.mxu0 %v10099_v56 }
 0x2c2   :  { %v2760_v37 = vadd.f32 %v9412_v9, %v9384_v62  ;;  %v9387_v7 = vadd.f32 %v9386_v48, %v9385_v33  ;;  %v9415_v10 = vadd.f32 %v9414_v50, %v9413_v40 }
 0x2c4   :  { %v11534_v11 = vadd.f32 %v2760_v37, %v2238_v63  ;;  %v2763_v57 = vadd.f32 %v9415_v10, %v9387_v7  ;;  %9751 = vmatpush3.bf16.msra.mxu0 %v10099_v56  ;;  %v10329_v63 = vmov 0  }
 0x2c5   :  { %9752 = vmatprep.subr.bf16.mxu0 %v10102_v61  ;;  %3430 = vst [vmem:[#allocation3 + $0x14] sm:$0xf] %v10329_v63  ;;  %3427 = vst [vmem:[#allocation3] sm:$0xf] %v10329_v63 }
 0x2c6   :  { %v11542_v47 = vadd.f32 %v2763_v57, %v2241_v38  ;;  %3428 = vst [vmem:[#allocation3 + $0x18] sm:$0xf] %v10329_v63  ;;  %3431 = vst [vmem:[#allocation3 + $0x2c] sm:$0xf] %v10329_v63 }
 0x2c8   :  { %9753 = vmatpush3.bf16.msra.mxu0 %v10102_v61 }
 0x2c9   :  { %9754 = vmatprep.subr.bf16.mxu0 %v10105_v1 }
 0x2cc   :  { %9755 = vmatpush3.bf16.msra.mxu0 %v10105_v1  ;;  %v3450_v39 = vld [vmem:[#allocation3 + $0x14] sm:$0x1]  ;;  %v3489_v16 = vld [vmem:[#allocation3 + $0x14] sm:$0x4]  ;;  %v3435_v0 = vld [vmem:[#allocation3] sm:$0x1] }
 0x2cd   :  { %9756 = vmatprep.subr.bf16.mxu0 %v10108_v5  ;;  %v3451_v4 = vsel %vm11462_vm4, 0, %v3450_v39  ;;  %v3490_v53 = vsel %vm11475_vm6, 0, %v3489_v16  ;;  %v3436_v31 = vsel %vm11462_vm4, 0, %v3435_v0  ;;  %v3474_v32 = vld [vmem:[#allocation3] sm:$0x4] }
 0x2ce   :  { %3452 = vst [vmem:[#allocation3 + $0x14] sm:$0x1] %v3451_v4  ;;  %3491 = vst [vmem:[#allocation3 + $0x14] sm:$0x4] %v3490_v53  ;;  %v3468_v33 = vld [vmem:[#allocation3 + $0x2c] sm:$0x1] }
 0x2cf   :  { %3437 = vst [vmem:[#allocation3] sm:$0x1] %v3436_v31  ;;  %v3469_v43 = vsel %vm11462_vm4, 0, %v3468_v33  ;;  %v3507_v48 = vld [vmem:[#allocation3 + $0x2c] sm:$0x4] }
 0x2d0   :  { %9757 = vmatpush3.bf16.msra.mxu0 %v10108_v5  ;;  %3470 = vst [vmem:[#allocation3 + $0x2c] sm:$0x1] %v3469_v43  ;;  %v3508_v10 = vsel %vm11475_vm6, 0, %v3507_v48  ;;  %v3453_v5 = vld [vmem:[#allocation3 + $0x18] sm:$0x1] }
 0x2d1   :  { %9762 = vmatprep.subr.bf16.mxu0 %v11589_v22  ;;  %3509 = vst [vmem:[#allocation3 + $0x2c] sm:$0x4] %v3508_v10 }
 0x2d7   :  { %v9432_v8 = vpop.f32.mrb[24].mxu1  ;;  %v9460_v38 = vpop.f32.mrb[40].mxu0 }
 0x2d8   :  { %v9433_v27 = vpop.f32.mrb[25].mxu1  ;;  %v9461_v17 = vpop.f32.mrb[41].mxu0 }
 0x2d9   :  { %v9434_v21 = vadd.f32 %v9433_v27, %v9432_v8  ;;  %v9462_v15 = vadd.f32 %v9461_v17, %v9460_v38  ;;  %v9435_v23 = vpop.f32.mrb[26].mxu1  ;;  %v9463_v25 = vpop.f32.mrb[42].mxu0  ;;  %v3492_v8 = vld [vmem:[#allocation3 + $0x18] sm:$0x4] }
 0x2da   :  { %v9436_v60 = vpop.f32.mrb[27].mxu1  ;;  %v9464_v26 = vpop.f32.mrb[43].mxu0  ;;  %v3493_v59 = vsel %vm11475_vm6, 0, %v3492_v8 }
 0x2db   :  { %v3398_v29 = vadd.f32 %v9462_v15, %v9434_v21  ;;  %v9437_v14 = vadd.f32 %v9436_v60, %v9435_v23  ;;  %v9465_v28 = vadd.f32 %v9464_v26, %v9463_v25  ;;  %3494 = vst [vmem:[#allocation3 + $0x18] sm:$0x4] %v3493_v59 }
 0x2dd   :  { %v3412_v13 = vadd.f32 %v3398_v29, %v11503_v3  ;;  %v3401_v12 = vadd.f32 %v9465_v28, %v9437_v14  ;;  %v3475_v3 = vsel %vm11475_vm6, 0, %v3474_v32 }
 0x2de   :  { %3476 = vst [vmem:[#allocation3] sm:$0x4] %v3475_v3 }
 0x2df   :  { %v3413_v46 = vadd.f32 %v3401_v12, %v11517_v24  ;;  %v9438_v62 = vpop.f32.mrb[28].mxu1  ;;  %v9466_v9 = vpop.f32.mrb[44].mxu0  ;;  %v11611_v30 = vadd.f32 %v8880_v55, %v3412_v13 }
 0x2e0   :  { %v9439_v40 = vpop.f32.mrb[29].mxu1  ;;  %v9467_v34 = vpop.f32.mrb[45].mxu0 }
 0x2e1   :  { %v9440_v50 = vadd.f32 %v9439_v40, %v9438_v62  ;;  %v9468_v37 = vadd.f32 %v9467_v34, %v9466_v9  ;;  %v9441_v7 = vpop.f32.mrb[30].mxu1  ;;  %v9469_v24 = vpop.f32.mrb[46].mxu0  ;;  %v11609_v35 = vadd.f32 %v8880_v55, %v3413_v46  ;;  %v3510_v62 = vld [vmem:[%s12489_s1] sm:$0x1] }
 0x2e2   :  { %v9442_v57 = vpop.f32.mrb[31].mxu1  ;;  %v9470_v41 = vpop.f32.mrb[47].mxu0  ;;  %v8908_v9 = vld.sshfl [vmem:[#allocation3 + $0x14] sm:$0x13 pattern:$0x76325410] }
 0x2e3   :  { %v3406_v51 = vadd.f32 %v9468_v37, %v9440_v50  ;;  %v9443_v58 = vadd.f32 %v9442_v57, %v9441_v7  ;;  %v9471_v56 = vadd.f32 %v9470_v41, %v9469_v24  ;;  %v3676_v45 = vadd.f32 %v11609_v35, %v11611_v30  ;;  %v3511_v34 = vld [vmem:[%s12441_s8] sm:$0x1]  ;;  %v11638_v57 = vld.sshfl [vmem:[#allocation3 + $0x2c] sm:$0x13 pattern:$0x76325410] }
 0x2e4   :  { %v4529_v43 = vshrl.u32 %v8908_v9, 16  ;;  %v4532_v48 = vshll.u32 %v8908_v9, 16  ;;  %v4588_v8 = vshll.u32 %v11638_v57, 16 }
 0x2e5   :  { %v3414_v18 = vadd.f32 %v3406_v51, %v11534_v11  ;;  %v3409_v61 = vadd.f32 %v9471_v56, %v9443_v58  ;;  %v3454_v11 = vsel %vm11462_vm4, 0, %v3453_v5  ;;  %v8889_v40 = vld.sshfl [vmem:[#allocation3] sm:$0x13 pattern:$0x76325410] }
 0x2e6   :  { %3455 = vst [vmem:[#allocation3 + $0x18] sm:$0x1] %v3454_v11  ;;  %v4103_v7 = vshrl.u32 %v8889_v40, 16  ;;  %v4106_v24 = vshll.u32 %v8889_v40, 16  ;;  %v11641_v51 = vrot.slane %v4529_v43, 6  ;;  %v11643_v58 = vrot.slane %v4532_v48, 7 }
 0x2e7   :  { %v11616_v2 = vadd.f32 %v8880_v55, %v3414_v18  ;;  %v3415_v1 = vadd.f32 %v3409_v61, %v11542_v47  ;;  %v4045_v56 = vcombine.high %v8889_v40, %v8889_v40 }
 0x2e8   :  { %v11651_v5 = vrot.slane %v4106_v24, 7 }
 0x2e9   :  { %v3677_v20 = vadd.f32 %v3676_v45, %v11616_v2  ;;  %v11620_v52 = vadd.f32 %v8880_v55, %v3415_v1  ;;  %v4453_v55 = vcombine.high %v8908_v9, %v8908_v9 }
 0x2eb   :  { %v3678_v63 = vadd.f32 %v3677_v20, %v11620_v52  ;;  %v11649_v20 = vrot.slane %v4103_v7, 6 }
 0x2ed   :  { %v3679_v38 = vrot.slane %v3678_v63, 4 }
 0x2ef   :  { %v3680_v27 = vadd.f32 %v3679_v38, %v3678_v63  ;;  %v4585_v63 = vshrl.u32 %v11638_v57, 16 }
 0x2f1   :  { %v3681_v17 = vrot.slane %v3680_v27, 2 }
 0x2f3   :  { %v3682_v47 = vadd.f32 %v3681_v17, %v3680_v27  ;;  %v11655_v17 = vshll.u32 %v4453_v55, 16 }
 0x2f5   :  { %v3683_v19 = vrot.slane %v3682_v47, 1 }
 0x2f7   :  { %v3684_v21 = vadd.f32 %v3683_v19, %v3682_v47  ;;  %v11657_v47 = vshll.u32 %v4045_v56, 16  ;;  %v4485_v19 = vcombine.high %v11638_v57, %v11638_v57  ;;  %v3841_v56 = vld [vmem:[#allocation3 + $0x4] sm:$0x7] }
 0x2f9   :  { %v3686_v15 = vmul.f32 0.03125, %v3684_v21 }
 0x2fb   :  { %v3687_v23 = vsub.f32 %v11611_v30, %v3686_v15  ;;  %v3688_v25 = vsub.f32 %v11609_v35, %v3686_v15  ;;  %v3689_v60 = vsub.f32 %v11616_v2, %v3686_v15  ;;  %v3690_v6 = vsub.f32 %v11620_v52, %v3686_v15 }
 0x2fd   :  { %v3691_v26 = vmul.f32 %v3687_v23, %v3687_v23  ;;  %v3692_v29 = vmul.f32 %v3688_v25, %v3688_v25  ;;  %v3693_v14 = vmul.f32 %v3689_v60, %v3689_v60  ;;  %v3694_v28 = vmul.f32 %v3690_v6, %v3690_v6 }
 0x2fe   :  { %v4535_v60 = vor.u32 %v11643_v58, %v11641_v51  ;;  %v4109_v6 = vor.u32 %v11651_v5, %v11649_v20 }
 0x2ff   :  { %v3695_v49 = vadd.f32 %v3692_v29, %v3691_v26  ;;  %v11665_v26 = vrot.slane %v4585_v63, 6  ;;  %v11667_v29 = vrot.slane %v4588_v8, 7  ;;  %v3844_v63 = vld [vmem:[#allocation3 + $0x8] sm:$0x7]  ;;  %v3847_v8 = vld [vmem:[#allocation3 + $0xc] sm:$0x7] }
 0x300   :  { %v4536_v57 = vrot.slane %v4535_v60, 2 }
 0x301   :  { %v3696_v13 = vadd.f32 %v3695_v49, %v3693_v14 }
 0x303   :  { %v3697_v12 = vadd.f32 %v3696_v13, %v3694_v28 }
 0x305   :  { %v3698_v39 = vrot.slane %v3697_v12, 4 }
 0x307   :  { %v3699_v16 = vadd.f32 %v3698_v39, %v3697_v12 }
 0x309   :  { %v3700_v0 = vrot.slane %v3699_v16, 2 }
 0x30b   :  { %v3701_v4 = vadd.f32 %v3700_v0, %v3699_v16 }
 0x30d   :  { %v3702_v53 = vrot.slane %v3701_v4, 1 }
 0x30f   :  { %v3703_v31 = vadd.f32 %v3702_v53, %v3701_v4 }
 0x311   :  { %v3704_v32 = vmul.f32 0.03125, %v3703_v31 }
 0x313   :  { %v3705_v46 = vadd.f32 1e-05, %v3704_v32 }
 0x315   :  { %10272 = vrsqrt.f32 %v3705_v46 }
 0x31f   :  { %v10273_v3 = vpop.eup %10272 }
 0x320   :  { %v3707_v33 = vmul.f32 %v10273_v3, %v3510_v62 }
 0x322   :  { %v3708_v50 = vmul.f32 %v3707_v33, %v3686_v15  ;;  %v3713_v37 = vrot.slane %v3707_v33, %v10747_v44 }
 0x324   :  { %v3709_v10 = vsub.f32 %v3511_v34, %v3708_v50  ;;  %v3714_v41 = vmul.f32 %v3713_v37, %v11611_v30  ;;  %v3715_v18 = vmul.f32 %v3713_v37, %v11609_v35  ;;  %v3716_v61 = vmul.f32 %v3713_v37, %v11616_v2 }
 0x325   :  { %v3717_v45 = vmul.f32 %v3713_v37, %v11620_v52 }
 0x326   :  { %v3722_v1 = vrot.slane %v3709_v10, %v10747_v44 }
 0x328   :  { %v3724_v38 = vadd.f32 %v3722_v1, %v3714_v41  ;;  %v3725_v11 = vadd.f32 %v3722_v1, %v3715_v18  ;;  %v3726_v59 = vadd.f32 %v3722_v1, %v3716_v61  ;;  %v3727_v27 = vadd.f32 %v3722_v1, %v3717_v45 }
 0x32a   :  { %v3728_v21 = vmax.f32 %v3724_v38, 0.0  ;;  %v3729_v15 = vmax.f32 %v3725_v11, 0.0  ;;  %v3730_v23 = vmax.f32 %v3726_v59, 0.0  ;;  %v3731_v25 = vmax.f32 %v3727_v27, 0.0 }
 0x32c   :  { %v3736_v14 = vcombine.high %v3728_v21, %v3728_v21  ;;  %v3737_v49 = vcombine.high %v3729_v15, %v3729_v15  ;;  %v3738_v28 = vcombine.high %v3730_v23, %v3730_v23  ;;  %v3739_v13 = vcombine.high %v3731_v25, %v3731_v25 }
 0x32d   :  { %v9221_v12 = vpack.c.bf16 %v3728_v21, %v3728_v21  ;;  %v9223_v39 = vpack.c.bf16 %v3729_v15, %v3729_v15  ;;  %v9225_v16 = vpack.c.bf16 %v3730_v23, %v3730_v23  ;;  %v9227_v0 = vpack.c.bf16 %v3731_v25, %v3731_v25  ;;  %v3850_v21 = vld [vmem:[#allocation3 + $0x10] sm:$0x7]  ;;  %v3853_v15 = vld [vmem:[#allocation3 + $0x1c] sm:$0x7] }
 0x32e   :  { %v9222_v4 = vpack.c.bf16 %v3736_v14, %v3736_v14  ;;  %v9224_v53 = vpack.c.bf16 %v3737_v49, %v3737_v49  ;;  %v9226_v31 = vpack.c.bf16 %v3738_v28, %v3738_v28  ;;  %v9228_v32 = vpack.c.bf16 %v3739_v13, %v3739_v13  ;;  %v3856_v28 = vld [vmem:[#allocation3 + $0x20] sm:$0x7] }
 0x32f   :  { %v3777_v46 = vshrl.u32 %v9221_v12, 16  ;;  %v3780_v62 = vshll.u32 %v9221_v12, 16  ;;  %v3791_v9 = vshrl.u32 %v9223_v39, 16  ;;  %v3794_v3 = vshll.u32 %v9223_v39, 16 }
 0x330   :  { %v3784_v33 = vshrl.u32 %v9222_v4, 16  ;;  %v3787_v40 = vshll.u32 %v9222_v4, 16  ;;  %v3798_v34 = vshrl.u32 %v9224_v53, 16  ;;  %v3801_v43 = vshll.u32 %v9224_v53, 16  ;;  %v3859_v4 = vld [vmem:[#allocation3 + $0x24] sm:$0x7] }
 0x331   :  { %v3779_v48 = vrot.slane %v3777_v46, 7  ;;  %v3793_v50 = vrot.slane %v3791_v9, 7  ;;  %v3805_v37 = vshrl.u32 %v9225_v16, 16  ;;  %v3808_v7 = vshll.u32 %v9225_v16, 16  ;;  %v3862_v9 = vld [vmem:[#allocation3 + $0x28] sm:$0x7] }
 0x332   :  { %v3786_v24 = vrot.slane %v3784_v33, 7  ;;  %v3800_v10 = vrot.slane %v3798_v34, 7  ;;  %v3812_v55 = vshrl.u32 %v9226_v31, 16  ;;  %v3815_v41 = vshll.u32 %v9226_v31, 16 }
 0x333   :  { %v3782_v18 = vor.u32 %v3780_v62, %v3779_v48  ;;  %v3796_v61 = vor.u32 %v3794_v3, %v3793_v50  ;;  %v3807_v45 = vrot.slane %v3805_v37, 7  ;;  %v3819_v1 = vshrl.u32 %v9227_v0, 16  ;;  %v8893_v53 = vld.sshfl [vmem:[#allocation3 + $0x18] sm:$0x13 pattern:$0x76325410] }
 0x334   :  { %v3789_v38 = vor.u32 %v3787_v40, %v3786_v24  ;;  %v3803_v11 = vor.u32 %v3801_v43, %v3800_v10  ;;  %v3814_v59 = vrot.slane %v3812_v55, 7  ;;  %v3822_v27 = vshll.u32 %v9227_v0, 16 }
 0x335   :  { %v3810_v23 = vor.u32 %v3808_v7, %v3807_v45  ;;  %v3821_v25 = vrot.slane %v3819_v1, 7  ;;  %v3826_v14 = vshrl.u32 %v9228_v32, 16  ;;  %v3829_v49 = vshll.u32 %v9228_v32, 16 }
 0x336   :  { %v3817_v13 = vor.u32 %v3815_v41, %v3814_v59  ;;  %v3842_v12 = vsel %vm10815_vm9, %v3782_v18, %v3841_v56  ;;  %v3845_v39 = vsel %vm10815_vm9, %v3789_v38, %v3844_v63  ;;  %v3848_v16 = vsel %vm10815_vm9, %v3796_v61, %v3847_v8 }
 0x337   :  { %v3824_v0 = vor.u32 %v3822_v27, %v3821_v25  ;;  %v3828_v31 = vrot.slane %v3826_v14, 7  ;;  %v3851_v46 = vsel %vm10815_vm9, %v3803_v11, %v3850_v21  ;;  %v3854_v32 = vsel %vm10815_vm9, %v3810_v23, %v3853_v15  ;;  %3843 = vst [vmem:[#allocation3 + $0x4] sm:$0x7] %v3842_v12  ;;  %3846 = vst [vmem:[#allocation3 + $0x8] sm:$0x7] %v3845_v39 }
 0x338   :  { %3849 = vst [vmem:[#allocation3 + $0xc] sm:$0x7] %v3848_v16  ;;  %v3857_v62 = vsel %vm10815_vm9, %v3817_v13, %v3856_v28  ;;  %3852 = vst [vmem:[#allocation3 + $0x10] sm:$0x7] %v3851_v46  ;;  %v4591_v3 = vor.u32 %v11667_v29, %v11665_v26  ;;  %v11686_v33 = vshll.u32 %v4485_v19, 16  ;;  %v4077_v40 = vcombine.high %v8893_v53, %v8893_v53 }
 0x339   :  { %3855 = vst [vmem:[#allocation3 + $0x1c] sm:$0x7] %v3854_v32  ;;  %v3831_v34 = vor.u32 %v3829_v49, %v3828_v31  ;;  %3858 = vst [vmem:[#allocation3 + $0x20] sm:$0x7] %v3857_v62  ;;  %v3860_v43 = vsel %vm10815_vm9, %v3824_v0, %v3859_v4  ;;  %v4159_v48 = vshrl.u32 %v8893_v53, 16  ;;  %v4162_v50 = vshll.u32 %v8893_v53, 16 }
 0x33a   :  { %3861 = vst [vmem:[#allocation3 + $0x24] sm:$0x7] %v3860_v43  ;;  %v4540_v7 = vrot.slane %v11655_v17, 7  ;;  %v4110_v19 = vrot.slane %v4109_v6, 2  ;;  %v4114_v26 = vrot.slane %v11657_v47, 7  ;;  %v4596_v29 = vrot.slane %v11686_v33, 7 }
 0x33b   :  { %v3863_v37 = vsel %vm10815_vm9, %v3831_v34, %v3862_v9  ;;  %v11701_v24 = vrot.slane %v4591_v3, 2  ;;  %v11703_v10 = vrot.slane %v4159_v48, 6  ;;  %v11705_v55 = vrot.slane %v4162_v50, 7 }
 0x33c   :  { %3864 = vst [vmem:[#allocation3 + $0x28] sm:$0x7] %v3863_v37  ;;  %v11707_v17 = vshll.u32 %v4077_v40, 16  ;;  %v11711_v47 = vsel %vm10891_vm0, %v4536_v57, %v4540_v7  ;;  %v4115_v8 = vsel %vm10891_vm0, %v4110_v19, %v4114_v26 }
 0x33e   :  { %v8897_v41 = vld.sshfl [vmem:[#allocation3 + $0x4] sm:$0x13 pattern:$0x76325410]  ;;  %v4170_v13 = vrot.slane %v11707_v17, 7 }
 0x33f   :  { %v8898_v56 = vld.sshfl [vmem:[#allocation3 + $0x8] sm:$0x13 pattern:$0x76325410]  ;;  %v4237_v51 = vcombine.high %v8897_v41, %v8897_v41  ;;  %v4295_v58 = vshrl.u32 %v8897_v41, 16  ;;  %v4298_v60 = vshll.u32 %v8897_v41, 16  ;;  %v4165_v41 = vor.u32 %v11705_v55, %v11703_v10 }
 0x340   :  { %v8899_v18 = vld.sshfl [vmem:[#allocation3 + $0xc] sm:$0x13 pattern:$0x76325410]  ;;  %v4245_v20 = vcombine.high %v8898_v56, %v8898_v56  ;;  %v4309_v5 = vshrl.u32 %v8898_v56, 16  ;;  %v4312_v6 = vshll.u32 %v8898_v56, 16 }
 0x341   :  { %v8900_v61 = vld.sshfl [vmem:[#allocation3 + $0x10] sm:$0x13 pattern:$0x76325410]  ;;  %v4253_v45 = vcombine.high %v8899_v18, %v8899_v18  ;;  %v4297_v1 = vrot.slane %v4295_v58, 6  ;;  %v4300_v63 = vrot.slane %v4298_v60, 7 }
 0x342   :  { %v4261_v38 = vcombine.high %v8900_v61, %v8900_v61  ;;  %v4304_v11 = vshll.u32 %v4237_v51, 16  ;;  %v4311_v59 = vrot.slane %v4309_v5, 6  ;;  %v4314_v27 = vrot.slane %v4312_v6, 7 }
 0x343   :  { %v4301_v21 = vor.u32 %v4300_v63, %v4297_v1  ;;  %v4318_v15 = vshll.u32 %v4245_v20, 16  ;;  %v4323_v23 = vshrl.u32 %v8899_v18, 16  ;;  %v4326_v25 = vshll.u32 %v8899_v18, 16 }
 0x344   :  { %v4315_v14 = vor.u32 %v4314_v27, %v4311_v59  ;;  %v4332_v49 = vshll.u32 %v4253_v45, 16  ;;  %v4337_v28 = vshrl.u32 %v8900_v61, 16  ;;  %v4306_v39 = vrot.slane %v4304_v11, 7 }
 0x345   :  { %v4302_v12 = vrot.slane %v4301_v21, 2  ;;  %v4325_v16 = vrot.slane %v4323_v23, 6  ;;  %v4328_v4 = vrot.slane %v4326_v25, 7  ;;  %v4320_v0 = vrot.slane %v4318_v15, 7 }
 0x346   :  { %v4316_v53 = vrot.slane %v4315_v14, 2  ;;  %v4339_v31 = vrot.slane %v4337_v28, 6  ;;  %v4340_v46 = vshll.u32 %v8900_v61, 16  ;;  %v4334_v9 = vrot.slane %v4332_v49, 7 }
 0x347   :  { %v4307_v32 = vsel %vm10891_vm0, %v4302_v12, %v4306_v39  ;;  %v4329_v62 = vor.u32 %v4328_v4, %v4325_v16  ;;  %v4346_v3 = vshll.u32 %v4261_v38, 16  ;;  %v8909_v40 = vld.sshfl [vmem:[#allocation3 + $0x20] sm:$0x13 pattern:$0x76325410] }
 0x348   :  { %v4321_v34 = vsel %vm10891_vm0, %v4316_v53, %v4320_v0  ;;  %v4342_v43 = vrot.slane %v4340_v46, 7  ;;  %v4598_v48 = vcombine.low %v4115_v8, %v4307_v32  ;;  %v8910_v50 = vld.sshfl [vmem:[#allocation3 + $0x24] sm:$0x13 pattern:$0x76325410]  ;;  %v4461_v37 = vcombine.high %v8909_v40, %v8909_v40 }
 0x349   :  { %v4330_v7 = vrot.slane %v4329_v62, 2  ;;  %v4348_v57 = vrot.slane %v4346_v3, 7  ;;  %v4634_v19 = vcombine.low %v4307_v32, %v4321_v34  ;;  %v8911_v26 = vld.sshfl [vmem:[#allocation3 + $0x28] sm:$0x13 pattern:$0x76325410]  ;;  %v4469_v58 = vcombine.high %v8910_v50, %v8910_v50 }
 0x34a   :  { %v4343_v56 = vor.u32 %v4342_v43, %v4339_v31  ;;  %v4606_v51 = vrot.slane %v4598_v48, %v10756_v54  ;;  %v4543_v60 = vshrl.u32 %v8909_v40, 16  ;;  %v4477_v20 = vcombine.high %v8911_v26, %v8911_v26  ;;  %v8901_v10 = vld.sshfl [vmem:[#allocation3 + $0x1c] sm:$0x13 pattern:$0x76325410] }
 0x34b   :  { %v4335_v18 = vsel %vm10891_vm0, %v4330_v7, %v4334_v9  ;;  %v4546_v5 = vshll.u32 %v8909_v40, 16  ;;  %v4552_v6 = vshll.u32 %v4461_v37, 16  ;;  %v4642_v63 = vrot.slane %v4634_v19, %v10756_v54  ;;  %v10112_v40 = vld [vmem:[%s12442_s9] sm:$0xff]   ;;  %v10115_v37 = vld [vmem:[%s12442_s9 + $0x48] sm:$0xff]  }
 0x34c   :  { %v4344_v61 = vrot.slane %v4343_v56, 2  ;;  %v4670_v45 = vcombine.low %v4321_v34, %v4335_v18  ;;  %v4545_v1 = vrot.slane %v4543_v60, 6  ;;  %v4557_v38 = vshrl.u32 %v8910_v50, 16 }
 0x34d   :  { %v4548_v8 = vrot.slane %v4546_v5, 7  ;;  %v4560_v11 = vshll.u32 %v8910_v50, 16  ;;  %v4566_v27 = vshll.u32 %v4469_v58, 16  ;;  %v4554_v49 = vrot.slane %v4552_v6, 7  ;;  %v10117_v58 = vld [vmem:[%s12442_s9 + $0x8] sm:$0xff]  }
 0x34e   :  { %v4349_v55 = vsel %vm10891_vm0, %v4344_v61, %v4348_v57  ;;  %v4678_v59 = vrot.slane %v4670_v45, %v10756_v54  ;;  %v4559_v25 = vrot.slane %v4557_v38, 6  ;;  %v4571_v12 = vshrl.u32 %v8911_v26, 16  ;;  %v10281_v6 = vld.sshfl [vmem:[#allocation3 + $0x10] sm:$0xf pattern:$0x76325410] }
 0x34f   :  { %v4635_v21 = vcombine.low %v4335_v18, %v4349_v55  ;;  %v4671_v15 = vcombine.low %v4349_v55, %v11711_v47  ;;  %v4549_v23 = vor.u32 %v4548_v8, %v4545_v1  ;;  %v4562_v28 = vrot.slane %v4560_v11, 7  ;;  %v10118_v45 = vld [vmem:[%s12442_s9 + $0x50] sm:$0xff]  }
 0x350   :  { %v4614_v14 = vcombine.low %v4606_v51, %v4678_v59  ;;  %v4574_v53 = vshll.u32 %v8911_v26, 16  ;;  %v4568_v31 = vrot.slane %v4566_v27, 7  ;;  %v4573_v46 = vrot.slane %v4571_v12, 6  ;;  %v10120_v11 = vld [vmem:[%s12442_s9 + $0x10] sm:$0xff]  }
 0x351   :  { %v4649_v39 = vrot.slane %v4635_v21, %v10756_v54  ;;  %v4685_v16 = vrot.slane %v4671_v15, %v10756_v54  ;;  %v4550_v4 = vrot.slane %v4549_v23, 2  ;;  %v4563_v0 = vor.u32 %v4562_v28, %v4559_v25  ;;  %v10283_v55 = vld.sshfl [vmem:[#allocation3 + $0xc] sm:$0xf pattern:$0x76325410]  ;;  %v10125_v28 = vld [vmem:[%s12442_s9 + $0x18] sm:$0xff]  }
 0x352   :  { %v4269_v32 = vcombine.high %v8901_v10, %v8901_v10  ;;  %v4576_v3 = vrot.slane %v4574_v53, 7  ;;  %v4580_v47 = vshll.u32 %v4477_v20, 16  ;;  %v4351_v48 = vshrl.u32 %v8901_v10, 16  ;;  %v10116_v25 = vld [vmem:[%s12442_s9 + $0x88] sm:$0xff]  }
 0x353   :  { %v4650_v62 = vcombine.low %v4642_v63, %v4649_v39  ;;  %v4686_v9 = vcombine.low %v4678_v59, %v4685_v16  ;;  %v4555_v34 = vsel %vm10891_vm0, %v4550_v4, %v4554_v49  ;;  %v4564_v43 = vrot.slane %v4563_v0, 2  ;;  %v10126_v39 = vld [vmem:[%s12442_s9 + $0x60] sm:$0xff]   ;;  %v10119_v4 = vld [vmem:[%s12442_s9 + $0x90] sm:$0xff]  }
 0x354   :  { %v4354_v50 = vshll.u32 %v8901_v10, 16  ;;  %v4577_v7 = vor.u32 %v4576_v3, %v4573_v46  ;;  %v4360_v57 = vshll.u32 %v4269_v32, 16  ;;  %v4166_v19 = vrot.slane %v4165_v41, 2  ;;  %v10124_v46 = vld [vmem:[%s12442_s9 + $0x98] sm:$0xff]  }
 0x355   :  { %4882 = vmatprep.mubr.bf16.mxu1 %v4650_v62  ;;  %9758 = vmatprep.mubr.bf16.mxu0 %v4686_v9  ;;  %v4569_v26 = vsel %vm10891_vm0, %v4564_v43, %v4568_v31  ;;  %v4353_v56 = vrot.slane %v4351_v48, 6  ;;  %v4582_v18 = vrot.slane %v4580_v47, 7  ;;  %v4597_v20 = vsel %vm10891_vm0, %v11701_v24, %v4596_v29  ;;  %v10280_v41 = vld.sshfl [vmem:[#allocation3 + $0x8] sm:$0xf pattern:$0x76325410] }
 0x356   :  { %4883 = vmatmul.mubr.bf16.vlgmr.msra.gmra.mrb[32].mxu1 %v4614_v14  ;;  %v4356_v51 = vrot.slane %v4354_v50, 7  ;;  %v4578_v60 = vrot.slane %v4577_v7, 2  ;;  %v4687_v5 = vcombine.low %v4555_v34, %v4569_v26  ;;  %v4362_v63 = vrot.slane %v4360_v57, 7  ;;  %v10128_v31 = vld [vmem:[%s12442_s9 + $0x20] sm:$0xff]   ;;  %v10131_v9 = vld [vmem:[%s12442_s9 + $0x28] sm:$0xff]   ;;  %v10132_v47 = vld [vmem:[%s12442_s9 + $0x70] sm:$0xff]  }
 0x357   :  { %9511 = vmatpush3.bf16.msra.mxu1 %v10112_v40  ;;  %v4171_v33 = vsel %vm10891_vm0, %v4166_v19, %v4170_v13  ;;  %v10282_v10 = vld.sshfl [vmem:[#allocation3 + $0x4] sm:$0xf pattern:$0x76325410]  ;;  %v10123_v13 = vld [vmem:[%s12442_s9 + $0x58] sm:$0xff]   ;;  %v4002_v49 = vcombine.low %v10280_v41, %v10281_v6 }
 0x358   :  { %v4357_v61 = vor.u32 %v4356_v51, %v4353_v56  ;;  %9512 = vmatprep.subr.bf16.mxu1 %v10115_v37  ;;  %v4583_v1 = vsel %vm10891_vm0, %v4578_v60, %v4582_v18  ;;  %v4695_v24 = vrot.slane %v4687_v5, %v10756_v54  ;;  %v3958_v0 = vcombine.low %v10282_v10, %v10283_v55  ;;  %v8993_v32 = vld.sshfl [vmem:[#allocation3 + $0x8] sm:$0x12 pattern:$0x76325410]  ;;  %v10127_v43 = vld [vmem:[%s12442_s9 + $0xa0] sm:$0xff]   ;;  %v10134_v37 = vld [vmem:[%s12442_s9 + $0x30] sm:$0xff]  }
 0x359   :  { %v4688_v29 = vcombine.low %v4583_v1, %v4597_v20  ;;  %v4652_v38 = vcombine.low %v4569_v26, %v4583_v1  ;;  %v8996_v62 = vld.sshfl [vmem:[#allocation3 + $0x14] sm:$0x12 pattern:$0x76325410]  ;;  %v5442_v48 = vcombine.high %v8993_v32, %v8993_v32  ;;  %v10135_v19 = vld [vmem:[%s12442_s9 + $0x78] sm:$0xff]   ;;  %v10130_v20 = vld [vmem:[%s12442_s9 + $0xa8] sm:$0xff]  }
 0x35a   :  { %v4358_v8 = vrot.slane %v4357_v61, 2  ;;  %v8995_v3 = vld.sshfl [vmem:[#allocation3 + $0x10] sm:$0x12 pattern:$0x76325410]  ;;  %v5466_v57 = vcombine.high %v8996_v62, %v8996_v62  ;;  %v10137_v6 = vld [vmem:[%s12442_s9 + $0x38] sm:$0xff]  }
 0x35b   :  { %9513 = vmatpush3.bf16.msra.mxu1 %v10117_v58  ;;  %v4702_v59 = vrot.slane %v4688_v29, %v10756_v54  ;;  %v4666_v21 = vrot.slane %v4652_v38, %v10756_v54  ;;  %v8994_v40 = vld.sshfl [vmem:[#allocation3 + $0xc] sm:$0x12 pattern:$0x76325410]  ;;  %v5458_v50 = vcombine.high %v8995_v3, %v8995_v3  ;;  %v5501_v5 = vrot.slane %v5442_v48, 7  ;;  %v10142_v1 = vld [vmem:[%s12442_s9 + $0x1c0] sm:$0xff]  }
 0x35c   :  { %v4363_v17 = vsel %vm10891_vm0, %v4358_v8, %v4362_v63  ;;  %9514 = vmatprep.subr.bf16.mxu1 %v10118_v45  ;;  %v10284_v7 = vld.sshfl [vmem:[#allocation3 + $0x8] sm:$0xf pattern:$0x76325410]  ;;  %v5450_v26 = vcombine.high %v8994_v40, %v8994_v40  ;;  %v9004_v61 = vrot.slane %v8996_v62, 9  ;;  %v5513_v45 = vrot.slane %v5466_v57, 7 }
 0x35d   :  { %v4651_v27 = vcombine.low %v4363_v17, %v4555_v34  ;;  %v4615_v15 = vcombine.low %v4171_v33, %v4363_v17  ;;  %v4703_v23 = vcombine.low %v4695_v24, %v4702_v59  ;;  %v8977_v34 = vld.sshfl [vmem:[#allocation3 + $0x4] sm:$0x12 pattern:$0x76325410]  ;;  %v5509_v41 = vrot.slane %v5458_v50, 7  ;;  %v10133_v38 = vld [vmem:[%s12442_s9 + $0xb0] sm:$0xff]  }
 0x35e   :  { %v5330_v56 = vcombine.high %v8977_v34, %v8977_v34  ;;  %v10285_v51 = vld.sshfl [vmem:[#allocation3] sm:$0xf pattern:$0x76325410]  ;;  %v9001_v63 = vrot.slane %v8993_v32, 9  ;;  %v5505_v33 = vrot.slane %v5450_v26, 7 }
 0x35f   :  { %v4659_v14 = vrot.slane %v4651_v27, %v10756_v54  ;;  %9515 = vmatpush3.bf16.msra.mxu1 %v10120_v11  ;;  %9759 = vmatmul.mubr.bf16.vlgmr.msra.gmra.mrb[48].mxu0 %v4703_v23  ;;  %v4623_v12 = vrot.slane %v4615_v15, %v10756_v54  ;;  %v10286_v58 = vld.sshfl [vmem:[#allocation3 + $0x1c] sm:$0xf pattern:$0x76325410]  ;;  %v9003_v29 = vrot.slane %v8995_v3, 9  ;;  %v9002_v10 = vrot.slane %v8994_v40, 9 }
 0x360   :  { %9516 = vmatprep.subr.bf16.mxu1 %v10123_v13  ;;  %9763 = vmatpush3.bf16.msra.mxu0 %v11589_v22  ;;  %v10129_v22 = vld [vmem:[%s12442_s9 + $0x68] sm:$0xff]   ;;  %v5502_v11 = vsel %vm11827_vm12, %v9001_v63, %v5501_v5  ;;  %v8985_v59 = vrot.slane %v8977_v34, 9  ;;  %v10146_v17 = vld [vmem:[%s12442_s9 + $0x180] sm:$0xff]   ;;  %v3914_v13 = vcombine.low %v10285_v51, %v10284_v7  ;;  %v10155_v34 = vld [vmem:[%s12442_s9 + $0x1d8] sm:$0xff]  }
 0x361   :  { %v4667_v16 = vcombine.low %v4659_v14, %v4666_v21  ;;  %9778 = vmatprep.mubr.bf16.mxu0 %v4002_v49  ;;  %9764 = vmatprep.subr.bf16.mxu0 %v10116_v25  ;;  %v4631_v53 = vcombine.low %v4623_v12, %v4695_v24  ;;  %v10287_v60 = vld.sshfl [vmem:[#allocation3 + $0x24] sm:$0xf pattern:$0x76325410]  ;;  %v5389_v24 = vrot.slane %v5330_v56, 7  ;;  %v5510_v55 = vsel %vm11827_vm12, %v9003_v29, %v5509_v41  ;;  %v10136_v14 = vld [vmem:[%s12442_s9 + $0xb8] sm:$0xff]  }
 0x362   :  { %v5506_v27 = vsel %vm11827_vm12, %v9002_v10, %v5505_v33  ;;  %v5514_v21 = vsel %vm11827_vm12, %v9004_v61, %v5513_v45  ;;  %v10147_v15 = vld [vmem:[%s12442_s9 + $0x1c8] sm:$0xff]   ;;  %v10288_v23 = vld.sshfl [vmem:[#allocation3 + $0x20] sm:$0xf pattern:$0x76325410]  ;;  %v3975_v49 = vcombine.low %v10286_v58, %v10287_v60  ;;  %v10153_v60 = vld [vmem:[%s12442_s9 + $0x210] sm:$0xff]  }
 0x363   :  { %4890 = vmatprep.mubr.bf16.mxu1 %v4667_v16  ;;  %9517 = vmatpush3.bf16.msra.mxu1 %v10125_v28  ;;  %v5568_v12 = vcombine.low %v5506_v27, %v5510_v55  ;;  %v10290_v16 = vld.sshfl [vmem:[#allocation3 + $0x28] sm:$0xf pattern:$0x76325410]  ;;  %v10143_v62 = vld [vmem:[%s12442_s9 + $0x200] sm:$0xff]  }
 0x364   :  { %4891 = vmatmul.mubr.bf16.gmra.mrb[36].mxu1 %v4631_v53  ;;  %9518 = vmatprep.subr.bf16.mxu1 %v10126_v39  ;;  %v10289_v39 = vld.sshfl [vmem:[#allocation3 + $0x20] sm:$0xf pattern:$0x76325410]  ;;  %v5603_v53 = vcombine.low %v5502_v11, %v5506_v27  ;;  %v10148_v50 = vld [vmem:[%s12442_s9 + $0x208] sm:$0xff]  }
 0x365   :  { %9765 = vmatpush3.bf16.msra.mxu0 %v10116_v25  ;;  %5124 = vmatprep.mubr.bf16.mxu1 %v3958_v0  ;;  %v11850_v25 = vsel %vm11827_vm12, %v8985_v59, %v5389_v24  ;;  %v5604_v0 = vcombine.low %v5510_v55, %v5514_v21  ;;  %v5582_v32 = vrot.slane %v5568_v12, %v10756_v54  ;;  %v8997_v7 = vld.sshfl [vmem:[#allocation3 + $0x20] sm:$0x12 pattern:$0x76325410]  ;;  %v10164_v55 = vld [vmem:[%s12442_s9 + $0x1f0] sm:$0xff]  }
 0x366   :  { %9766 = vmatprep.subr.bf16.mxu0 %v10119_v4  ;;  %v5567_v28 = vcombine.low %v11850_v25, %v5502_v11  ;;  %v4019_v48 = vcombine.low %v10289_v39, %v10290_v16  ;;  %v8999_v26 = vld.sshfl [vmem:[#allocation3 + $0x28] sm:$0x12 pattern:$0x76325410]  ;;  %v10158_v56 = vld [vmem:[%s12442_s9 + $0x1e0] sm:$0xff]   ;;  %v5474_v18 = vcombine.high %v8997_v7, %v8997_v7  ;;  %v9005_v59 = vrot.slane %v8997_v7, 9 }
 0x367   :  { %9519 = vmatpush3.bf16.msra.mxu1 %v10128_v31  ;;  %v10149_v31 = vld [vmem:[%s12442_s9 + $0x188] sm:$0xff]   ;;  %v5618_v3 = vrot.slane %v5604_v0, %v10756_v54  ;;  %v8998_v51 = vld.sshfl [vmem:[#allocation3 + $0x24] sm:$0x12 pattern:$0x76325410] }
 0x368   :  { %9520 = vmatprep.subr.bf16.mxu1 %v10129_v22  ;;  %v10152_v22 = vld [vmem:[%s12442_s9 + $0x1d0] sm:$0xff]   ;;  %v8981_v58 = vld.sshfl [vmem:[#allocation3 + $0x1c] sm:$0x12 pattern:$0x76325410]  ;;  %v10160_v5 = vld [vmem:[%s12442_s9 + $0x1a0] sm:$0xff]   ;;  %v5482_v61 = vcombine.high %v8998_v51, %v8998_v51 }
 0x369   :  { %9767 = vmatpush3.bf16.msra.mxu0 %v10119_v4  ;;  %v10291_v4 = vld.sshfl [vmem:[#allocation3 + $0x18] sm:$0xf pattern:$0x76325410]  ;;  %v5362_v45 = vcombine.high %v8981_v58, %v8981_v58  ;;  %v5517_v29 = vrot.slane %v5474_v18, 7  ;;  %v10159_v21 = vld [vmem:[%s12442_s9 + $0x220] sm:$0xff]  }
 0x36a   :  { %9768 = vmatprep.subr.bf16.mxu0 %v10124_v46  ;;  %v3931_v40 = vcombine.low %v10291_v4, %v10288_v23  ;;  %v9000_v33 = vld.sshfl [vmem:[#allocation3 + $0x2c] sm:$0x12 pattern:$0x76325410]  ;;  %v9006_v23 = vrot.slane %v8998_v51, 9  ;;  %v10167_v4 = vld [vmem:[%s12442_s9 + $0x1f8] sm:$0xff]  }
 0x36b   :  { %9521 = vmatpush3.bf16.msra.mxu1 %v10131_v9  ;;  %v11868_v9 = vrot.slane %v5603_v53, %v10756_v54  ;;  %v8965_v10 = vld.sshfl [vmem:[#allocation3 + $0x18] sm:$0x12 pattern:$0x76325410]  ;;  %v5405_v27 = vrot.slane %v5362_v45, 7  ;;  %v5498_v39 = vcombine.high %v9000_v33, %v9000_v33 }
 0x36c   :  { %9522 = vmatprep.subr.bf16.mxu1 %v10132_v47  ;;  %v10154_v47 = vld [vmem:[%s12442_s9 + $0x190] sm:$0xff]   ;;  %v5245_v16 = vcombine.high %v8965_v10, %v8965_v10 }
 0x36d   :  { %9769 = vmatpush3.bf16.msra.mxu0 %v10124_v46  ;;  %v5575_v46 = vrot.slane %v5567_v28, %v10756_v54  ;;  %v5619_v57 = vcombine.low %v11868_v9, %v5618_v3  ;;  %v10166_v28 = vld [vmem:[%s12442_s9 + $0x1b0] sm:$0xff]   ;;  %v9008_v3 = vrot.slane %v9000_v33, 9 }
 0x36e   :  { %9770 = vmatprep.subr.bf16.mxu0 %v10127_v43 }
 0x36f   :  { %9523 = vmatpush3.bf16.msra.mxu1 %v10134_v37  ;;  %v8961_v37 = vld.sshfl [vmem:[#allocation3] sm:$0x12 pattern:$0x76325410] }
 0x370   :  { %9524 = vmatprep.subr.bf16.mxu1 %v10135_v19  ;;  %v10157_v19 = vld [vmem:[%s12442_s9 + $0x198] sm:$0xff]   ;;  %v5213_v41 = vcombine.high %v8961_v37, %v8961_v37  ;;  %v8969_v63 = vrot.slane %v8961_v37, 9 }
 0x371   :  { %9771 = vmatpush3.bf16.msra.mxu0 %v10127_v43  ;;  %v5583_v43 = vcombine.low %v5575_v46, %v5582_v32  ;;  %v10162_v46 = vld [vmem:[%s12442_s9 + $0x228] sm:$0xff]  }
 0x372   :  { %9772 = vmatprep.subr.bf16.mxu0 %v10130_v20  ;;  %v5277_v11 = vrot.slane %v5213_v41, 7 }
 0x373   :  { %9525 = vmatpush3.bf16.msra.mxu1 %v10137_v6  ;;  %v10161_v6 = vld [vmem:[%s12442_s9 + $0x1e8] sm:$0xff]  }
 0x374   :  { %9548 = vmatprep.subr.bf16.mxu1 %v10142_v1  ;;  %v10156_v1 = vld [vmem:[%s12442_s9 + $0x218] sm:$0xff]   ;;  %v5278_v12 = vsel %vm11827_vm12, %v8969_v63, %v5277_v11 }
 0x375   :  { %9773 = vmatpush3.bf16.msra.mxu0 %v10130_v20  ;;  %v5490_v20 = vcombine.high %v8999_v26, %v8999_v26  ;;  %v5531_v32 = vcombine.low %v5278_v12, %v11850_v25  ;;  %v10165_v25 = vld [vmem:[%s12442_s9 + $0x230] sm:$0xff]  }
 0x376   :  { %9774 = vmatprep.subr.bf16.mxu0 %v10133_v38  ;;  %5125 = vmatmul.mubr.bf16.vlgmr.msra.gmra.mrb[40].mxu1 %v3914_v13  ;;  %v9007_v13 = vrot.slane %v8999_v26, 9 }
 0x377   :  { %5132 = vmatprep.mubr.bf16.mxu1 %v3975_v49  ;;  %9549 = vmatpush3.bf16.msra.mxu1 %v10146_v17  ;;  %v5525_v24 = vrot.slane %v5490_v20, 7  ;;  %v5521_v17 = vrot.slane %v5482_v61, 7  ;;  %v8989_v49 = vrot.slane %v8981_v58, 9 }
 0x378   :  { %9550 = vmatprep.subr.bf16.mxu1 %v10147_v15  ;;  %v5518_v15 = vsel %vm11827_vm12, %v9005_v59, %v5517_v29  ;;  %v10171_v59 = vld [vmem:[%s12446_s13 + $0x8] sm:$0xff]  }
 0x379   :  { %9775 = vmatpush3.bf16.msra.mxu0 %v10133_v38  ;;  %v10163_v38 = vld [vmem:[%s12442_s9 + $0x1a8] sm:$0xff]   ;;  %v5522_v53 = vsel %vm11827_vm12, %v9006_v23, %v5521_v17  ;;  %v5406_v0 = vsel %vm11827_vm12, %v8989_v49, %v5405_v27  ;;  %v10172_v17 = vld [vmem:[%s12446_s13 + $0x10] sm:$0xff]  }
 0x37a   :  { %9776 = vmatprep.subr.bf16.mxu0 %v10136_v14 }
 0x37b   :  { %9551 = vmatpush3.bf16.msra.mxu1 %v10149_v31  ;;  %v5584_v31 = vcombine.low %v5406_v0, %v5518_v15 }
 0x37c   :  { %9552 = vmatprep.subr.bf16.mxu1 %v10152_v22 }
 0x37d   :  { %9777 = vmatpush3.bf16.msra.mxu0 %v10136_v14  ;;  %v5526_v14 = vsel %vm11827_vm12, %v9007_v13, %v5525_v24  ;;  %v10173_v13 = vld [vmem:[%s12446_s13 + $0x18] sm:$0xff]  }
 0x37e   :  { %9782 = vmatprep.subr.bf16.mxu0 %v10143_v62  ;;  %5133 = vmatmul.mubr.bf16.gmra.mrb[44].mxu1 %v3931_v40  ;;  %v5585_v22 = vcombine.low %v5522_v53, %v5526_v14  ;;  %v8973_v40 = vrot.slane %v8965_v10, 9 }
 0x37f   :  { %9553 = vmatpush3.bf16.msra.mxu1 %v10154_v47  ;;  %5815 = vmatprep.mubr.bf16.mxu1 %v5583_v43  ;;  %v5529_v47 = vrot.slane %v5498_v39, 7  ;;  %v5592_v43 = vrot.slane %v5584_v31, %v10756_v54  ;;  %v10175_v39 = vld [vmem:[%s12446_s13 + $0x28] sm:$0xff]  }
 0x380   :  { %9779 = vmatmul.mubr.bf16.vlgmr.msra.gmra.mrb[48].mxu0 %v4019_v48  ;;  %9554 = vmatprep.subr.bf16.mxu1 %v10155_v34  ;;  %v5293_v34 = vrot.slane %v5245_v16, 7  ;;  %v5599_v48 = vrot.slane %v5585_v22, %v10756_v54 }
 0x381   :  { %9783 = vmatpush3.bf16.msra.mxu0 %v10143_v62  ;;  %9798 = vmatprep.mubr.bf16.mxu0 %v5619_v57  ;;  %v10169_v62 = vld [vmem:[%s12442_s9 + $0x1b8] sm:$0xff]   ;;  %v5530_v37 = vsel %vm11827_vm12, %v9008_v3, %v5529_v47 }
 0x382   :  { %9784 = vmatprep.subr.bf16.mxu0 %v10148_v50  ;;  %v5294_v7 = vsel %vm11827_vm12, %v8973_v40, %v5293_v34  ;;  %v5600_v26 = vcombine.low %v5592_v43, %v5599_v48  ;;  %v5621_v51 = vcombine.low %v5526_v14, %v5530_v37  ;;  %v10177_v3 = vld [vmem:[%s12446_s13 + $0x38] sm:$0xff]  }
 0x383   :  { %9555 = vmatpush3.bf16.msra.mxu1 %v10157_v19  ;;  %v5620_v19 = vcombine.low %v5518_v15, %v5522_v53  ;;  %v5548_v58 = vcombine.low %v5294_v7, %v5406_v0  ;;  %v10174_v15 = vld [vmem:[%s12446_s13 + $0x20] sm:$0xff]   ;;  %v10176_v0 = vld [vmem:[%s12446_s13 + $0x30] sm:$0xff]  }
 0x384   :  { %9556 = vmatprep.subr.bf16.mxu1 %v10158_v56  ;;  %v10168_v56 = vld [vmem:[%s12442_s9 + $0x238] sm:$0xff]   ;;  %v5635_v18 = vrot.slane %v5621_v51, %v10756_v54 }
 0x385   :  { %9785 = vmatpush3.bf16.msra.mxu0 %v10148_v50  ;;  %v5539_v50 = vrot.slane %v5531_v32, %v10756_v54 }
 0x386   :  { %9786 = vmatprep.subr.bf16.mxu0 %v10153_v60 }
 0x387   :  { %9557 = vmatpush3.bf16.msra.mxu1 %v10160_v5  ;;  %v5547_v57 = vcombine.low %v5539_v50, %v11868_v9  ;;  %v5556_v9 = vrot.slane %v5548_v58, %v10756_v54 }
 0x388   :  { %9558 = vmatprep.subr.bf16.mxu1 %v10161_v6 }
 0x389   :  { %9787 = vmatpush3.bf16.msra.mxu0 %v10153_v60  ;;  %v5628_v60 = vrot.slane %v5620_v19, %v10756_v54 }
 0x38a   :  { %9788 = vmatprep.subr.bf16.mxu0 %v10156_v1 }
 0x38b   :  { %9559 = vmatpush3.bf16.msra.mxu1 %v10163_v38  ;;  %v5564_v20 = vcombine.low %v5556_v9, %v5628_v60  ;;  %v5636_v5 = vcombine.low %v5628_v60, %v5635_v18 }
 0x38c   :  { %9560 = vmatprep.subr.bf16.mxu1 %v10164_v55  ;;  %v10170_v55 = vld [vmem:[%s12446_s13] sm:$0xff]  }
 0x38d   :  { %9789 = vmatpush3.bf16.msra.mxu0 %v10156_v1 }
 0x38e   :  { %9790 = vmatprep.subr.bf16.mxu0 %v10159_v21 }
 0x38f   :  { %9561 = vmatpush3.bf16.msra.mxu1 %v10166_v28 }
 0x390   :  { %9562 = vmatprep.subr.bf16.mxu1 %v10167_v4 }
 0x391   :  { %9791 = vmatpush3.bf16.msra.mxu0 %v10159_v21 }
 0x392   :  { %9792 = vmatprep.subr.bf16.mxu0 %v10162_v46 }
 0x393   :  { %9563 = vmatpush3.bf16.msra.mxu1 %v10169_v62 }
 0x394   :  { %9802 = vmatprep.subr.bf16.mxu1 %v10170_v55 }
 0x395   :  { %9793 = vmatpush3.bf16.msra.mxu0 %v10162_v46 }
 0x396   :  { %9794 = vmatprep.subr.bf16.mxu0 %v10165_v25  ;;  %5816 = vmatmul.mubr.bf16.vlgmr.msra.gmra.mrb[48].mxu1 %v5547_v57 }
 0x397   :  { %5823 = vmatprep.mubr.bf16.mxu1 %v5600_v26  ;;  %9803 = vmatpush3.bf16.msra.mxu1 %v10170_v55 }
 0x398   :  { %9804 = vmatprep.subr.bf16.mxu1 %v10171_v59 }
 0x399   :  { %9795 = vmatpush3.bf16.msra.mxu0 %v10165_v25 }
 0x39a   :  { %9796 = vmatprep.subr.bf16.mxu0 %v10168_v56 }
 0x39b   :  { %9805 = vmatpush3.bf16.msra.mxu1 %v10171_v59 }
 0x39c   :  { %9806 = vmatprep.subr.bf16.mxu1 %v10172_v17 }
 0x39d   :  { %9797 = vmatpush3.bf16.msra.mxu0 %v10168_v56 }
 0x39e   :  { %5824 = vmatmul.mubr.bf16.gmra.mrb[52].mxu1 %v5564_v20 }
 0x39f   :  { %9807 = vmatpush3.bf16.msra.mxu1 %v10172_v17 }
 0x3a0   :  { %9799 = vmatmul.mubr.bf16.vlgmr.msra.gmra.mrb[48].mxu0 %v5636_v5  ;;  %9808 = vmatprep.subr.bf16.mxu1 %v10173_v13 }
 0x3a3   :  { %9809 = vmatpush3.bf16.msra.mxu1 %v10173_v13 }
 0x3a4   :  { %9810 = vmatprep.subr.bf16.mxu1 %v10174_v15 }
 0x3a7   :  { %9811 = vmatpush3.bf16.msra.mxu1 %v10174_v15 }
 0x3a8   :  { %9812 = vmatprep.subr.bf16.mxu1 %v10175_v39 }
 0x3ab   :  { %9813 = vmatpush3.bf16.msra.mxu1 %v10175_v39 }
 0x3ac   :  { %9814 = vmatprep.subr.bf16.mxu1 %v10176_v0 }
 0x3af   :  { %9815 = vmatpush3.bf16.msra.mxu1 %v10176_v0 }
 0x3b0   :  { %9816 = vmatprep.subr.bf16.mxu1 %v10177_v3 }
 0x3b3   :  { %9817 = vmatpush3.bf16.msra.mxu1 %v10177_v3 }
 0x429   :  { %v9488_v41 = vpop.f32.mrb[32].mxu1 }
 0x42a   :  { %v9489_v6 = vpop.f32.mrb[33].mxu1 }
 0x42b   :  { %v9490_v61 = vadd.f32 %v9489_v6, %v9488_v41  ;;  %v9491_v45 = vpop.f32.mrb[34].mxu1  ;;  %v9033_v41 = vld [vmem:[%s12443_s10] ss:$0 sm:$0xff] }
 0x42c   :  { %v9492_v1 = vpop.f32.mrb[35].mxu1 }
 0x42d   :  { %v9493_v63 = vadd.f32 %v9492_v1, %v9491_v45 }
 0x437   :  { %v9494_v33 = vpop.f32.mrb[36].mxu1 }
 0x438   :  { %v9495_v29 = vpop.f32.mrb[37].mxu1 }
 0x439   :  { %v9496_v24 = vadd.f32 %v9495_v29, %v9494_v33  ;;  %v9497_v38 = vpop.f32.mrb[38].mxu1 }
 0x43a   :  { %v9498_v11 = vpop.f32.mrb[39].mxu1 }
 0x43b   :  { %v9499_v10 = vadd.f32 %v9498_v11, %v9497_v38 }
 0x449   :  { %v9526_v27 = vpop.f32.mrb[40].mxu1 }
 0x44a   :  { %v9527_v21 = vpop.f32.mrb[41].mxu1 }
 0x44b   :  { %v9528_v23 = vadd.f32 %v9527_v21, %v9526_v27  ;;  %v9529_v14 = vpop.f32.mrb[42].mxu1 }
 0x44c   :  { %v9530_v49 = vpop.f32.mrb[43].mxu1 }
 0x44d   :  { %v9905_v28 = vadd.f32 %v9528_v23, %v9490_v61  ;;  %v9531_v12 = vadd.f32 %v9530_v49, %v9529_v14 }
 0x44f   :  { %v9911_v16 = vadd.f32 %v9531_v12, %v9493_v63 }
 0x451   :  { %v9532_v4 = vpop.f32.mrb[44].mxu1 }
 0x452   :  { %v9533_v53 = vpop.f32.mrb[45].mxu1 }
 0x453   :  { %v9534_v31 = vadd.f32 %v9533_v53, %v9532_v4  ;;  %v9535_v22 = vpop.f32.mrb[46].mxu1 }
 0x454   :  { %v9536_v46 = vpop.f32.mrb[47].mxu1 }
 0x455   :  { %v9902_v32 = vadd.f32 %v9534_v31, %v9496_v24  ;;  %v9537_v62 = vadd.f32 %v9536_v46, %v9535_v22 }
 0x457   :  { %v9908_v47 = vadd.f32 %v9537_v62, %v9499_v10 }
 0x469   :  { %v9564_v40 = vpop.f32.mrb[48].mxu1 }
 0x46a   :  { %v9565_v34 = vpop.f32.mrb[49].mxu1 }
 0x46b   :  { %v9566_v43 = vadd.f32 %v9565_v34, %v9564_v40  ;;  %v9567_v48 = vpop.f32.mrb[50].mxu1 }
 0x46c   :  { %v9568_v25 = vpop.f32.mrb[51].mxu1 }
 0x46d   :  { %v9906_v50 = vadd.f32 %v9905_v28, %v9566_v43  ;;  %v9569_v37 = vadd.f32 %v9568_v25, %v9567_v48  ;;  %v3657_v48 = vld [vmem:[%s12444_s11] sm:$0x1] }
 0x46f   :  { %v9912_v7 = vadd.f32 %v9911_v16, %v9569_v37  ;;  %v3658_v37 = vld [vmem:[%s12445_s12] sm:$0x1] }
 0x471   :  { %v9570_v57 = vpop.f32.mrb[52].mxu1 }
 0x472   :  { %v9571_v19 = vpop.f32.mrb[53].mxu1 }
 0x473   :  { %v9800_v26 = vpop.f32.mrb[48].mxu0  ;;  %v9572_v56 = vadd.f32 %v9571_v19, %v9570_v57  ;;  %v9573_v51 = vpop.f32.mrb[54].mxu1 }
 0x474   :  { %v5866_v58 = vpop.f32.mrb[49].mxu0  ;;  %v9574_v60 = vpop.f32.mrb[55].mxu1 }
 0x475   :  { %v9907_v18 = vadd.f32 %v9906_v50, %v5866_v58  ;;  %v9801_v9 = vpop.f32.mrb[50].mxu0  ;;  %v9903_v20 = vadd.f32 %v9902_v32, %v9572_v56  ;;  %v9575_v5 = vadd.f32 %v9574_v60, %v9573_v51 }
 0x476   :  { %v5869_v6 = vpop.f32.mrb[51].mxu0 }
 0x477   :  { %v9913_v61 = vadd.f32 %v9912_v7, %v5869_v6  ;;  %v9904_v45 = vadd.f32 %v9903_v20, %v9800_v26  ;;  %v9909_v1 = vadd.f32 %v9908_v47, %v9575_v5  ;;  %v5891_v63 = vadd.f32 %v9907_v18, %v9033_v41 }
 0x479   :  { %v5892_v33 = vadd.f32 %v9913_v61, %v9033_v41  ;;  %v5893_v29 = vadd.f32 %v9904_v45, %v9033_v41  ;;  %v9910_v24 = vadd.f32 %v9909_v1, %v9801_v9 }
 0x47b   :  { %v5895_v38 = vadd.f32 %v5892_v33, %v5891_v63  ;;  %v5894_v11 = vadd.f32 %v9910_v24, %v9033_v41 }
 0x47d   :  { %v5896_v10 = vadd.f32 %v5895_v38, %v5893_v29  ;;  %v10181_v38 = vld [vmem:[%s12450_s17 + $0x108] sm:$0xff]  }
 0x47f   :  { %v5897_v55 = vadd.f32 %v5896_v10, %v5894_v11  ;;  %v10183_v10 = vld [vmem:[%s12450_s17 + $0xc8] sm:$0xff]  }
 0x481   :  { %v5898_v59 = vrot.slane %v5897_v55, 4 }
 0x483   :  { %v5899_v17 = vadd.f32 %v5898_v59, %v5897_v55  ;;  %v10184_v55 = vld [vmem:[%s12450_s17 + $0x110] sm:$0xff]  }
 0x484   :  { %v10185_v59 = vld [vmem:[%s12450_s17 + $0x150] sm:$0xff]  }
 0x485   :  { %v5900_v13 = vrot.slane %v5899_v17, 2 }
 0x487   :  { %v5901_v27 = vadd.f32 %v5900_v13, %v5899_v17  ;;  %v10186_v17 = vld [vmem:[%s12450_s17 + $0xd0] sm:$0xff]   ;;  %v10187_v13 = vld [vmem:[%s12450_s17 + $0x118] sm:$0xff]  }
 0x489   :  { %v5902_v21 = vrot.slane %v5901_v27, 1 }
 0x48b   :  { %v5903_v15 = vadd.f32 %v5902_v21, %v5901_v27  ;;  %v10188_v27 = vld [vmem:[%s12450_s17 + $0x158] sm:$0xff]  }
 0x48c   :  { %v10189_v21 = vld [vmem:[%s12450_s17 + $0xd8] sm:$0xff]  }
 0x48d   :  { %v5904_v23 = vmul.f32 0.03125, %v5903_v15  ;;  %v10190_v15 = vld [vmem:[%s12450_s17 + $0x120] sm:$0xff]  }
 0x48f   :  { %v5905_v14 = vsub.f32 %v5891_v63, %v5904_v23  ;;  %v5906_v49 = vsub.f32 %v5892_v33, %v5904_v23  ;;  %v5907_v28 = vsub.f32 %v5893_v29, %v5904_v23  ;;  %v5908_v12 = vsub.f32 %v5894_v11, %v5904_v23 }
 0x491   :  { %v5909_v39 = vmul.f32 %v5905_v14, %v5905_v14  ;;  %v5910_v16 = vmul.f32 %v5906_v49, %v5906_v49  ;;  %v5911_v4 = vmul.f32 %v5907_v28, %v5907_v28  ;;  %v5912_v0 = vmul.f32 %v5908_v12, %v5908_v12  ;;  %v10192_v14 = vld [vmem:[%s12450_s17 + $0xe0] sm:$0xff]   ;;  %v10193_v49 = vld [vmem:[%s12450_s17 + $0x128] sm:$0xff]  }
 0x492   :  { %v10194_v28 = vld [vmem:[%s12450_s17 + $0x168] sm:$0xff]  }
 0x493   :  { %v5913_v53 = vadd.f32 %v5910_v16, %v5909_v39  ;;  %v10195_v12 = vld [vmem:[%s12450_s17 + $0xe8] sm:$0xff]   ;;  %v10196_v39 = vld [vmem:[%s12450_s17 + $0x130] sm:$0xff]  }
 0x494   :  { %v10197_v16 = vld [vmem:[%s12450_s17 + $0x170] sm:$0xff]  }
 0x495   :  { %v5914_v31 = vadd.f32 %v5913_v53, %v5911_v4  ;;  %v10198_v4 = vld [vmem:[%s12450_s17 + $0xf0] sm:$0xff]   ;;  %v10199_v53 = vld [vmem:[%s12450_s17 + $0x138] sm:$0xff]  }
 0x497   :  { %v5915_v22 = vadd.f32 %v5914_v31, %v5912_v0  ;;  %v10200_v0 = vld [vmem:[%s12450_s17 + $0x178] sm:$0xff]  }
 0x498   :  { %v10201_v31 = vld [vmem:[%s12450_s17 + $0xf8] sm:$0xff]  }
 0x499   :  { %v5916_v46 = vrot.slane %v5915_v22, 4 }
 0x49b   :  { %v5917_v32 = vadd.f32 %v5916_v46, %v5915_v22  ;;  %v10202_v22 = vld [vmem:[%s12450_s17 + $0x40] sm:$0xff]  }
 0x49c   :  { %v12061_v46 = vld [vmem:[%s12450_s17 + $0x80] sm:$0xff]  }
 0x49d   :  { %v5918_v62 = vrot.slane %v5917_v32, 2 }
 0x49f   :  { %v5919_v3 = vadd.f32 %v5918_v62, %v5917_v32  ;;  %v9034_v32 = vld [vmem:[%s12447_s14] ss:$0 sm:$0xff] }
 0x4a1   :  { %v5920_v47 = vrot.slane %v5919_v3, 1 }
 0x4a3   :  { %v5921_v40 = vadd.f32 %v5920_v47, %v5919_v3 }
 0x4a5   :  { %v5922_v34 = vmul.f32 0.03125, %v5921_v40 }
 0x4a7   :  { %v5923_v43 = vadd.f32 1e-05, %v5922_v34 }
 0x4a9   :  { %10274 = vrsqrt.f32 %v5923_v43 }
 0x4b3   :  { %v10275_v25 = vpop.eup %10274 }
 0x4b4   :  { %v5925_v50 = vmul.f32 %v10275_v25, %v3657_v48 }
 0x4b6   :  { %v5926_v7 = vmul.f32 %v5925_v50, %v5904_v23  ;;  %v5931_v57 = vrot.slane %v5925_v50, %v10747_v44  ;;  %v10191_v23 = vld [vmem:[%s12450_s17 + $0x160] sm:$0xff]  }
 0x4b8   :  { %v5927_v19 = vsub.f32 %v3658_v37, %v5926_v7  ;;  %v5935_v26 = vmul.f32 %v5931_v57, %v5894_v11  ;;  %v5932_v56 = vmul.f32 %v5931_v57, %v5891_v63  ;;  %v5933_v51 = vmul.f32 %v5931_v57, %v5892_v33  ;;  %v10178_v63 = vld [vmem:[%s12450_s17 + $0x100] sm:$0xff]   ;;  %v10182_v11 = vld [vmem:[%s12450_s17 + $0x148] sm:$0xff]  }
 0x4b9   :  { %v5934_v58 = vmul.f32 %v5931_v57, %v5893_v29  ;;  %v10179_v33 = vld [vmem:[%s12450_s17 + $0x140] sm:$0xff]   ;;  %9596 = vmatprep.subr.bf16.mxu0 %v10178_v63 }
 0x4ba   :  { %v5940_v60 = vrot.slane %v5927_v19, %v10747_v44  ;;  %v10180_v29 = vld [vmem:[%s12450_s17 + $0xc0] sm:$0xff]   ;;  %9822 = vmatprep.subr.bf16.mxu1 %v10179_v33 }
 0x4bb   :  { %9597 = vmatpush3.bf16.msra.mxu0 %v10180_v29 }
 0x4bc   :  { %v5945_v18 = vadd.f32 %v5940_v60, %v5935_v26  ;;  %v5942_v9 = vadd.f32 %v5940_v60, %v5932_v56  ;;  %v5943_v20 = vadd.f32 %v5940_v60, %v5933_v51  ;;  %v5944_v5 = vadd.f32 %v5940_v60, %v5934_v58  ;;  %9598 = vmatprep.subr.bf16.mxu0 %v10181_v38 }
 0x4be   :  { %v5949_v41 = vmax.f32 %v5945_v18, 0.0  ;;  %v5946_v6 = vmax.f32 %v5942_v9, 0.0  ;;  %v5947_v61 = vmax.f32 %v5943_v20, 0.0  ;;  %v5948_v45 = vmax.f32 %v5944_v5, 0.0 }
 0x4bf   :  { %9599 = vmatpush3.bf16.msra.mxu0 %v10183_v10 }
 0x4c0   :  { %v5950_v1 = vpack.c.bf16 %v5947_v61, %v5946_v6  ;;  %v5951_v24 = vpack.c.bf16 %v5949_v41, %v5948_v45  ;;  %9600 = vmatprep.subr.bf16.mxu0 %v10184_v55 }
 0x4c2   :  { %9818 = vmatprep.mubr.bf16.mxu1 %v5950_v1 }
 0x4c3   :  { %9819 = vmatmul.mubr.bf16.vlgmr.msra.gmra.mrb[56].mxu1 %v5951_v24  ;;  %9601 = vmatpush3.bf16.msra.mxu0 %v10186_v17 }
 0x4c4   :  { %9823 = vmatpush3.bf16.msra.mxu1 %v10179_v33  ;;  %9602 = vmatprep.subr.bf16.mxu0 %v10187_v13  ;;  %v6059_v13 = vld [vmem:[%s12448_s15] sm:$0x1] }
 0x4c5   :  { %9824 = vmatprep.subr.bf16.mxu1 %v10182_v11 }
 0x4c7   :  { %9603 = vmatpush3.bf16.msra.mxu0 %v10189_v21 }
 0x4c8   :  { %9825 = vmatpush3.bf16.msra.mxu1 %v10182_v11  ;;  %9604 = vmatprep.subr.bf16.mxu0 %v10190_v15 }
 0x4c9   :  { %9826 = vmatprep.subr.bf16.mxu1 %v10185_v59 }
 0x4cb   :  { %9605 = vmatpush3.bf16.msra.mxu0 %v10192_v14 }
 0x4cc   :  { %9827 = vmatpush3.bf16.msra.mxu1 %v10185_v59  ;;  %9606 = vmatprep.subr.bf16.mxu0 %v10193_v49 }
 0x4cd   :  { %9828 = vmatprep.subr.bf16.mxu1 %v10188_v27 }
 0x4cf   :  { %9607 = vmatpush3.bf16.msra.mxu0 %v10195_v12  ;;  %v9051_v12 = vld.sshfl [vmem:[#allocation3] sm:$0x13 pattern:$0x76325410] }
 0x4d0   :  { %9829 = vmatpush3.bf16.msra.mxu1 %v10188_v27  ;;  %9608 = vmatprep.subr.bf16.mxu0 %v10196_v39  ;;  %v9070_v27 = vld.sshfl [vmem:[#allocation3 + $0x14] sm:$0x13 pattern:$0x76325410] }
 0x4d1   :  { %9830 = vmatprep.subr.bf16.mxu1 %v10191_v23  ;;  %v7075_v14 = vshrl.u32 %v9070_v27, 16  ;;  %v7078_v39 = vshll.u32 %v9070_v27, 16 }
 0x4d3   :  { %9609 = vmatpush3.bf16.msra.mxu0 %v10198_v4  ;;  %v6999_v4 = vcombine.high %v9070_v27, %v9070_v27 }
 0x4d4   :  { %9831 = vmatpush3.bf16.msra.mxu1 %v10191_v23  ;;  %9610 = vmatprep.subr.bf16.mxu0 %v10199_v53  ;;  %v6060_v23 = vld [vmem:[%s12449_s16] sm:$0x1]  ;;  %v6591_v53 = vcombine.high %v9051_v12, %v9051_v12 }
 0x4d5   :  { %9832 = vmatprep.subr.bf16.mxu1 %v10194_v28 }
 0x4d7   :  { %9611 = vmatpush3.bf16.msra.mxu0 %v10201_v31 }
 0x4d8   :  { %9833 = vmatpush3.bf16.msra.mxu1 %v10194_v28  ;;  %9634 = vmatprep.subr.bf16.mxu0 %v10202_v22  ;;  %v12095_v22 = vrot.slane %v7075_v14, 6 }
 0x4d9   :  { %9834 = vmatprep.subr.bf16.mxu1 %v10197_v16 }
 0x4dc   :  { %9835 = vmatpush3.bf16.msra.mxu1 %v10197_v16 }
 0x4dd   :  { %9836 = vmatprep.subr.bf16.mxu1 %v10200_v0 }
 0x4e0   :  { %9837 = vmatpush3.bf16.msra.mxu1 %v10200_v0  ;;  %v9074_v0 = vld.sshfl [vmem:[#allocation3 + $0x2c] sm:$0x13 pattern:$0x76325410] }
 0x4e1   :  { %9842 = vmatprep.subr.bf16.mxu1 %v12061_v46 }
 0x596   :  { %v9820_v62 = vpop.f32.mrb[56].mxu1 }
 0x597   :  { %v6040_v3 = vpop.f32.mrb[57].mxu1  ;;  %v6049_v43 = vadd.f32 %v9820_v62, %v9034_v32  ;;  %v6652_v62 = vshll.u32 %v9051_v12, 16 }
 0x598   :  { %v6041_v47 = vadd.f32 %v9034_v32, %v6040_v3  ;;  %v9821_v40 = vpop.f32.mrb[58].mxu1 }
 0x599   :  { %v6043_v34 = vpop.f32.mrb[59].mxu1  ;;  %v6052_v50 = vadd.f32 %v9821_v40, %v9034_v32  ;;  %v12074_v7 = vadd.f32 %v6049_v43, %v11616_v2  ;;  %v12101_v43 = vrot.slane %v7078_v39, 7 }
 0x59a   :  { %v6044_v48 = vadd.f32 %v9034_v32, %v6043_v34  ;;  %v12068_v25 = vadd.f32 %v6041_v47, %v11611_v30  ;;  %v6649_v32 = vshrl.u32 %v9051_v12, 16 }
 0x59b   :  { %v12079_v19 = vadd.f32 %v6052_v50, %v11620_v52  ;;  %v7131_v50 = vshrl.u32 %v9074_v0, 16 }
 0x59c   :  { %v12071_v37 = vadd.f32 %v6044_v48, %v11609_v35  ;;  %v7031_v48 = vcombine.high %v9074_v0, %v9074_v0 }
 0x59e   :  { %v6225_v57 = vadd.f32 %v12071_v37, %v12068_v25 }
 0x5a0   :  { %v6226_v26 = vadd.f32 %v6225_v57, %v12074_v7  ;;  %v7134_v57 = vshll.u32 %v9074_v0, 16 }
 0x5a2   :  { %v6227_v56 = vadd.f32 %v6226_v26, %v12079_v19 }
 0x5a4   :  { %v6228_v51 = vrot.slane %v6227_v56, 4 }
 0x5a6   :  { %v6229_v30 = vadd.f32 %v6228_v51, %v6227_v56 }
 0x5a8   :  { %v6230_v58 = vrot.slane %v6229_v30, 2 }
 0x5aa   :  { %v6231_v60 = vadd.f32 %v6230_v58, %v6229_v30  ;;  %v12103_v58 = vshll.u32 %v6999_v4, 16 }
 0x5ac   :  { %v6232_v18 = vrot.slane %v6231_v60, 1 }
 0x5ae   :  { %v6233_v35 = vadd.f32 %v6232_v18, %v6231_v60  ;;  %v12105_v60 = vrot.slane %v6649_v32, 6  ;;  %v12107_v18 = vrot.slane %v6652_v62, 7 }
 0x5b0   :  { %v6234_v9 = vmul.f32 0.03125, %v6233_v35  ;;  %v12109_v35 = vshll.u32 %v6591_v53, 16 }
 0x5b2   :  { %v6235_v2 = vsub.f32 %v12068_v25, %v6234_v9  ;;  %v6236_v20 = vsub.f32 %v12071_v37, %v6234_v9  ;;  %v6237_v5 = vsub.f32 %v12074_v7, %v6234_v9  ;;  %v6238_v52 = vsub.f32 %v12079_v19, %v6234_v9 }
 0x5b4   :  { %v6239_v41 = vmul.f32 %v6235_v2, %v6235_v2  ;;  %v6240_v6 = vmul.f32 %v6236_v20, %v6236_v20  ;;  %v6241_v61 = vmul.f32 %v6237_v5, %v6237_v5  ;;  %v6242_v1 = vmul.f32 %v6238_v52, %v6238_v52 }
 0x5b5   :  { %v7081_v52 = vor.u32 %v12101_v43, %v12095_v22 }
 0x5b6   :  { %v6243_v45 = vadd.f32 %v6240_v6, %v6239_v41  ;;  %v12113_v41 = vrot.slane %v7131_v50, 6  ;;  %v12115_v6 = vrot.slane %v7134_v57, 7 }
 0x5b8   :  { %v6244_v24 = vadd.f32 %v6243_v45, %v6241_v61  ;;  %v12117_v61 = vshll.u32 %v7031_v48, 16 }
 0x5ba   :  { %v6245_v63 = vadd.f32 %v6244_v24, %v6242_v1 }
 0x5bc   :  { %v6246_v33 = vrot.slane %v6245_v63, 4 }
 0x5be   :  { %v6247_v29 = vadd.f32 %v6246_v33, %v6245_v63 }
 0x5c0   :  { %v6248_v38 = vrot.slane %v6247_v29, 2 }
 0x5c2   :  { %v6249_v11 = vadd.f32 %v6248_v38, %v6247_v29 }
 0x5c4   :  { %v6250_v10 = vrot.slane %v6249_v11, 1 }
 0x5c6   :  { %v6251_v55 = vadd.f32 %v6250_v10, %v6249_v11 }
 0x5c8   :  { %v6252_v59 = vmul.f32 0.03125, %v6251_v55 }
 0x5ca   :  { %v6253_v17 = vadd.f32 1e-05, %v6252_v59 }
 0x5cc   :  { %10276 = vrsqrt.f32 %v6253_v17 }
 0x5d6   :  { %v10277_v21 = vpop.eup %10276 }
 0x5d7   :  { %v6255_v15 = vmul.f32 %v10277_v21, %v6059_v13 }
 0x5d9   :  { %v6256_v49 = vmul.f32 %v6255_v15, %v6234_v9  ;;  %v6261_v28 = vrot.slane %v6255_v15, %v10747_v44 }
 0x5db   :  { %v6257_v16 = vsub.f32 %v6060_v23, %v6256_v49  ;;  %v6262_v31 = vmul.f32 %v6261_v28, %v12068_v25  ;;  %v6263_v3 = vmul.f32 %v6261_v28, %v12071_v37  ;;  %v6264_v47 = vmul.f32 %v6261_v28, %v12074_v7 }
 0x5dc   :  { %v6265_v40 = vmul.f32 %v6261_v28, %v12079_v19 }
 0x5dd   :  { %v6270_v34 = vrot.slane %v6257_v16, %v10747_v44 }
 0x5df   :  { %v6272_v26 = vadd.f32 %v6270_v34, %v6262_v31  ;;  %v6273_v56 = vadd.f32 %v6270_v34, %v6263_v3  ;;  %v6274_v51 = vadd.f32 %v6270_v34, %v6264_v47  ;;  %v6275_v30 = vadd.f32 %v6270_v34, %v6265_v40  ;;  %v6388_v34 = vld [vmem:[#allocation3 + $0x4] sm:$0x7] }
 0x5e1   :  { %v6276_v9 = vmax.f32 %v6272_v26, 0.0  ;;  %v6277_v2 = vmax.f32 %v6273_v56, 0.0  ;;  %v6278_v20 = vmax.f32 %v6274_v51, 0.0  ;;  %v6279_v5 = vmax.f32 %v6275_v30, 0.0  ;;  %v6391_v56 = vld [vmem:[#allocation3 + $0x8] sm:$0x7] }
 0x5e2   :  { %v6394_v51 = vld [vmem:[#allocation3 + $0xc] sm:$0x7] }
 0x5e3   :  { %v6284_v45 = vcombine.high %v6276_v9, %v6276_v9  ;;  %v6285_v1 = vcombine.high %v6277_v2, %v6277_v2  ;;  %v6286_v24 = vcombine.high %v6278_v20, %v6278_v20  ;;  %v6287_v63 = vcombine.high %v6279_v5, %v6279_v5 }
 0x5e4   :  { %v9229_v33 = vpack.c.bf16 %v6276_v9, %v6276_v9  ;;  %v9231_v29 = vpack.c.bf16 %v6277_v2, %v6277_v2  ;;  %v9233_v38 = vpack.c.bf16 %v6278_v20, %v6278_v20  ;;  %v9235_v11 = vpack.c.bf16 %v6279_v5, %v6279_v5  ;;  %v6397_v5 = vld [vmem:[#allocation3 + $0x10] sm:$0x7] }
 0x5e5   :  { %v9230_v10 = vpack.c.bf16 %v6284_v45, %v6284_v45  ;;  %v9232_v55 = vpack.c.bf16 %v6285_v1, %v6285_v1  ;;  %v9234_v59 = vpack.c.bf16 %v6286_v24, %v6286_v24  ;;  %v9236_v17 = vpack.c.bf16 %v6287_v63, %v6287_v63 }
 0x5e6   :  { %v6325_v13 = vshrl.u32 %v9229_v33, 16  ;;  %v6328_v27 = vshll.u32 %v9229_v33, 16  ;;  %v6339_v21 = vshrl.u32 %v9231_v29, 16  ;;  %v6342_v15 = vshll.u32 %v9231_v29, 16  ;;  %v6400_v33 = vld [vmem:[#allocation3 + $0x1c] sm:$0x7] }
 0x5e7   :  { %v6332_v23 = vshrl.u32 %v9230_v10, 16  ;;  %v6335_v14 = vshll.u32 %v9230_v10, 16  ;;  %v6346_v49 = vshrl.u32 %v9232_v55, 16  ;;  %v6349_v28 = vshll.u32 %v9232_v55, 16 }
 0x5e8   :  { %v6327_v12 = vrot.slane %v6325_v13, 7  ;;  %v6341_v39 = vrot.slane %v6339_v21, 7  ;;  %v6353_v16 = vshrl.u32 %v9233_v38, 16  ;;  %v6356_v4 = vshll.u32 %v9233_v38, 16  ;;  %v6406_v13 = vld [vmem:[#allocation3 + $0x24] sm:$0x7] }
 0x5e9   :  { %v6334_v53 = vrot.slane %v6332_v23, 7  ;;  %v6348_v0 = vrot.slane %v6346_v49, 7  ;;  %v6360_v31 = vshrl.u32 %v9234_v59, 16  ;;  %v6363_v32 = vshll.u32 %v9234_v59, 16  ;;  %v6403_v59 = vld [vmem:[#allocation3 + $0x20] sm:$0x7] }
 0x5ea   :  { %v6330_v62 = vor.u32 %v6328_v27, %v6327_v12  ;;  %v6344_v3 = vor.u32 %v6342_v15, %v6341_v39  ;;  %v6355_v47 = vrot.slane %v6353_v16, 7  ;;  %v6367_v40 = vshrl.u32 %v9235_v11, 16  ;;  %v9055_v29 = vld.sshfl [vmem:[#allocation3 + $0x18] sm:$0x13 pattern:$0x76325410] }
 0x5eb   :  { %v6337_v48 = vor.u32 %v6335_v14, %v6334_v53  ;;  %v6351_v50 = vor.u32 %v6349_v28, %v6348_v0  ;;  %v6362_v57 = vrot.slane %v6360_v31, 7  ;;  %v6370_v26 = vshll.u32 %v9235_v11, 16  ;;  %v6409_v12 = vld [vmem:[#allocation3 + $0x28] sm:$0x7] }
 0x5ec   :  { %v6358_v30 = vor.u32 %v6356_v4, %v6355_v47  ;;  %v6369_v9 = vrot.slane %v6367_v40, 7  ;;  %v6374_v2 = vshrl.u32 %v9236_v17, 16  ;;  %v6377_v20 = vshll.u32 %v9236_v17, 16 }
 0x5ed   :  { %v6365_v45 = vor.u32 %v6363_v32, %v6362_v57  ;;  %v6389_v1 = vsel %vm10815_vm9, %v6330_v62, %v6388_v34  ;;  %v6392_v24 = vsel %vm10815_vm9, %v6337_v48, %v6391_v56  ;;  %v6395_v63 = vsel %vm10815_vm9, %v6344_v3, %v6394_v51 }
 0x5ee   :  { %v6372_v38 = vor.u32 %v6370_v26, %v6369_v9  ;;  %v6376_v11 = vrot.slane %v6374_v2, 7  ;;  %v6398_v10 = vsel %vm10815_vm9, %v6351_v50, %v6397_v5  ;;  %v6401_v55 = vsel %vm10815_vm9, %v6358_v30, %v6400_v33  ;;  %6390 = vst [vmem:[#allocation3 + $0x4] sm:$0x7] %v6389_v1  ;;  %6393 = vst [vmem:[#allocation3 + $0x8] sm:$0x7] %v6392_v24 }
 0x5ef   :  { %6396 = vst [vmem:[#allocation3 + $0xc] sm:$0x7] %v6395_v63  ;;  %v6404_v17 = vsel %vm10815_vm9, %v6365_v45, %v6403_v59  ;;  %6399 = vst [vmem:[#allocation3 + $0x10] sm:$0x7] %v6398_v10  ;;  %v6655_v27 = vor.u32 %v12107_v18, %v12105_v60  ;;  %v7137_v21 = vor.u32 %v12115_v6, %v12113_v41  ;;  %v6705_v49 = vshrl.u32 %v9055_v29, 16 }
 0x5f0   :  { %6402 = vst [vmem:[#allocation3 + $0x1c] sm:$0x7] %v6401_v55  ;;  %v6623_v15 = vcombine.high %v9055_v29, %v9055_v29  ;;  %v6379_v23 = vor.u32 %v6377_v20, %v6376_v11  ;;  %v6407_v14 = vsel %vm10815_vm9, %v6372_v38, %v6406_v13  ;;  %6405 = vst [vmem:[#allocation3 + $0x20] sm:$0x7] %v6404_v17  ;;  %v6708_v28 = vshll.u32 %v9055_v29, 16 }
 0x5f1   :  { %6408 = vst [vmem:[#allocation3 + $0x24] sm:$0x7] %v6407_v14  ;;  %v7086_v16 = vrot.slane %v12103_v58, 7  ;;  %v7082_v60 = vrot.slane %v7081_v52, 2  ;;  %v6656_v18 = vrot.slane %v6655_v27, 2  ;;  %v6660_v41 = vrot.slane %v12109_v35, 7 }
 0x5f2   :  { %v6410_v39 = vsel %vm10815_vm9, %v6379_v23, %v6409_v12  ;;  %v7142_v6 = vrot.slane %v12117_v61, 7  ;;  %v12145_v4 = vrot.slane %v7137_v21, 2  ;;  %v12147_v53 = vrot.slane %v6705_v49, 6 }
 0x5f3   :  { %6411 = vst [vmem:[#allocation3 + $0x28] sm:$0x7] %v6410_v39  ;;  %v12149_v0 = vrot.slane %v6708_v28, 7  ;;  %v12151_v42 = vshll.u32 %v6623_v15, 16  ;;  %v12155_v35 = vsel %vm10891_vm0, %v7082_v60, %v7086_v16  ;;  %v6661_v57 = vsel %vm10891_vm0, %v6656_v18, %v6660_v41 }
 0x5f5   :  { %v9059_v31 = vld.sshfl [vmem:[#allocation3 + $0x4] sm:$0x13 pattern:$0x76325410]  ;;  %v6716_v63 = vrot.slane %v12151_v42, 7 }
 0x5f6   :  { %v9060_v58 = vld.sshfl [vmem:[#allocation3 + $0x8] sm:$0x13 pattern:$0x76325410]  ;;  %v6783_v32 = vcombine.high %v9059_v31, %v9059_v31  ;;  %v6841_v62 = vshrl.u32 %v9059_v31, 16  ;;  %v6844_v3 = vshll.u32 %v9059_v31, 16  ;;  %v6711_v31 = vor.u32 %v12149_v0, %v12147_v53 }
 0x5f7   :  { %v9061_v22 = vld.sshfl [vmem:[#allocation3 + $0xc] sm:$0x13 pattern:$0x76325410]  ;;  %v6791_v43 = vcombine.high %v9060_v58, %v9060_v58  ;;  %v6855_v52 = vshrl.u32 %v9060_v58, 16  ;;  %v6858_v47 = vshll.u32 %v9060_v58, 16 }
 0x5f8   :  { %v9062_v40 = vld.sshfl [vmem:[#allocation3 + $0x10] sm:$0x13 pattern:$0x76325410]  ;;  %v6799_v34 = vcombine.high %v9061_v22, %v9061_v22  ;;  %v6843_v48 = vrot.slane %v6841_v62, 6  ;;  %v6846_v50 = vrot.slane %v6844_v3, 7 }
 0x5f9   :  { %v6807_v26 = vcombine.high %v9062_v40, %v9062_v40  ;;  %v6850_v56 = vshll.u32 %v6783_v32, 16  ;;  %v6857_v51 = vrot.slane %v6855_v52, 6  ;;  %v6860_v30 = vrot.slane %v6858_v47, 7 }
 0x5fa   :  { %v6847_v9 = vor.u32 %v6846_v50, %v6843_v48  ;;  %v6864_v2 = vshll.u32 %v6791_v43, 16  ;;  %v6869_v20 = vshrl.u32 %v9061_v22, 16  ;;  %v6872_v5 = vshll.u32 %v9061_v22, 16 }
 0x5fb   :  { %v6861_v45 = vor.u32 %v6860_v30, %v6857_v51  ;;  %v6878_v1 = vshll.u32 %v6799_v34, 16  ;;  %v6883_v24 = vshrl.u32 %v9062_v40, 16  ;;  %v6852_v29 = vrot.slane %v6850_v56, 7 }
 0x5fc   :  { %v6848_v33 = vrot.slane %v6847_v9, 2  ;;  %v6871_v38 = vrot.slane %v6869_v20, 6  ;;  %v6874_v11 = vrot.slane %v6872_v5, 7  ;;  %v6866_v55 = vrot.slane %v6864_v2, 7 }
 0x5fd   :  { %v6862_v10 = vrot.slane %v6861_v45, 2  ;;  %v6885_v59 = vrot.slane %v6883_v24, 6  ;;  %v6886_v17 = vshll.u32 %v9062_v40, 16  ;;  %v6880_v21 = vrot.slane %v6878_v1, 7 }
 0x5fe   :  { %v6853_v13 = vsel %vm10891_vm0, %v6848_v33, %v6852_v29  ;;  %v6875_v27 = vor.u32 %v6874_v11, %v6871_v38  ;;  %v6892_v15 = vshll.u32 %v6807_v26, 16  ;;  %v9071_v23 = vld.sshfl [vmem:[#allocation3 + $0x20] sm:$0x13 pattern:$0x76325410] }
 0x5ff   :  { %v6867_v14 = vsel %vm10891_vm0, %v6862_v10, %v6866_v55  ;;  %v6888_v49 = vrot.slane %v6886_v17, 7  ;;  %v7144_v28 = vcombine.low %v6661_v57, %v6853_v13  ;;  %v9072_v12 = vld.sshfl [vmem:[#allocation3 + $0x24] sm:$0x13 pattern:$0x76325410]  ;;  %v7007_v39 = vcombine.high %v9071_v23, %v9071_v23 }
 0x600   :  { %v6876_v16 = vrot.slane %v6875_v27, 2  ;;  %v6894_v60 = vrot.slane %v6892_v15, 7  ;;  %v7180_v18 = vcombine.low %v6853_v13, %v6867_v14  ;;  %v9073_v41 = vld.sshfl [vmem:[#allocation3 + $0x28] sm:$0x13 pattern:$0x76325410]  ;;  %v7015_v62 = vcombine.high %v9072_v12, %v9072_v12 }
 0x601   :  { %v6889_v58 = vor.u32 %v6888_v49, %v6885_v59  ;;  %v7152_v32 = vrot.slane %v7144_v28, %v10756_v54  ;;  %v7089_v3 = vshrl.u32 %v9071_v23, 16  ;;  %v7023_v43 = vcombine.high %v9073_v41, %v9073_v41  ;;  %v9063_v53 = vld.sshfl [vmem:[#allocation3 + $0x1c] sm:$0x13 pattern:$0x76325410] }
 0x602   :  { %v6881_v22 = vsel %vm10891_vm0, %v6876_v16, %v6880_v21  ;;  %v7092_v52 = vshll.u32 %v9071_v23, 16  ;;  %v7098_v47 = vshll.u32 %v7007_v39, 16  ;;  %v7188_v50 = vrot.slane %v7180_v18, %v10756_v54  ;;  %v10204_v23 = vld [vmem:[%s12450_s17] sm:$0xff]   ;;  %v10207_v39 = vld [vmem:[%s12450_s17 + $0x48] sm:$0xff]  }
 0x603   :  { %v6890_v40 = vrot.slane %v6889_v58, 2  ;;  %v7216_v34 = vcombine.low %v6867_v14, %v6881_v22  ;;  %v7091_v48 = vrot.slane %v7089_v3, 6  ;;  %v7103_v26 = vshrl.u32 %v9072_v12, 16 }
 0x604   :  { %v7094_v57 = vrot.slane %v7092_v52, 7  ;;  %v7106_v56 = vshll.u32 %v9072_v12, 16  ;;  %v7112_v30 = vshll.u32 %v7015_v62, 16  ;;  %v7100_v1 = vrot.slane %v7098_v47, 7  ;;  %v10209_v62 = vld [vmem:[%s12450_s17 + $0x8] sm:$0xff]  }
 0x605   :  { %v6895_v0 = vsel %vm10891_vm0, %v6890_v40, %v6894_v60  ;;  %v7224_v51 = vrot.slane %v7216_v34, %v10756_v54  ;;  %v7105_v5 = vrot.slane %v7103_v26, 6  ;;  %v7117_v33 = vshrl.u32 %v9073_v41, 16  ;;  %v10293_v47 = vld.sshfl [vmem:[#allocation3 + $0x10] sm:$0xf pattern:$0x76325410] }
 0x606   :  { %v7181_v9 = vcombine.low %v6881_v22, %v6895_v0  ;;  %v7217_v2 = vcombine.low %v6895_v0, %v12155_v35  ;;  %v7095_v20 = vor.u32 %v7094_v57, %v7091_v48  ;;  %v7108_v24 = vrot.slane %v7106_v56, 7  ;;  %v10210_v34 = vld [vmem:[%s12450_s17 + $0x50] sm:$0xff]  }
 0x607   :  { %v7160_v45 = vcombine.low %v7152_v32, %v7224_v51  ;;  %v7120_v10 = vshll.u32 %v9073_v41, 16  ;;  %v7114_v59 = vrot.slane %v7112_v30, 7  ;;  %v7119_v17 = vrot.slane %v7117_v33, 6  ;;  %v10212_v56 = vld [vmem:[%s12450_s17 + $0x10] sm:$0xff]   ;;  %v10218_v33 = vld [vmem:[%s12450_s17 + $0x60] sm:$0xff]  }
 0x608   :  { %v7195_v29 = vrot.slane %v7181_v9, %v10756_v54  ;;  %v7231_v38 = vrot.slane %v7217_v2, %v10756_v54  ;;  %v7096_v11 = vrot.slane %v7095_v20, 2  ;;  %v7109_v55 = vor.u32 %v7108_v24, %v7105_v5  ;;  %v10295_v0 = vld.sshfl [vmem:[#allocation3 + $0xc] sm:$0xf pattern:$0x76325410] }
 0x609   :  { %v6815_v13 = vcombine.high %v9063_v53, %v9063_v53  ;;  %v7122_v15 = vrot.slane %v7120_v10, 7  ;;  %v7126_v35 = vshll.u32 %v7023_v43, 16  ;;  %v6897_v28 = vshrl.u32 %v9063_v53, 16  ;;  %v10208_v5 = vld [vmem:[%s12450_s17 + $0x88] sm:$0xff]  }
 0x60a   :  { %v7196_v27 = vcombine.low %v7188_v50, %v7195_v29  ;;  %v7232_v21 = vcombine.low %v7224_v51, %v7231_v38  ;;  %v7101_v14 = vsel %vm10891_vm0, %v7096_v11, %v7100_v1  ;;  %v7110_v49 = vrot.slane %v7109_v55, 2  ;;  %v10211_v38 = vld [vmem:[%s12450_s17 + $0x90] sm:$0xff]   ;;  %v10220_v55 = vld [vmem:[%s12450_s17 + $0x20] sm:$0xff]  }
 0x60b   :  { %v6900_v12 = vshll.u32 %v9063_v53, 16  ;;  %v7123_v16 = vor.u32 %v7122_v15, %v7119_v17  ;;  %v6906_v60 = vshll.u32 %v6815_v13, 16  ;;  %v6712_v18 = vrot.slane %v6711_v31, 2  ;;  %v10224_v15 = vld [vmem:[%s12450_s17 + $0x70] sm:$0xff]  }
 0x60c   :  { %7428 = vmatprep.mubr.bf16.mxu0 %v7196_v27  ;;  %9838 = vmatprep.mubr.bf16.mxu1 %v7232_v21  ;;  %v7115_v41 = vsel %vm10891_vm0, %v7110_v49, %v7114_v59  ;;  %v6899_v58 = vrot.slane %v6897_v28, 6  ;;  %v7128_v22 = vrot.slane %v7126_v35, 7  ;;  %v7143_v43 = vsel %vm10891_vm0, %v12145_v4, %v7142_v6  ;;  %v10292_v31 = vld.sshfl [vmem:[#allocation3 + $0x8] sm:$0xf pattern:$0x76325410] }
 0x60d   :  { %7429 = vmatmul.mubr.bf16.vlgmr.msra.gmra.mrb[52].mxu0 %v7160_v45  ;;  %v6902_v32 = vrot.slane %v6900_v12, 7  ;;  %v7124_v3 = vrot.slane %v7123_v16, 2  ;;  %v7233_v52 = vcombine.low %v7101_v14, %v7115_v41  ;;  %v6908_v50 = vrot.slane %v6906_v60, 7  ;;  %v10216_v59 = vld [vmem:[%s12450_s17 + $0x98] sm:$0xff]   ;;  %v10223_v27 = vld [vmem:[%s12450_s17 + $0x28] sm:$0xff]   ;;  %v10226_v12 = vld [vmem:[%s12450_s17 + $0x30] sm:$0xff]  }
 0x60e   :  { %9635 = vmatpush3.bf16.msra.mxu0 %v10204_v23  ;;  %v6717_v61 = vsel %vm10891_vm0, %v6712_v18, %v6716_v63  ;;  %v10294_v53 = vld.sshfl [vmem:[#allocation3 + $0x4] sm:$0xf pattern:$0x76325410]  ;;  %v10215_v63 = vld [vmem:[%s12450_s17 + $0x58] sm:$0xff]   ;;  %v6548_v1 = vcombine.low %v10292_v31, %v10293_v47 }
 0x60f   :  { %v6903_v40 = vor.u32 %v6902_v32, %v6899_v58  ;;  %9636 = vmatprep.subr.bf16.mxu0 %v10207_v39  ;;  %v7129_v48 = vsel %vm10891_vm0, %v7124_v3, %v7128_v22  ;;  %v7241_v4 = vrot.slane %v7233_v52, %v10756_v54  ;;  %v6504_v10 = vcombine.low %v10294_v53, %v10295_v0  ;;  %v9155_v17 = vld.sshfl [vmem:[#allocation3 + $0x8] sm:$0x12 pattern:$0x76325410]  ;;  %v10227_v60 = vld [vmem:[%s12450_s17 + $0x78] sm:$0xff]   ;;  %v10238_v53 = vld [vmem:[%s12450_s17 + $0x180] sm:$0xff]  }
 0x610   :  { %v7234_v6 = vcombine.low %v7129_v48, %v7143_v43  ;;  %v7198_v26 = vcombine.low %v7115_v41, %v7129_v48  ;;  %v9158_v13 = vld.sshfl [vmem:[#allocation3 + $0x14] sm:$0x12 pattern:$0x76325410]  ;;  %v7983_v49 = vcombine.high %v9155_v17, %v9155_v17  ;;  %v10222_v3 = vld [vmem:[%s12450_s17 + $0xa8] sm:$0xff]   ;;  %v10229_v52 = vld [vmem:[%s12450_s17 + $0x38] sm:$0xff]  }
 0x611   :  { %v6904_v57 = vrot.slane %v6903_v40, 2  ;;  %v9157_v21 = vld.sshfl [vmem:[#allocation3 + $0x10] sm:$0x12 pattern:$0x76325410]  ;;  %v8007_v16 = vcombine.high %v9158_v13, %v9158_v13  ;;  %v9166_v31 = vrot.slane %v9158_v13, 9 }
 0x612   :  { %9637 = vmatpush3.bf16.msra.mxu0 %v10209_v62  ;;  %v7248_v51 = vrot.slane %v7234_v6, %v10756_v54  ;;  %v7212_v9 = vrot.slane %v7198_v26, %v10756_v54  ;;  %v9156_v35 = vld.sshfl [vmem:[#allocation3 + $0xc] sm:$0x12 pattern:$0x76325410]  ;;  %v7999_v28 = vcombine.high %v9157_v21, %v9157_v21  ;;  %v8042_v22 = vrot.slane %v7983_v49, 7  ;;  %v10234_v40 = vld [vmem:[%s12450_s17 + $0x1c0] sm:$0xff]  }
 0x613   :  { %v6909_v42 = vsel %vm10891_vm0, %v6904_v57, %v6908_v50  ;;  %9638 = vmatprep.subr.bf16.mxu0 %v10210_v34  ;;  %v9139_v23 = vld.sshfl [vmem:[#allocation3 + $0x4] sm:$0x12 pattern:$0x76325410]  ;;  %v7991_v18 = vcombine.high %v9156_v35, %v9156_v35  ;;  %v8054_v47 = vrot.slane %v8007_v16, 7  ;;  %v9163_v34 = vrot.slane %v9155_v17, 9 }
 0x614   :  { %v7197_v30 = vcombine.low %v6909_v42, %v7101_v14  ;;  %v7161_v2 = vcombine.low %v6717_v61, %v6909_v42  ;;  %v7249_v20 = vcombine.low %v7241_v4, %v7248_v51  ;;  %v10219_v14 = vld [vmem:[%s12450_s17 + $0xa0] sm:$0xff]   ;;  %v10296_v39 = vld.sshfl [vmem:[#allocation3 + $0x8] sm:$0xf pattern:$0x76325410]  ;;  %v7871_v41 = vcombine.high %v9139_v23, %v9139_v23  ;;  %v10225_v6 = vld [vmem:[%s12450_s17 + $0xb0] sm:$0xff]  }
 0x615   :  { %v10297_v58 = vld.sshfl [vmem:[#allocation3] sm:$0xf pattern:$0x76325410]  ;;  %v8050_v43 = vrot.slane %v7999_v28, 7  ;;  %v8046_v48 = vrot.slane %v7991_v18, 7  ;;  %v8055_v42 = vsel %vm11827_vm12, %v9166_v31, %v8054_v47 }
 0x616   :  { %v7205_v45 = vrot.slane %v7197_v30, %v10756_v54  ;;  %9639 = vmatpush3.bf16.msra.mxu0 %v10212_v56  ;;  %9839 = vmatmul.mubr.bf16.vlgmr.msra.gmra.mrb[60].mxu1 %v7249_v20  ;;  %v7169_v24 = vrot.slane %v7161_v2, %v10756_v54  ;;  %v10298_v32 = vld.sshfl [vmem:[#allocation3 + $0x1c] sm:$0xf pattern:$0x76325410]  ;;  %v9165_v50 = vrot.slane %v9157_v21, 9  ;;  %v7930_v61 = vrot.slane %v7871_v41, 7 }
 0x617   :  { %9640 = vmatprep.subr.bf16.mxu0 %v10215_v63  ;;  %9843 = vmatpush3.bf16.msra.mxu1 %v12061_v46  ;;  %v10221_v46 = vld [vmem:[%s12450_s17 + $0x68] sm:$0xff]   ;;  %v9164_v57 = vrot.slane %v9156_v35, 9  ;;  %v9147_v56 = vrot.slane %v9139_v23, 9  ;;  %v6460_v0 = vcombine.low %v10297_v58, %v10296_v39  ;;  %v10228_v2 = vld [vmem:[%s12450_s17 + $0xb8] sm:$0xff]   ;;  %v10246_v13 = vld [vmem:[%s12450_s17 + $0x190] sm:$0xff]  }
 0x618   :  { %v7213_v29 = vcombine.low %v7205_v45, %v7212_v9  ;;  %9858 = vmatprep.mubr.bf16.mxu1 %v6548_v1  ;;  %9844 = vmatprep.subr.bf16.mxu1 %v10208_v5  ;;  %v7177_v11 = vcombine.low %v7169_v24, %v7241_v4  ;;  %v10299_v62 = vld.sshfl [vmem:[#allocation3 + $0x24] sm:$0xf pattern:$0x76325410]  ;;  %v8043_v4 = vsel %vm11827_vm12, %v9163_v34, %v8042_v22  ;;  %v10247_v21 = vld [vmem:[%s12450_s17 + $0x1d8] sm:$0xff]   ;;  %v10245_v41 = vld [vmem:[%s12450_s17 + $0x210] sm:$0xff]  }
 0x619   :  { %v8051_v26 = vsel %vm11827_vm12, %v9165_v50, %v8050_v43  ;;  %v8047_v51 = vsel %vm11827_vm12, %v9164_v57, %v8046_v48  ;;  %v10239_v63 = vld [vmem:[%s12450_s17 + $0x1c8] sm:$0xff]   ;;  %v10300_v30 = vld.sshfl [vmem:[#allocation3 + $0x20] sm:$0xf pattern:$0x76325410]  ;;  %v12281_v9 = vsel %vm11827_vm12, %v9147_v56, %v7930_v61  ;;  %v6521_v20 = vcombine.low %v10298_v32, %v10299_v62  ;;  %v10248_v31 = vld [vmem:[%s12450_s17 + $0x218] sm:$0xff]  }
 0x61a   :  { %7436 = vmatprep.mubr.bf16.mxu0 %v7213_v29  ;;  %9641 = vmatpush3.bf16.msra.mxu0 %v10217_v36  ;;  %v8109_v45 = vcombine.low %v8047_v51, %v8051_v26  ;;  %v10301_v1 = vld.sshfl [vmem:[#allocation3 + $0x20] sm:$0xf pattern:$0x76325410]  ;;  %v8145_v29 = vcombine.low %v8051_v26, %v8055_v42  ;;  %v10240_v23 = vld [vmem:[%s12450_s17 + $0x208] sm:$0xff]  }
 0x61b   :  { %7437 = vmatmul.mubr.bf16.gmra.mrb[56].mxu0 %v7177_v11  ;;  %9642 = vmatprep.subr.bf16.mxu0 %v10218_v33  ;;  %v10302_v36 = vld.sshfl [vmem:[#allocation3 + $0x28] sm:$0xf pattern:$0x76325410]  ;;  %v8144_v33 = vcombine.low %v8043_v4, %v8047_v51  ;;  %v10244_v11 = vld [vmem:[%s12450_s17 + $0x1d0] sm:$0xff]   ;;  %v10250_v16 = vld [vmem:[%s12450_s17 + $0x1e0] sm:$0xff]  }
 0x61c   :  { %9845 = vmatpush3.bf16.msra.mxu1 %v10208_v5  ;;  %7670 = vmatprep.mubr.bf16.mxu0 %v6504_v10  ;;  %v8108_v5 = vcombine.low %v12281_v9, %v8043_v4  ;;  %v10303_v24 = vld.sshfl [vmem:[#allocation3 + $0x18] sm:$0xf pattern:$0x76325410]  ;;  %v8159_v17 = vrot.slane %v8145_v29, %v10756_v54  ;;  %v6565_v35 = vcombine.low %v10301_v1, %v10302_v36  ;;  %v10252_v62 = vld [vmem:[%s12450_s17 + $0x1a0] sm:$0xff]   ;;  %v10253_v22 = vld [vmem:[%s12450_s17 + $0x1e8] sm:$0xff]  }
 0x61d   :  { %9846 = vmatprep.subr.bf16.mxu1 %v10211_v38  ;;  %v9159_v49 = vld.sshfl [vmem:[#allocation3 + $0x20] sm:$0x12 pattern:$0x76325410]  ;;  %v10255_v50 = vld [vmem:[%s12450_s17 + $0x1a8] sm:$0xff]   ;;  %v10256_v4 = vld [vmem:[%s12450_s17 + $0x1f0] sm:$0xff]  }
 0x61e   :  { %9643 = vmatpush3.bf16.msra.mxu0 %v10220_v55  ;;  %v8116_v10 = vrot.slane %v8108_v5, %v10756_v54  ;;  %v8123_v55 = vrot.slane %v8109_v45, %v10756_v54  ;;  %v9161_v39 = vld.sshfl [vmem:[#allocation3 + $0x28] sm:$0x12 pattern:$0x76325410]  ;;  %v8015_v58 = vcombine.high %v9159_v49, %v9159_v49  ;;  %v9167_v57 = vrot.slane %v9159_v49, 9  ;;  %v10259_v1 = vld [vmem:[%s12450_s17 + $0x1f8] sm:$0xff]  }
 0x61f   :  { %9644 = vmatprep.subr.bf16.mxu0 %v10221_v46  ;;  %v10235_v46 = vld [vmem:[%s12450_s17 + $0x200] sm:$0xff]   ;;  %v9143_v18 = vld.sshfl [vmem:[#allocation3 + $0x1c] sm:$0x12 pattern:$0x76325410]  ;;  %v8031_v32 = vcombine.high %v9161_v39, %v9161_v39  ;;  %v9169_v56 = vrot.slane %v9161_v39, 9 }
 0x620   :  { %9847 = vmatpush3.bf16.msra.mxu1 %v10211_v38  ;;  %v10241_v38 = vld [vmem:[%s12450_s17 + $0x188] sm:$0xff]   ;;  %v8058_v34 = vrot.slane %v8015_v58, 7 }
 0x621   :  { %9848 = vmatprep.subr.bf16.mxu1 %v10216_v59  ;;  %v8066_v48 = vrot.slane %v8031_v32, 7 }
 0x622   :  { %9645 = vmatpush3.bf16.msra.mxu0 %v10223_v27  ;;  %v6477_v27 = vcombine.low %v10303_v24, %v10300_v30  ;;  %v8059_v51 = vsel %vm11827_vm12, %v9167_v57, %v8058_v34  ;;  %v9151_v30 = vrot.slane %v9143_v18, 9 }
 0x623   :  { %9646 = vmatprep.subr.bf16.mxu0 %v10224_v15  ;;  %v8124_v15 = vcombine.low %v8116_v10, %v8123_v55  ;;  %v10261_v10 = vld [vmem:[%s12450_s17 + $0x1b8] sm:$0xff]  }
 0x624   :  { %9849 = vmatpush3.bf16.msra.mxu1 %v10216_v59  ;;  %v12299_v59 = vrot.slane %v8144_v33, %v10756_v54 }
 0x625   :  { %9850 = vmatprep.subr.bf16.mxu1 %v10219_v14 }
 0x626   :  { %9647 = vmatpush3.bf16.msra.mxu0 %v10226_v12  ;;  %v8160_v28 = vcombine.low %v12299_v59, %v8159_v17  ;;  %v10249_v12 = vld [vmem:[%s12450_s17 + $0x198] sm:$0xff]  }
 0x627   :  { %9648 = vmatprep.subr.bf16.mxu0 %v10227_v60  ;;  %v9160_v60 = vld.sshfl [vmem:[#allocation3 + $0x24] sm:$0x12 pattern:$0x76325410] }
 0x628   :  { %9851 = vmatpush3.bf16.msra.mxu1 %v10219_v14  ;;  %v9123_v14 = vld.sshfl [vmem:[#allocation3] sm:$0x12 pattern:$0x76325410]  ;;  %v8023_v43 = vcombine.high %v9160_v60, %v9160_v60  ;;  %v9168_v42 = vrot.slane %v9160_v60, 9 }
 0x629   :  { %9852 = vmatprep.subr.bf16.mxu1 %v10222_v3  ;;  %v9131_v47 = vrot.slane %v9123_v14, 9 }
 0x62a   :  { %9649 = vmatpush3.bf16.msra.mxu0 %v10229_v52  ;;  %v7903_v52 = vcombine.high %v9143_v18, %v9143_v18  ;;  %v8062_v26 = vrot.slane %v8023_v43, 7 }
 0x62b   :  { %9672 = vmatprep.subr.bf16.mxu0 %v10234_v40  ;;  %v9162_v40 = vld.sshfl [vmem:[#allocation3 + $0x2c] sm:$0x12 pattern:$0x76325410] }
 0x62c   :  { %9853 = vmatpush3.bf16.msra.mxu1 %v10222_v3  ;;  %v7759_v3 = vcombine.high %v9123_v14, %v9123_v14  ;;  %v8039_v5 = vcombine.high %v9162_v40, %v9162_v40  ;;  %v8063_v36 = vsel %vm11827_vm12, %v9168_v42, %v8062_v26  ;;  %v9170_v55 = vrot.slane %v9162_v40, 9  ;;  %v10266_v26 = vld [vmem:[%s12454_s21 + $0x20] sm:$0xff]  }
 0x62d   :  { %9854 = vmatprep.subr.bf16.mxu1 %v10225_v6  ;;  %7671 = vmatmul.mubr.bf16.vlgmr.msra.gmra.mrb[60].mxu0 %v6460_v0  ;;  %v10251_v0 = vld [vmem:[%s12450_s17 + $0x220] sm:$0xff]   ;;  %v8161_v49 = vcombine.low %v8059_v51, %v8063_v36 }
 0x62e   :  { %7678 = vmatprep.mubr.bf16.mxu0 %v6521_v20  ;;  %9673 = vmatpush3.bf16.msra.mxu0 %v10238_v53  ;;  %v7818_v61 = vrot.slane %v7759_v3, 7  ;;  %v7946_v53 = vrot.slane %v7903_v52, 7 }
 0x62f   :  { %9674 = vmatprep.subr.bf16.mxu0 %v10239_v63  ;;  %v8067_v63 = vsel %vm11827_vm12, %v9169_v56, %v8066_v48  ;;  %v8169_v60 = vrot.slane %v8161_v49, %v10756_v54 }
 0x630   :  { %9855 = vmatpush3.bf16.msra.mxu1 %v10225_v6  ;;  %v9127_v6 = vld.sshfl [vmem:[#allocation3 + $0x18] sm:$0x12 pattern:$0x76325410]  ;;  %v7819_v20 = vsel %vm11827_vm12, %v9131_v47, %v7818_v61  ;;  %v7947_v24 = vsel %vm11827_vm12, %v9151_v30, %v7946_v53  ;;  %v8126_v29 = vcombine.low %v8063_v36, %v8067_v63  ;;  %v10264_v61 = vld [vmem:[%s12454_s21 + $0x10] sm:$0xff]  }
 0x631   :  { %9856 = vmatprep.subr.bf16.mxu1 %v10228_v2  ;;  %v7791_v45 = vcombine.high %v9127_v6, %v9127_v6  ;;  %v8125_v33 = vcombine.low %v7947_v24, %v8059_v51  ;;  %v9135_v17 = vrot.slane %v9127_v6, 9  ;;  %v10265_v6 = vld [vmem:[%s12454_s21 + $0x18] sm:$0xff]  }
 0x632   :  { %9675 = vmatpush3.bf16.msra.mxu0 %v10241_v38  ;;  %v10254_v38 = vld [vmem:[%s12450_s17 + $0x228] sm:$0xff]  }
 0x633   :  { %9676 = vmatprep.subr.bf16.mxu0 %v10244_v11  ;;  %v8072_v11 = vcombine.low %v7819_v20, %v12281_v9  ;;  %v10257_v9 = vld [vmem:[%s12450_s17 + $0x230] sm:$0xff]  }
 0x634   :  { %9857 = vmatpush3.bf16.msra.mxu1 %v10228_v2  ;;  %v10258_v2 = vld [vmem:[%s12450_s17 + $0x1b0] sm:$0xff]  }
 0x635   :  { %9862 = vmatprep.subr.bf16.mxu1 %v10235_v46  ;;  %7679 = vmatmul.mubr.bf16.gmra.mrb[64].mxu0 %v6477_v27  ;;  %v8133_v27 = vrot.slane %v8125_v33, %v10756_v54 }
 0x636   :  { %9677 = vmatpush3.bf16.msra.mxu0 %v10246_v13  ;;  %8356 = vmatprep.mubr.bf16.mxu0 %v8124_v15  ;;  %v7834_v13 = vrot.slane %v7791_v45, 7  ;;  %v8080_v15 = vrot.slane %v8072_v11, %v10756_v54 }
 0x637   :  { %9859 = vmatmul.mubr.bf16.vlgmr.msra.gmra.mrb[60].mxu1 %v6565_v35  ;;  %9678 = vmatprep.subr.bf16.mxu0 %v10247_v21  ;;  %v8140_v21 = vrot.slane %v8126_v29, %v10756_v54  ;;  %v10269_v29 = vld [vmem:[%s12454_s21 + $0x38] sm:$0xff]  }
 0x638   :  { %9863 = vmatpush3.bf16.msra.mxu1 %v10235_v46  ;;  %9878 = vmatprep.mubr.bf16.mxu1 %v8160_v28  ;;  %v8070_v46 = vrot.slane %v8039_v5, 7  ;;  %v8088_v14 = vcombine.low %v8080_v15, %v12299_v59  ;;  %v10268_v5 = vld [vmem:[%s12454_s21 + $0x30] sm:$0xff]  }
 0x639   :  { %9864 = vmatprep.subr.bf16.mxu1 %v10240_v23  ;;  %v8141_v28 = vcombine.low %v8133_v27, %v8140_v21 }
 0x63a   :  { %9679 = vmatpush3.bf16.msra.mxu0 %v10249_v12  ;;  %v8071_v35 = vsel %vm11827_vm12, %v9170_v55, %v8070_v46  ;;  %v10260_v12 = vld [vmem:[%s12450_s17 + $0x238] sm:$0xff]  }
 0x63b   :  { %9680 = vmatprep.subr.bf16.mxu0 %v10250_v16  ;;  %v8162_v39 = vcombine.low %v8067_v63, %v8071_v35  ;;  %v10267_v63 = vld [vmem:[%s12454_s21 + $0x28] sm:$0xff]  }
 0x63c   :  { %9865 = vmatpush3.bf16.msra.mxu1 %v10240_v23  ;;  %v7835_v23 = vsel %vm11827_vm12, %v9135_v17, %v7834_v13 }
 0x63d   :  { %9866 = vmatprep.subr.bf16.mxu1 %v10245_v41  ;;  %v8089_v16 = vcombine.low %v7835_v23, %v7947_v24  ;;  %v8176_v8 = vrot.slane %v8162_v39, %v10756_v54 }
 0x63e   :  { %9681 = vmatpush3.bf16.msra.mxu0 %v10252_v62 }
 0x63f   :  { %9682 = vmatprep.subr.bf16.mxu0 %v10253_v22  ;;  %v8097_v59 = vrot.slane %v8089_v16, %v10756_v54  ;;  %v10262_v54 = vld [vmem:[%s12454_s21] sm:$0xff]  }
 0x640   :  { %9867 = vmatpush3.bf16.msra.mxu1 %v10245_v41  ;;  %v8177_v41 = vcombine.low %v8169_v60, %v8176_v8  ;;  %v9195_v8 = vld [vmem:[%s12451_s18] ss:$0 sm:$0xff] }
 0x641   :  { %9868 = vmatprep.subr.bf16.mxu1 %v10248_v31  ;;  %v8105_v18 = vcombine.low %v8097_v59, %v8169_v60 }
 0x642   :  { %9683 = vmatpush3.bf16.msra.mxu0 %v10255_v50  ;;  %v10263_v50 = vld [vmem:[%s12454_s21 + $0x8] sm:$0xff]  }
 0x643   :  { %9684 = vmatprep.subr.bf16.mxu0 %v10256_v4 }
 0x644   :  { %9869 = vmatpush3.bf16.msra.mxu1 %v10248_v31 }
 0x645   :  { %9870 = vmatprep.subr.bf16.mxu1 %v10251_v0 }
 0x646   :  { %9685 = vmatpush3.bf16.msra.mxu0 %v10258_v2 }
 0x647   :  { %9686 = vmatprep.subr.bf16.mxu0 %v10259_v1 }
 0x648   :  { %9871 = vmatpush3.bf16.msra.mxu1 %v10251_v0 }
 0x649   :  { %9872 = vmatprep.subr.bf16.mxu1 %v10254_v38 }
 0x64a   :  { %9687 = vmatpush3.bf16.msra.mxu0 %v10261_v10 }
 0x64b   :  { %9882 = vmatprep.subr.bf16.mxu0 %v10262_v54 }
 0x64c   :  { %9873 = vmatpush3.bf16.msra.mxu1 %v10254_v38 }
 0x64d   :  { %9874 = vmatprep.subr.bf16.mxu1 %v10257_v9  ;;  %8357 = vmatmul.mubr.bf16.vlgmr.msra.gmra.mrb[68].mxu0 %v8088_v14 }
 0x64e   :  { %8364 = vmatprep.mubr.bf16.mxu0 %v8141_v28  ;;  %9883 = vmatpush3.bf16.msra.mxu0 %v10262_v54 }
 0x64f   :  { %9884 = vmatprep.subr.bf16.mxu0 %v10263_v50 }
 0x650   :  { %9875 = vmatpush3.bf16.msra.mxu1 %v10257_v9 }
 0x651   :  { %9876 = vmatprep.subr.bf16.mxu1 %v10260_v12 }
 0x652   :  { %9885 = vmatpush3.bf16.msra.mxu0 %v10263_v50 }
 0x653   :  { %9886 = vmatprep.subr.bf16.mxu0 %v10264_v61 }
 0x654   :  { %9877 = vmatpush3.bf16.msra.mxu1 %v10260_v12 }
 0x655   :  { %8365 = vmatmul.mubr.bf16.gmra.mrb[72].mxu0 %v8105_v18 }
 0x656   :  { %9887 = vmatpush3.bf16.msra.mxu0 %v10264_v61 }
 0x657   :  { %9879 = vmatmul.mubr.bf16.vlgmr.msra.gmra.mrb[60].mxu1 %v8177_v41  ;;  %9888 = vmatprep.subr.bf16.mxu0 %v10265_v6 }
 0x65a   :  { %9889 = vmatpush3.bf16.msra.mxu0 %v10265_v6 }
 0x65b   :  { %9890 = vmatprep.subr.bf16.mxu0 %v10266_v26 }
 0x65e   :  { %9891 = vmatpush3.bf16.msra.mxu0 %v10266_v26 }
 0x65f   :  { %9892 = vmatprep.subr.bf16.mxu0 %v10267_v63 }
 0x662   :  { %9893 = vmatpush3.bf16.msra.mxu0 %v10267_v63 }
 0x663   :  { %9894 = vmatprep.subr.bf16.mxu0 %v10268_v5 }
 0x666   :  { %9895 = vmatpush3.bf16.msra.mxu0 %v10268_v5 }
 0x667   :  { %9896 = vmatprep.subr.bf16.mxu0 %v10269_v29 }
 0x66a   :  { %9897 = vmatpush3.bf16.msra.mxu0 %v10269_v29 }
 0x6e0   :  { %v9612_v58 = vpop.f32.mrb[52].mxu0 }
 0x6e1   :  { %v9613_v32 = vpop.f32.mrb[53].mxu0 }
 0x6e2   :  { %v9614_v62 = vadd.f32 %v9613_v32, %v9612_v58  ;;  %v9615_v3 = vpop.f32.mrb[54].mxu0 }
 0x6e3   :  { %v9616_v22 = vpop.f32.mrb[55].mxu0 }
 0x6e4   :  { %v9617_v43 = vadd.f32 %v9616_v22, %v9615_v3 }
 0x6ee   :  { %v9618_v52 = vpop.f32.mrb[56].mxu0 }
 0x6ef   :  { %v9619_v31 = vpop.f32.mrb[57].mxu0 }
 0x6f0   :  { %v9620_v47 = vadd.f32 %v9619_v31, %v9618_v52  ;;  %v9621_v40 = vpop.f32.mrb[58].mxu0 }
 0x6f1   :  { %v9622_v34 = vpop.f32.mrb[59].mxu0 }
 0x6f2   :  { %v9623_v48 = vadd.f32 %v9622_v34, %v9621_v40 }
 0x700   :  { %v9650_v4 = vpop.f32.mrb[60].mxu0 }
 0x701   :  { %v9651_v57 = vpop.f32.mrb[61].mxu0 }
 0x702   :  { %v9652_v56 = vadd.f32 %v9651_v57, %v9650_v4  ;;  %v9653_v53 = vpop.f32.mrb[62].mxu0 }
 0x703   :  { %v9654_v0 = vpop.f32.mrb[63].mxu0 }
 0x704   :  { %v9917_v51 = vadd.f32 %v9652_v56, %v9614_v62  ;;  %v9655_v42 = vadd.f32 %v9654_v0, %v9653_v53 }
 0x706   :  { %v9923_v30 = vadd.f32 %v9655_v42, %v9617_v43 }
 0x708   :  { %v9656_v2 = vpop.f32.mrb[64].mxu0 }
 0x709   :  { %v9657_v20 = vpop.f32.mrb[65].mxu0 }
 0x70a   :  { %v9658_v45 = vadd.f32 %v9657_v20, %v9656_v2  ;;  %v9659_v1 = vpop.f32.mrb[66].mxu0 }
 0x70b   :  { %v9660_v36 = vpop.f32.mrb[67].mxu0 }
 0x70c   :  { %v9914_v24 = vadd.f32 %v9658_v45, %v9620_v47  ;;  %v9661_v33 = vadd.f32 %v9660_v36, %v9659_v1 }
 0x70e   :  { %v9920_v38 = vadd.f32 %v9661_v33, %v9623_v48 }
 0x720   :  { %v9688_v11 = vpop.f32.mrb[68].mxu0 }
 0x721   :  { %v9689_v10 = vpop.f32.mrb[69].mxu0 }
 0x722   :  { %v9690_v55 = vadd.f32 %v9689_v10, %v9688_v11  ;;  %v9691_v46 = vpop.f32.mrb[70].mxu0 }
 0x723   :  { %v9692_v17 = vpop.f32.mrb[71].mxu0 }
 0x724   :  { %v9918_v13 = vadd.f32 %v9917_v51, %v9690_v55  ;;  %v9693_v27 = vadd.f32 %v9692_v17, %v9691_v46  ;;  %v6207_v55 = vld [vmem:[%s12453_s20] sm:$0x1] }
 0x726   :  { %v9924_v21 = vadd.f32 %v9923_v30, %v9693_v27 }
 0x728   :  { %v9694_v9 = vpop.f32.mrb[72].mxu0 }
 0x729   :  { %v9695_v15 = vpop.f32.mrb[73].mxu0 }
 0x72a   :  { %v9880_v35 = vpop.f32.mrb[60].mxu1  ;;  %v9696_v23 = vadd.f32 %v9695_v15, %v9694_v9  ;;  %v9697_v14 = vpop.f32.mrb[74].mxu0 }
 0x72b   :  { %v8407_v49 = vpop.f32.mrb[61].mxu1  ;;  %v9698_v28 = vpop.f32.mrb[75].mxu0 }
 0x72c   :  { %v9919_v12 = vadd.f32 %v9918_v13, %v8407_v49  ;;  %v9881_v39 = vpop.f32.mrb[62].mxu1  ;;  %v9915_v16 = vadd.f32 %v9914_v24, %v9696_v23  ;;  %v9699_v60 = vadd.f32 %v9698_v28, %v9697_v14 }
 0x72d   :  { %v8410_v59 = vpop.f32.mrb[63].mxu1 }
 0x72e   :  { %v9925_v18 = vadd.f32 %v9924_v21, %v8410_v59  ;;  %v9916_v41 = vadd.f32 %v9915_v16, %v9880_v35  ;;  %v9921_v58 = vadd.f32 %v9920_v38, %v9699_v60  ;;  %v8432_v32 = vadd.f32 %v9919_v12, %v9195_v8  ;;  %v6206_v38 = vld [vmem:[%s12452_s19] sm:$0x1] }
 0x730   :  { %v8433_v62 = vadd.f32 %v9925_v18, %v9195_v8  ;;  %v8434_v3 = vadd.f32 %v9916_v41, %v9195_v8  ;;  %v9922_v22 = vadd.f32 %v9921_v58, %v9881_v39  ;;  %v9196_v18 = vld [vmem:[%s12455_s22] ss:$0 sm:$0xff]  ;;  %s10304_s22 = scalar_lea.vmem %s8626_s28, 512 }
 0x731   :  { %p10305_p0 = scmp.ne.s32.totalorder %s8626_s28, %s10304_s22  ;;  %p10310_p2 = scmp.lt.s32.totalorder %s10304_s22, %s10304_s22 }
 0x732   :  { %v8436_v43 = vadd.f32 %v8433_v62, %v8432_v32  ;;  %v8435_v52 = vadd.f32 %v9922_v22, %v9195_v8 }
 0x733   :  { %p10311_p3 = por %p10310_p2, %p10309_p1 }
 0x734   :  { %v8437_v31 = vadd.f32 %v8436_v43, %v8434_v3 }
 0x735   :  { %p10312_p4 = pnand %p10311_p3, %p10305_p0 }
 0x736   :  { %v8438_v47 = vadd.f32 %v8437_v31, %v8435_v52 }
 0x738   :  { %v8439_v40 = vrot.slane %v8438_v47, 4 }
 0x73a   :  { %v8440_v34 = vadd.f32 %v8439_v40, %v8438_v47 }
 0x73c   :  { %v8441_v48 = vrot.slane %v8440_v34, 2 }
 0x73e   :  { %v8442_v54 = vadd.f32 %v8441_v48, %v8440_v34 }
 0x740   :  { %v8443_v50 = vrot.slane %v8442_v54, 1 }
 0x742   :  { %v8444_v61 = vadd.f32 %v8443_v50, %v8442_v54 }
 0x744   :  { %v8445_v6 = vmul.f32 0.03125, %v8444_v61 }
 0x746   :  { %v8446_v4 = vsub.f32 %v8432_v32, %v8445_v6  ;;  %v8447_v57 = vsub.f32 %v8433_v62, %v8445_v6  ;;  %v8448_v26 = vsub.f32 %v8434_v3, %v8445_v6  ;;  %v8449_v56 = vsub.f32 %v8435_v52, %v8445_v6 }
 0x748   :  { %v8450_v53 = vmul.f32 %v8446_v4, %v8446_v4  ;;  %v8451_v0 = vmul.f32 %v8447_v57, %v8447_v57  ;;  %v8452_v51 = vmul.f32 %v8448_v26, %v8448_v26  ;;  %v8453_v63 = vmul.f32 %v8449_v56, %v8449_v56 }
 0x74a   :  { %v8454_v42 = vadd.f32 %v8451_v0, %v8450_v53 }
 0x74c   :  { %v8455_v30 = vadd.f32 %v8454_v42, %v8452_v51 }
 0x74e   :  { %v8456_v2 = vadd.f32 %v8455_v30, %v8453_v63 }
 0x750   :  { %v8457_v20 = vrot.slane %v8456_v2, 4 }
 0x752   :  { %v8458_v5 = vadd.f32 %v8457_v20, %v8456_v2 }
 0x754   :  { %v8459_v45 = vrot.slane %v8458_v5, 2 }
 0x756   :  { %v8460_v1 = vadd.f32 %v8459_v45, %v8458_v5 }
 0x758   :  { %v8461_v36 = vrot.slane %v8460_v1, 1 }
 0x75a   :  { %v8462_v24 = vadd.f32 %v8461_v36, %v8460_v1 }
 0x75c   :  { %v8463_v33 = vmul.f32 0.03125, %v8462_v24 }
 0x75e   :  { %v8464_v29 = vadd.f32 1e-05, %v8463_v33 }
 0x760   :  { %10278 = vrsqrt.f32 %v8464_v29 }
 0x76a   :  { %v10279_v11 = vpop.eup %10278 }
 0x76b   :  { %v8466_v10 = vmul.f32 %v10279_v11, %v6206_v38 }
 0x76d   :  { %v8467_v46 = vmul.f32 %v8466_v10, %v8445_v6  ;;  %v8472_v17 = vrot.slane %v8466_v10, %v10747_v44 }
 0x76f   :  { %v8468_v13 = vsub.f32 %v6207_v55, %v8467_v46  ;;  %v8476_v27 = vmul.f32 %v8472_v17, %v8435_v52  ;;  %v8473_v21 = vmul.f32 %v8472_v17, %v8432_v32  ;;  %v8474_v9 = vmul.f32 %v8472_v17, %v8433_v62 }
 0x770   :  { %v8475_v15 = vmul.f32 %v8472_v17, %v8434_v3 }
 0x771   :  { %v8481_v35 = vrot.slane %v8468_v13, %v10747_v44 }
 0x773   :  { %v8486_v23 = vadd.f32 %v8481_v35, %v8476_v27  ;;  %v8483_v14 = vadd.f32 %v8481_v35, %v8473_v21  ;;  %v8484_v49 = vadd.f32 %v8481_v35, %v8474_v9  ;;  %v8485_v28 = vadd.f32 %v8481_v35, %v8475_v15 }
 0x775   :  { %v8490_v12 = vmax.f32 %v8486_v23, 0.0  ;;  %v8487_v39 = vmax.f32 %v8483_v14, 0.0  ;;  %v8488_v16 = vmax.f32 %v8484_v49, 0.0  ;;  %v8489_v60 = vmax.f32 %v8485_v28, 0.0 }
 0x777   :  { %v8491_v8 = vpack.c.bf16 %v8488_v16, %v8487_v39  ;;  %v8492_v59 = vpack.c.bf16 %v8490_v12, %v8489_v60 }
 0x779   :  { %9898 = vmatprep.mubr.bf16.mxu0 %v8491_v8 }
 0x77a   :  { %9899 = vmatmul.mubr.bf16.vlgmr.msra.gmra.mrb[76].mxu0 %v8492_v59 }
 0x84d   :  { %v9900_v41 = vpop.f32.mrb[76].mxu0 }
 0x84e   :  { %v8590_v58 = vadd.f32 %v9900_v41, %v9196_v18  ;;  %v8581_v32 = vpop.f32.mrb[77].mxu0 }
 0x84f   :  { %v8582_v44 = vadd.f32 %v9196_v18, %v8581_v32  ;;  %v9901_v62 = vpop.f32.mrb[78].mxu0 }
 0x850   :  { %v8598_v3 = vadd.f32 %v8590_v58, %v12074_v7  ;;  %v8593_v22 = vadd.f32 %v9901_v62, %v9196_v18  ;;  %v8584_v43 = vpop.f32.mrb[79].mxu0 }
 0x851   :  { %v8596_v52 = vadd.f32 %v8582_v44, %v12068_v25  ;;  %v8585_v31 = vadd.f32 %v9196_v18, %v8584_v43 }
 0x852   :  { %v8606_v47 = vcombine.high %v8598_v3, %v8598_v3  ;;  %8616 = vst [vmem:[#allocation4 + $0x10] sm:$0xf] %v8598_v3  ;;  %v8599_v40 = vadd.f32 %v8593_v22, %v12079_v19 }
 0x853   :  { %v8604_v34 = vcombine.high %v8596_v52, %v8596_v52  ;;  %8612 = vst [vmem:[#allocation4] sm:$0xf] %v8596_v52  ;;  %v8597_v48 = vadd.f32 %v8585_v31, %v12071_v37 }
 0x854   :  { %8617 = vst [vmem:[#allocation4 + $0x14] sm:$0xf] %v8606_v47  ;;  %v8607_v54 = vcombine.high %v8599_v40, %v8599_v40  ;;  %8618 = vst [vmem:[#allocation4 + $0x18] sm:$0xf] %v8599_v40 }
 0x855   :  { %8613 = vst [vmem:[#allocation4 + $0x4] sm:$0xf] %v8604_v34  ;;  %v8605_v7 = vcombine.high %v8597_v48, %v8597_v48  ;;  %8614 = vst [vmem:[#allocation4 + $0x8] sm:$0xf] %v8597_v48 }
 0x856   :  { %8619 = vst [vmem:[#allocation4 + $0x1c] sm:$0xf] %v8607_v54 }
 0x857   :  { %8615 = vst [vmem:[#allocation4 + $0xc] sm:$0xf] %v8605_v7 }
 0x858   :  { %10315 = shalt.err (!%p10312_p4)
}
 0x859   :  { %s10316_s3 = scalar_lea.hbm %s12456_s23, 512 }
 0x85a   :  { %p10317_p5 = scmp.ne.s32.totalorder %s12456_s23, %s10316_s3  ;;  %p10320_p6 = scmp.lt.u32.totalorder %s10316_s3, %s12456_s23 }
 0x85c   :  { %p10322_p7 = pnand %p10320_p6, %p10317_p5 }
 0x85e   :  { %10325 = shalt.err (!%p10322_p7)
}
 0x85f   :  { %s10331_s24 = smov 64   ;;  %s10332_s15 = smov 4  }
 0x860   :  { %8631 = dma.vmem_to_hbm [thread:$0]  %s8626_s28, 512, %s12456_s23, [#allocation5], %s10331_s24, %s10331_s24, %s10332_s15  }
 0x861   :  { %10326 = dma.done.wait [#allocation5], 512  }
 0x862   :  { %10327 = vsyncadd [#allocation5], 4294966784 }
 0x863   :  { %8635 = vsyncpa [#allocation5], 1 }

</bundles_post_ra>
